<compile_context>
chip_gen: v7x
topology: tpu7x:2x2x1
jax: 0.10.0
libtpu: 0.0.40
codegen_flags: <defaults>
</compile_context>

<pallas_src>
import functools
import math

import jax
import jax.numpy as jnp
import numpy as np
from jax.experimental import pallas as pl
from jax.experimental.pallas import tpu as pltpu

D_STATE = 16   # Mamba defaults
D_CONV = 4
EXPAND = 2
SCAN_CHUNK = 8        # timesteps per unrolled scan chunk
DEFAULT_TILE_T = 256  # default time tile (MXU-friendly M on v6e/v7x)


# ----------------------------------------------------------------------------
# Pallas kernel: one (batch, time-tile) step of a Mamba mixer, time-major (tile_T, C):
#   fused in_proj -> causal dw-conv (halo carried across tiles) -> SiLU -> fused x_proj ->
#   dt_proj/softplus -> chunked+unrolled selective scan (h carried across tiles) ->
#   gate -> out_proj
# ----------------------------------------------------------------------------
def _mamba_kernel(x_ref, w_in_ref, w_conv_ref, b_conv_ref, w_xp_ref,
                  w_dt_ref, b_dt_ref, a_neg_ref, d_ref, w_out_ref,
                  o_ref,
                  xz_scr, xpad_scr, xa_scr, b_scr, c_scr, dt_scr, y_scr,
                  h_scr, halo_scr,
                  *, chunk):
    tile_t = x_ref.shape[0]
    d_inner = w_conv_ref.shape[1]
    d_conv = w_conv_ref.shape[0]
    d_state = a_neg_ref.shape[0]
    dt_rank = w_dt_ref.shape[0]
    f32 = jnp.float32
    bf16 = jnp.bfloat16
    t_idx = pl.program_id(1)

    # ---- reset carried state (scan state + conv halo) at the start of each batch row ----
    @pl.when(t_idx == 0)
    def _():
        h_scr[...] = jnp.zeros_like(h_scr)
        halo_scr[...] = jnp.zeros_like(halo_scr)

    # ---- fused in_proj ([x-branch | z-branch]): bf16 weights, f32 accumulation ----
    xz_scr[...] = jnp.dot(x_ref[...].astype(bf16), w_in_ref[...],
                          preferred_element_type=f32)
    xc = xz_scr[:, 0:d_inner]                                  # (tile_t, d_inner)

    # ---- causal depthwise Conv1d along time; halo rows come from the previous tile ----
    xpad_scr[0:d_conv - 1, :] = halo_scr[...]
    xpad_scr[d_conv - 1:d_conv - 1 + tile_t, :] = xc
    halo_scr[...] = xc[tile_t - (d_conv - 1):, :]              # halo for the next tile
    wconv = w_conv_ref[...]                                    # (d_conv, d_inner) f32
    conv = xpad_scr[0:tile_t, :] * wconv[0:1, :]
    for k in range(1, d_conv):
        conv = conv + xpad_scr[k:k + tile_t, :] * wconv[k:k + 1, :]
    conv = conv + b_conv_ref[...]
    xa = conv * jax.nn.sigmoid(conv)                           # SiLU
    xa_scr[...] = xa

    # ---- fused x_proj ([dt_low | B | C]) + dt_proj + softplus ----
    xp = jnp.dot(xa.astype(bf16), w_xp_ref[...], preferred_element_type=f32)
    b_scr[...] = xp[:, dt_rank:dt_rank + d_state]              # (tile_t, d_state)
    c_scr[...] = xp[:, dt_rank + d_state:dt_rank + 2 * d_state]
    dt_lin = jnp.dot(xp[:, 0:dt_rank].astype(bf16), w_dt_ref[...],
                     preferred_element_type=f32) + b_dt_ref[...]
    dt_scr[...] = jnp.maximum(dt_lin, 0.0) + jnp.log1p(jnp.exp(-jnp.abs(dt_lin)))

    A = a_neg_ref[...]                                         # (d_state, d_inner) = -exp(A_log).T
    # (d_state, d_state) identity for lane-vector -> sublane-column conversion (tiny, hoisted).
    eye_s = (jax.lax.broadcasted_iota(jnp.int32, (d_state, d_state), 0) ==
             jax.lax.broadcasted_iota(jnp.int32, (d_state, d_state), 1)).astype(f32)

    n_chunks = tile_t // chunk

    # ---- selective scan: chunked, inner chunk fully unrolled, h carried in vregs ----
    def chunk_body(c_i, h):
        base = pl.multiple_of(c_i * chunk, chunk)
        dt_blk = dt_scr[pl.ds(base, chunk), :]                 # (chunk, d_inner)
        xa_blk = xa_scr[pl.ds(base, chunk), :]                 # (chunk, d_inner)
        b_blk = b_scr[pl.ds(base, chunk), :]                   # (chunk, d_state)
        c_blk = c_scr[pl.ds(base, chunk), :]                   # (chunk, d_state)
        dtx_blk = dt_blk * xa_blk                              # vectorized, off the h chain
        # Everything below is independent of h, so the unrolled block lets the scheduler
        # run the EUP exps and XLU reduces ahead of / overlapped with the serial recurrence.
        dA = [jnp.exp(dt_blk[tt:tt + 1, :] * A) for tt in range(chunk)]
        bcol = [jnp.sum(eye_s * b_blk[tt:tt + 1, :], axis=1, keepdims=True)
                for tt in range(chunk)]
        ccol = [jnp.sum(eye_s * c_blk[tt:tt + 1, :], axis=1, keepdims=True)
                for tt in range(chunk)]
        for tt in range(chunk):
            h = dA[tt] * h + bcol[tt] * dtx_blk[tt:tt + 1, :]
            y_scr[pl.ds(base + tt, 1), :] = jnp.sum(ccol[tt] * h, axis=0, keepdims=True)
        return h

    h_final = jax.lax.fori_loop(0, n_chunks, chunk_body, h_scr[...])
    h_scr[...] = h_final                                       # carry scan state to next tile

    # ---- skip (D) term, gate with silu(z), out_proj ----
    z = xz_scr[:, d_inner:2 * d_inner]
    y = (y_scr[...] + d_ref[...] * xa_scr[...]) * (z * jax.nn.sigmoid(z))
    o_ref[...] = jnp.dot(y.astype(bf16), w_out_ref[...],
                         preferred_element_type=f32).astype(o_ref.dtype)


def _pick_tile_t(T, want):
    """Largest multiple-of-8 divisor of T that is <= want (full T if T % 8 != 0)."""
    if T % 8 != 0:
        return T
    tile = min(T, max(8, (want // 8) * 8))
    while T % tile != 0:
        tile -= 8
    return tile


def mamba_block(x, p, tile_t=None):
    """x: (B, T, C) time-major for this mixer; returns (B, T, C)."""
    B, T, C = x.shape
    d_inner = p["w_conv"].shape[1]
    d_conv = p["w_conv"].shape[0]
    d_state = p["A_neg"].shape[0]

    tile = _pick_tile_t(T, DEFAULT_TILE_T if tile_t is None else tile_t)
    nt = T // tile
    chunk = SCAN_CHUNK if tile % SCAN_CHUNK == 0 else tile

    weights = [p["w_in"], p["w_conv"], p["b_conv"], p["w_xp"],
               p["w_dt"], p["b_dt"], p["A_neg"], p["D"], p["w_out"]]

    scratch_shapes = [
        pltpu.VMEM((tile, 2 * d_inner), jnp.float32),            # xz (fused in_proj out)
        pltpu.VMEM((tile + d_conv - 1, d_inner), jnp.float32),   # xpad (causal conv)
        pltpu.VMEM((tile, d_inner), jnp.float32),                # xa
        pltpu.VMEM((tile, d_state), jnp.float32),                # B
        pltpu.VMEM((tile, d_state), jnp.float32),                # C
        pltpu.VMEM((tile, d_inner), jnp.float32),                # dt
        pltpu.VMEM((tile, d_inner), jnp.float32),                # y (scan contribution)
        pltpu.VMEM((d_state, d_inner), jnp.float32),             # h (carried across T tiles)
        pltpu.VMEM((d_conv - 1, d_inner), jnp.float32),          # conv halo (carried)
    ]

    # explicit VMEM budget: scratch + double-buffered (tile,C) in/out + weights, 2x headroom
    scratch_bytes = (tile * 2 * d_inner + (tile + d_conv - 1) * d_inner
                     + 3 * tile * d_inner + 2 * tile * d_state
                     + d_state * d_inner + (d_conv - 1) * d_inner) * 4
    io_bytes = 2 * 2 * tile * C * 4
    w_bytes = 2 * sum(int(np.prod(w.shape)) * np.dtype(w.dtype).itemsize for w in weights)
    vmem_limit = int(min(max(2 * (scratch_bytes + io_bytes + w_bytes), 32 * 2**20),
                         56 * 2**20))

    def build(single_buffer_weights):
        w_kwargs = ({"pipeline_mode": pl.Buffered(buffer_count=1)}
                    if single_buffer_weights else {})
        in_specs = [pl.BlockSpec((None, tile, C), lambda b, t: (b, t, 0))]
        for w in weights:
            in_specs.append(pl.BlockSpec(w.shape, lambda b, t: (0, 0), **w_kwargs))
        grid_spec = pltpu.PrefetchScalarGridSpec(
            num_scalar_prefetch=0,
            grid=(B, nt),
            in_specs=in_specs,
            out_specs=pl.BlockSpec((None, tile, C), lambda b, t: (b, t, 0)),
            scratch_shapes=scratch_shapes,
        )
        return pl.pallas_call(
            functools.partial(_mamba_kernel, chunk=chunk),
            out_shape=jax.ShapeDtypeStruct((B, T, C), x.dtype),
            grid_spec=grid_spec,
            compiler_params=pltpu.CompilerParams(
                dimension_semantics=("parallel", "arbitrary"),
                vmem_limit_bytes=vmem_limit),
        )

    try:
        # constant weights: single-buffered (they are revisited, never re-DMA'd)
        return build(True)(x, *weights)
    except Exception:
        # fallback if this jax version rejects pl.Buffered(buffer_count=1)
        return build(False)(x, *weights)


# ----------------------------------------------------------------------------
# Parameters (deterministic synthetic init; shapes follow mamba_ssm's Mamba with
# dt_init='constant', d_state=16, d_conv=4, expand=2, dt_rank=ceil(d_model/16)).
# Projection weights are pre-fused and stored bf16; A is stored as -exp(A_log).T.
# ----------------------------------------------------------------------------
def init_mamba_params(key, d_model):
    d_inner = EXPAND * d_model
    dt_rank = math.ceil(d_model / 16)
    ks = jax.random.split(key, 5)

    def lin(k, fan_in, shape):
        return jax.random.normal(k, shape, jnp.float32) / np.sqrt(fan_in)

    p = {}
    w_in_x = lin(ks[0], d_model, (d_model, d_inner))
    w_in_z = lin(ks[1], d_model, (d_model, d_inner))
    p["w_in"] = jnp.concatenate([w_in_x, w_in_z], axis=1).astype(jnp.bfloat16)   # (C, 2*d_inner)
    p["w_conv"] = lin(ks[2], D_CONV, (D_CONV, d_inner)).astype(jnp.float32)      # conv taps (f32)
    p["b_conv"] = jnp.zeros((1, d_inner), jnp.float32)
    p["w_xp"] = lin(ks[3], d_inner,
                    (d_inner, dt_rank + 2 * D_STATE)).astype(jnp.bfloat16)       # [dt|B|C]
    p["w_dt"] = jnp.full((dt_rank, d_inner), dt_rank ** -0.5, jnp.bfloat16)      # dt_init='constant'
    dt = jnp.exp(jnp.linspace(math.log(1e-3), math.log(1e-1), d_inner)).astype(jnp.float32)
    p["b_dt"] = (dt + jnp.log(-jnp.expm1(-dt))).reshape(1, d_inner).astype(jnp.float32)
    a_log = jnp.log(jnp.arange(1, D_STATE + 1, dtype=jnp.float32))
    p["A_neg"] = -jnp.exp(jnp.tile(a_log[:, None], (1, d_inner)))                # -exp(A_log), T
    p["D"] = jnp.ones((1, d_inner), jnp.float32)
    p["w_out"] = lin(ks[4], d_inner, (d_inner, d_model)).astype(jnp.bfloat16)
    return p


# ----------------------------------------------------------------------------
# SequentialSSM forward (glue: permutes + residual stay in plain JAX)
# ----------------------------------------------------------------------------
def sequential_ssm_forward(x, params, tile_t=None):
    out = x
    cur = x
    for pa, pb in params:
        for lp in pa:                      # MambaLayers over axis D (feature = seq_len)
            cur = mamba_block(cur, lp, tile_t=tile_t)
        cur = jnp.transpose(cur, (0, 2, 1))
        for lp in pb:                      # MambaLayers over axis L (feature = d_model)
            cur = mamba_block(cur, lp, tile_t=tile_t)
        cur = jnp.transpose(cur, (0, 2, 1))
    return out + cur


# ----------------------------------------------------------------------------
# Pure-JAX reference (for verification; mirrors the kernel's bf16-in/f32-acc matmuls)
# ----------------------------------------------------------------------------
def _mm(a, b):
    return jnp.einsum("...k,kn->...n", a.astype(jnp.bfloat16), b.astype(jnp.bfloat16),
                      preferred_element_type=jnp.float32)


def _mamba_ref(x, p):
    Bb, T, C = x.shape
    d_inner = p["w_conv"].shape[1]
    dt_rank = p["w_dt"].shape[0]
    d_state = p["A_neg"].shape[0]

    xz = _mm(x, p["w_in"])
    xc, z = xz[..., :d_inner], xz[..., d_inner:]
    pad = jnp.pad(xc, ((0, 0), (D_CONV - 1, 0), (0, 0)))
    conv = sum(pad[:, k:k + T, :] * p["w_conv"][k] for k in range(D_CONV)) + p["b_conv"]
    xa = jax.nn.silu(conv)
    xp = _mm(xa, p["w_xp"])
    dt_low = xp[..., :dt_rank]
    Bm = xp[..., dt_rank:dt_rank + d_state]
    Cm = xp[..., dt_rank + d_state:]
    dt = jax.nn.softplus(_mm(dt_low, p["w_dt"]) + p["b_dt"])
    A = p["A_neg"]                              # (d_state, d_inner)

    def step(h, inp):
        dt_t, x_t, B_t, C_t = inp
        dA = jnp.exp(dt_t[None, :] * A)
        h = dA * h + B_t[:, None] * (dt_t * x_t)[None, :]
        y_t = jnp.sum(C_t[:, None] * h, axis=0) + p["D"][0] * x_t
        return h, y_t

    def per_batch(dt_b, xa_b, B_b, C_b):
        h0 = jnp.zeros((d_state, d_inner), jnp.float32)
        _, ys = jax.lax.scan(step, h0, (dt_b, xa_b, B_b, C_b))
        return ys

    y = jax.vmap(per_batch)(dt, xa, Bm, Cm)
    y = y * jax.nn.silu(z)
    return _mm(y, p["w_out"])


def sequential_ssm_ref(x, params):
    out = x
    cur = x
    for pa, pb in params:
        for lp in pa:
            cur = _mamba_ref(cur, lp)
        cur = jnp.transpose(cur, (0, 2, 1))
        for lp in pb:
            cur = _mamba_ref(cur, lp)
        cur = jnp.transpose(cur, (0, 2, 1))
    return out + cur


# ----------------------------------------------------------------------------
if __name__ == "__main__":
    B, d_model, seq_len = 2, 32, 16
    n_layers, num_ssm = 1, 1

    key = jax.random.PRNGKey(0)
    kx, kp = jax.random.split(key)
    x = jax.random.normal(kx, (B, d_model, seq_len), jnp.float32)

    params = []
    for i in range(num_ssm):
        kp, ka, kb = jax.random.split(kp, 3)
        pa = [init_mamba_params(jax.random.fold_in(ka, j), seq_len) for j in range(n_layers)]
        pb = [init_mamba_params(jax.random.fold_in(kb, j), d_model) for j in range(n_layers)]
        params.append((pa, pb))

    # tile_t=8 exercises the multi-tile path (carried scan state + conv halo across T tiles).
    out = jax.block_until_ready(sequential_ssm_forward(x, params, tile_t=8))
    ref = jax.block_until_ready(sequential_ssm_ref(x, params))

    assert out.shape == x.shape
    if not np.allclose(np.asarray(out), np.asarray(ref), rtol=2e-2, atol=2e-2):
        raise AssertionError("Pallas output does not match JAX reference")
    print("KERNEL_OK")
</pallas_src>

<mosaic_0001>
module attributes {stable_mosaic.version = 11 : i64} {
  func.func @_mamba_kernel(%arg0: i32, %arg1: i32, %arg2: memref<1x8x16xf32, #tpu.memory_space<vmem>>, %arg3: memref<16x64xbf16, #tpu.memory_space<vmem>>, %arg4: memref<4x32xf32, #tpu.memory_space<vmem>>, %arg5: memref<1x32xf32, #tpu.memory_space<vmem>>, %arg6: memref<32x33xbf16, #tpu.memory_space<vmem>>, %arg7: memref<1x32xbf16, #tpu.memory_space<vmem>>, %arg8: memref<1x32xf32, #tpu.memory_space<vmem>>, %arg9: memref<16x32xf32, #tpu.memory_space<vmem>>, %arg10: memref<1x32xf32, #tpu.memory_space<vmem>>, %arg11: memref<32x16xbf16, #tpu.memory_space<vmem>>, %arg12: memref<1x8x16xf32, #tpu.memory_space<vmem>>, %arg13: memref<8x64xf32, #tpu.memory_space<vmem>>, %arg14: memref<11x32xf32, #tpu.memory_space<vmem>>, %arg15: memref<8x32xf32, #tpu.memory_space<vmem>>, %arg16: memref<8x16xf32, #tpu.memory_space<vmem>>, %arg17: memref<8x16xf32, #tpu.memory_space<vmem>>, %arg18: memref<8x32xf32, #tpu.memory_space<vmem>>, %arg19: memref<8x32xf32, #tpu.memory_space<vmem>>, %arg20: memref<16x32xf32, #tpu.memory_space<vmem>>, %arg21: memref<3x32xf32, #tpu.memory_space<vmem>>) attributes {dimension_semantics = [#tpu.dimension_semantics<parallel>, #tpu.dimension_semantics<arbitrary>], iteration_bounds = array<i64: 2, 4>, scalar_prefetch = 0 : i64, scratch_operands = 9 : i64, tpu.core_type = #tpu.core_type<tc>, window_params = [{transform_indices = @transform_0, window_bounds = array<i64: 1, 8, 16>}, {pipeline_mode = #tpu.pipeline_mode<synchronous>, transform_indices = @transform_1, window_bounds = array<i64: 16, 64>}, {pipeline_mode = #tpu.pipeline_mode<synchronous>, transform_indices = @transform_2, window_bounds = array<i64: 4, 32>}, {pipeline_mode = #tpu.pipeline_mode<synchronous>, transform_indices = @transform_3, window_bounds = array<i64: 1, 32>}, {pipeline_mode = #tpu.pipeline_mode<synchronous>, transform_indices = @transform_4, window_bounds = array<i64: 32, 33>}, {pipeline_mode = #tpu.pipeline_mode<synchronous>, transform_indices = @transform_5, window_bounds = array<i64: 1, 32>}, {pipeline_mode = #tpu.pipeline_mode<synchronous>, transform_indices = @transform_6, window_bounds = array<i64: 1, 32>}, {pipeline_mode = #tpu.pipeline_mode<synchronous>, transform_indices = @transform_7, window_bounds = array<i64: 16, 32>}, {pipeline_mode = #tpu.pipeline_mode<synchronous>, transform_indices = @transform_8, window_bounds = array<i64: 1, 32>}, {pipeline_mode = #tpu.pipeline_mode<synchronous>, transform_indices = @transform_9, window_bounds = array<i64: 32, 16>}, {transform_indices = @transform_10, window_bounds = array<i64: 1, 8, 16>}]} {
    %c0_i32 = arith.constant 0 : i32
    %0 = arith.cmpi eq, %arg1, %c0_i32 : i32
    %1 = arith.extui %0 : i1 to i32
    %c0_i32_0 = arith.constant 0 : i32
    %2 = arith.cmpi ne, %1, %c0_i32_0 : i32
    scf.if %2 {
      %cst_104 = arith.constant 0.000000e+00 : f32
      %323 = vector.broadcast %cst_104 : f32 to vector<16x32xf32>
      %c0_105 = arith.constant 0 : index
      %c0_106 = arith.constant 0 : index
      %324 = vector.load %arg20[%c0_105, %c0_106] : memref<16x32xf32, #tpu.memory_space<vmem>>, vector<16x32xf32>
      tpu.vector_store %arg20[%c0_105, %c0_106], %323 {strides = array<i32>} : memref<16x32xf32, #tpu.memory_space<vmem>>, vector<16x32xf32>,
      %cst_107 = arith.constant 0.000000e+00 : f32
      %325 = vector.broadcast %cst_107 : f32 to vector<3x32xf32>
      %c0_108 = arith.constant 0 : index
      %c0_109 = arith.constant 0 : index
      %326 = vector.load %arg21[%c0_108, %c0_109] : memref<3x32xf32, #tpu.memory_space<vmem>>, vector<3x32xf32>
      tpu.vector_store %arg21[%c0_108, %c0_109], %325 {strides = array<i32>} : memref<3x32xf32, #tpu.memory_space<vmem>>, vector<3x32xf32>,
    } else {
    }
    %c0 = arith.constant 0 : index
    %c0_1 = arith.constant 0 : index
    %c0_2 = arith.constant 0 : index
    %3 = vector.load %arg2[%c0, %c0_1, %c0_2] : memref<1x8x16xf32, #tpu.memory_space<vmem>>, vector<1x8x16xf32>
    %4 = vector.shape_cast %3 : vector<1x8x16xf32> to vector<8x16xf32>
    %5 = arith.truncf %4 : vector<8x16xf32> to vector<8x16xbf16>
    %c0_3 = arith.constant 0 : index
    %c0_4 = arith.constant 0 : index
    %6 = vector.load %arg3[%c0_3, %c0_4] : memref<16x64xbf16, #tpu.memory_space<vmem>>, vector<16x64xbf16>
    %cst = arith.constant dense<0.000000e+00> : vector<8x64xf32>
    %7 = tpu.matmul %5, %6, %cst {dimension_numbers = #tpu.dot_dimension_numbers<[1], [0], [0], [1], [0, 0, 1, 1], [], []>} : vector<8x16xbf16>, vector<16x64xbf16>, vector<8x64xf32> -> vector<8x64xf32>
    %c0_5 = arith.constant 0 : index
    %c0_6 = arith.constant 0 : index
    %8 = vector.load %arg13[%c0_5, %c0_6] : memref<8x64xf32, #tpu.memory_space<vmem>>, vector<8x64xf32>
    tpu.vector_store %arg13[%c0_5, %c0_6], %7 {strides = array<i32>} : memref<8x64xf32, #tpu.memory_space<vmem>>, vector<8x64xf32>,
    %c0_7 = arith.constant 0 : index
    %c0_8 = arith.constant 0 : index
    %9 = vector.load %arg13[%c0_7, %c0_8] : memref<8x64xf32, #tpu.memory_space<vmem>>, vector<8x32xf32>
    %c0_9 = arith.constant 0 : index
    %c0_10 = arith.constant 0 : index
    %10 = vector.load %arg21[%c0_9, %c0_10] : memref<3x32xf32, #tpu.memory_space<vmem>>, vector<3x32xf32>
    %c0_11 = arith.constant 0 : index
    %c0_12 = arith.constant 0 : index
    %11 = vector.load %arg14[%c0_11, %c0_12] : memref<11x32xf32, #tpu.memory_space<vmem>>, vector<3x32xf32>
    tpu.vector_store %arg14[%c0_11, %c0_12], %10 {strides = array<i32>} : memref<11x32xf32, #tpu.memory_space<vmem>>, vector<3x32xf32>,
    %c3 = arith.constant 3 : index
    %c0_13 = arith.constant 0 : index
    %12 = vector.load %arg14[%c3, %c0_13] : memref<11x32xf32, #tpu.memory_space<vmem>>, vector<8x32xf32>
    tpu.vector_store %arg14[%c3, %c0_13], %9 {strides = array<i32>} : memref<11x32xf32, #tpu.memory_space<vmem>>, vector<8x32xf32>,
    %13 = vector.extract_strided_slice %9 {offsets = [5, 0], sizes = [3, 32], strides = [1, 1]} : vector<8x32xf32> to vector<3x32xf32>
    %c0_14 = arith.constant 0 : index
    %c0_15 = arith.constant 0 : index
    %14 = vector.load %arg21[%c0_14, %c0_15] : memref<3x32xf32, #tpu.memory_space<vmem>>, vector<3x32xf32>
    tpu.vector_store %arg21[%c0_14, %c0_15], %13 {strides = array<i32>} : memref<3x32xf32, #tpu.memory_space<vmem>>, vector<3x32xf32>,
    %c0_16 = arith.constant 0 : index
    %c0_17 = arith.constant 0 : index
    %15 = vector.load %arg4[%c0_16, %c0_17] : memref<4x32xf32, #tpu.memory_space<vmem>>, vector<4x32xf32>
    %c0_18 = arith.constant 0 : index
    %c0_19 = arith.constant 0 : index
    %16 = vector.load %arg14[%c0_18, %c0_19] : memref<11x32xf32, #tpu.memory_space<vmem>>, vector<8x32xf32>
    %17 = vector.extract_strided_slice %15 {offsets = [0, 0], sizes = [1, 32], strides = [1, 1]} : vector<4x32xf32> to vector<1x32xf32>
    %18 = vector.broadcast %17 : vector<1x32xf32> to vector<8x32xf32>
    %19 = arith.mulf %16, %18 : vector<8x32xf32>
    %c1 = arith.constant 1 : index
    %c0_20 = arith.constant 0 : index
    %20 = vector.load %arg14[%c1, %c0_20] : memref<11x32xf32, #tpu.memory_space<vmem>>, vector<8x32xf32>
    %21 = vector.extract_strided_slice %15 {offsets = [1, 0], sizes = [1, 32], strides = [1, 1]} : vector<4x32xf32> to vector<1x32xf32>
    %22 = vector.broadcast %21 : vector<1x32xf32> to vector<8x32xf32>
    %23 = arith.mulf %20, %22 : vector<8x32xf32>
    %24 = arith.addf %19, %23 : vector<8x32xf32>
    %c2 = arith.constant 2 : index
    %c0_21 = arith.constant 0 : index
    %25 = vector.load %arg14[%c2, %c0_21] : memref<11x32xf32, #tpu.memory_space<vmem>>, vector<8x32xf32>
    %26 = vector.extract_strided_slice %15 {offsets = [2, 0], sizes = [1, 32], strides = [1, 1]} : vector<4x32xf32> to vector<1x32xf32>
    %27 = vector.broadcast %26 : vector<1x32xf32> to vector<8x32xf32>
    %28 = arith.mulf %25, %27 : vector<8x32xf32>
    %29 = arith.addf %24, %28 : vector<8x32xf32>
    %c3_22 = arith.constant 3 : index
    %c0_23 = arith.constant 0 : index
    %30 = vector.load %arg14[%c3_22, %c0_23] : memref<11x32xf32, #tpu.memory_space<vmem>>, vector<8x32xf32>
    %31 = vector.extract_strided_slice %15 {offsets = [3, 0], sizes = [1, 32], strides = [1, 1]} : vector<4x32xf32> to vector<1x32xf32>
    %32 = vector.broadcast %31 : vector<1x32xf32> to vector<8x32xf32>
    %33 = arith.mulf %30, %32 : vector<8x32xf32>
    %34 = arith.addf %29, %33 : vector<8x32xf32>
    %c0_24 = arith.constant 0 : index
    %c0_25 = arith.constant 0 : index
    %35 = vector.load %arg5[%c0_24, %c0_25] : memref<1x32xf32, #tpu.memory_space<vmem>>, vector<1x32xf32>
    %36 = vector.broadcast %35 : vector<1x32xf32> to vector<8x32xf32>
    %37 = arith.addf %34, %36 : vector<8x32xf32>
    %38 = arith.negf %37 : vector<8x32xf32>
    %39 = math.exp %38 : vector<8x32xf32>
    %cst_26 = arith.constant 1.000000e+00 : f32
    %40 = vector.broadcast %cst_26 : f32 to vector<8x32xf32>
    %41 = arith.addf %40, %39 : vector<8x32xf32>
    %42 = arith.divf %40, %41 : vector<8x32xf32>
    %43 = arith.mulf %37, %42 : vector<8x32xf32>
    %c0_27 = arith.constant 0 : index
    %c0_28 = arith.constant 0 : index
    %44 = vector.load %arg15[%c0_27, %c0_28] : memref<8x32xf32, #tpu.memory_space<vmem>>, vector<8x32xf32>
    tpu.vector_store %arg15[%c0_27, %c0_28], %43 {strides = array<i32>} : memref<8x32xf32, #tpu.memory_space<vmem>>, vector<8x32xf32>,
    %45 = arith.truncf %43 : vector<8x32xf32> to vector<8x32xbf16>
    %c0_29 = arith.constant 0 : index
    %c0_30 = arith.constant 0 : index
    %46 = vector.load %arg6[%c0_29, %c0_30] : memref<32x33xbf16, #tpu.memory_space<vmem>>, vector<32x33xbf16>
    %cst_31 = arith.constant dense<0.000000e+00> : vector<8x33xf32>
    %47 = tpu.matmul %45, %46, %cst_31 {dimension_numbers = #tpu.dot_dimension_numbers<[1], [0], [0], [1], [0, 0, 1, 1], [], []>} : vector<8x32xbf16>, vector<32x33xbf16>, vector<8x33xf32> -> vector<8x33xf32>
    %48 = vector.extract_strided_slice %47 {offsets = [0, 1], sizes = [8, 16], strides = [1, 1]} : vector<8x33xf32> to vector<8x16xf32>
    %c0_32 = arith.constant 0 : index
    %c0_33 = arith.constant 0 : index
    %49 = vector.load %arg16[%c0_32, %c0_33] : memref<8x16xf32, #tpu.memory_space<vmem>>, vector<8x16xf32>
    tpu.vector_store %arg16[%c0_32, %c0_33], %48 {strides = array<i32>} : memref<8x16xf32, #tpu.memory_space<vmem>>, vector<8x16xf32>,
    %50 = vector.extract_strided_slice %47 {offsets = [0, 17], sizes = [8, 16], strides = [1, 1]} : vector<8x33xf32> to vector<8x16xf32>
    %c0_34 = arith.constant 0 : index
    %c0_35 = arith.constant 0 : index
    %51 = vector.load %arg17[%c0_34, %c0_35] : memref<8x16xf32, #tpu.memory_space<vmem>>, vector<8x16xf32>
    tpu.vector_store %arg17[%c0_34, %c0_35], %50 {strides = array<i32>} : memref<8x16xf32, #tpu.memory_space<vmem>>, vector<8x16xf32>,
    %52 = vector.extract_strided_slice %47 {offsets = [0, 0], sizes = [8, 1], strides = [1, 1]} : vector<8x33xf32> to vector<8x1xf32>
    %53 = arith.truncf %52 : vector<8x1xf32> to vector<8x1xbf16>
    %c0_36 = arith.constant 0 : index
    %c0_37 = arith.constant 0 : index
    %54 = vector.load %arg7[%c0_36, %c0_37] : memref<1x32xbf16, #tpu.memory_space<vmem>>, vector<1x32xbf16>
    %cst_38 = arith.constant dense<0.000000e+00> : vector<8x32xf32>
    %55 = tpu.matmul %53, %54, %cst_38 {dimension_numbers = #tpu.dot_dimension_numbers<[1], [0], [0], [1], [0, 0, 1, 1], [], []>} : vector<8x1xbf16>, vector<1x32xbf16>, vector<8x32xf32> -> vector<8x32xf32>
    %c0_39 = arith.constant 0 : index
    %c0_40 = arith.constant 0 : index
    %56 = vector.load %arg8[%c0_39, %c0_40] : memref<1x32xf32, #tpu.memory_space<vmem>>, vector<1x32xf32>
    %57 = vector.broadcast %56 : vector<1x32xf32> to vector<8x32xf32>
    %58 = arith.addf %55, %57 : vector<8x32xf32>
    %cst_41 = arith.constant 0.000000e+00 : f32
    %59 = vector.broadcast %cst_41 : f32 to vector<8x32xf32>
    %60 = arith.maximumf %58, %59 : vector<8x32xf32>
    %61 = math.absf %58 : vector<8x32xf32>
    %cst_42 = arith.constant 0.000000e+00 : f32
    %62 = vector.broadcast %cst_42 : f32 to vector<8x32xf32>
    %63 = arith.subf %62, %61 : vector<8x32xf32>
    %64 = math.exp %63 : vector<8x32xf32>
    %65 = math.log1p %64 : vector<8x32xf32>
    %66 = arith.addf %60, %65 : vector<8x32xf32>
    %c0_43 = arith.constant 0 : index
    %c0_44 = arith.constant 0 : index
    %67 = vector.load %arg18[%c0_43, %c0_44] : memref<8x32xf32, #tpu.memory_space<vmem>>, vector<8x32xf32>
    tpu.vector_store %arg18[%c0_43, %c0_44], %66 {strides = array<i32>} : memref<8x32xf32, #tpu.memory_space<vmem>>, vector<8x32xf32>,
    %c0_45 = arith.constant 0 : index
    %c0_46 = arith.constant 0 : index
    %68 = vector.load %arg9[%c0_45, %c0_46] : memref<16x32xf32, #tpu.memory_space<vmem>>, vector<16x32xf32>
    %69 = tpu.iota {dimensions = array<i32: 0>} : vector<16x16xi32>
    %70 = tpu.iota {dimensions = array<i32: 1>} : vector<16x16xi32>
    %71 = arith.cmpi eq, %69, %70 : vector<16x16xi32>
    %72 = arith.extui %71 : vector<16x16xi1> to vector<16x16xi32>
    %73 = arith.sitofp %72 : vector<16x16xi32> to vector<16x16xf32>
    %c0_47 = arith.constant 0 : index
    %c0_48 = arith.constant 0 : index
    %74 = vector.load %arg20[%c0_47, %c0_48] : memref<16x32xf32, #tpu.memory_space<vmem>>, vector<16x32xf32>
    %c0_i32_49 = arith.constant 0 : i32
    %c8_i32 = arith.constant 8 : i32
    %75 = arith.muli %c0_i32_49, %c8_i32 : i32
    %76 = tpu.assume_multiple %75, 8 : i32
    %77 = arith.index_cast %76 : i32 to index
    %c0_50 = arith.constant 0 : index
    %78 = vector.load %arg18[%77, %c0_50] : memref<8x32xf32, #tpu.memory_space<vmem>>, vector<8x32xf32>
    %79 = arith.index_cast %76 : i32 to index
    %c0_51 = arith.constant 0 : index
    %80 = vector.load %arg15[%79, %c0_51] : memref<8x32xf32, #tpu.memory_space<vmem>>, vector<8x32xf32>
    %81 = arith.index_cast %76 : i32 to index
    %c0_52 = arith.constant 0 : index
    %82 = vector.load %arg16[%81, %c0_52] : memref<8x16xf32, #tpu.memory_space<vmem>>, vector<8x16xf32>
    %83 = arith.index_cast %76 : i32 to index
    %c0_53 = arith.constant 0 : index
    %84 = vector.load %arg17[%83, %c0_53] : memref<8x16xf32, #tpu.memory_space<vmem>>, vector<8x16xf32>
    %85 = arith.mulf %78, %80 : vector<8x32xf32>
    %86 = vector.extract_strided_slice %78 {offsets = [0, 0], sizes = [1, 32], strides = [1, 1]} : vector<8x32xf32> to vector<1x32xf32>
    %87 = vector.broadcast %86 : vector<1x32xf32> to vector<16x32xf32>
    %88 = arith.mulf %87, %68 : vector<16x32xf32>
    %89 = math.exp %88 : vector<16x32xf32>
    %90 = vector.extract_strided_slice %78 {offsets = [1, 0], sizes = [1, 32], strides = [1, 1]} : vector<8x32xf32> to vector<1x32xf32>
    %91 = vector.broadcast %90 : vector<1x32xf32> to vector<16x32xf32>
    %92 = arith.mulf %91, %68 : vector<16x32xf32>
    %93 = math.exp %92 : vector<16x32xf32>
    %94 = vector.extract_strided_slice %78 {offsets = [2, 0], sizes = [1, 32], strides = [1, 1]} : vector<8x32xf32> to vector<1x32xf32>
    %95 = vector.broadcast %94 : vector<1x32xf32> to vector<16x32xf32>
    %96 = arith.mulf %95, %68 : vector<16x32xf32>
    %97 = math.exp %96 : vector<16x32xf32>
    %98 = vector.extract_strided_slice %78 {offsets = [3, 0], sizes = [1, 32], strides = [1, 1]} : vector<8x32xf32> to vector<1x32xf32>
    %99 = vector.broadcast %98 : vector<1x32xf32> to vector<16x32xf32>
    %100 = arith.mulf %99, %68 : vector<16x32xf32>
    %101 = math.exp %100 : vector<16x32xf32>
    %102 = vector.extract_strided_slice %78 {offsets = [4, 0], sizes = [1, 32], strides = [1, 1]} : vector<8x32xf32> to vector<1x32xf32>
    %103 = vector.broadcast %102 : vector<1x32xf32> to vector<16x32xf32>
    %104 = arith.mulf %103, %68 : vector<16x32xf32>
    %105 = math.exp %104 : vector<16x32xf32>
    %106 = vector.extract_strided_slice %78 {offsets = [5, 0], sizes = [1, 32], strides = [1, 1]} : vector<8x32xf32> to vector<1x32xf32>
    %107 = vector.broadcast %106 : vector<1x32xf32> to vector<16x32xf32>
    %108 = arith.mulf %107, %68 : vector<16x32xf32>
    %109 = math.exp %108 : vector<16x32xf32>
    %110 = vector.extract_strided_slice %78 {offsets = [6, 0], sizes = [1, 32], strides = [1, 1]} : vector<8x32xf32> to vector<1x32xf32>
    %111 = vector.broadcast %110 : vector<1x32xf32> to vector<16x32xf32>
    %112 = arith.mulf %111, %68 : vector<16x32xf32>
    %113 = math.exp %112 : vector<16x32xf32>
    %114 = vector.extract_strided_slice %78 {offsets = [7, 0], sizes = [1, 32], strides = [1, 1]} : vector<8x32xf32> to vector<1x32xf32>
    %115 = vector.broadcast %114 : vector<1x32xf32> to vector<16x32xf32>
    %116 = arith.mulf %115, %68 : vector<16x32xf32>
    %117 = math.exp %116 : vector<16x32xf32>
    %118 = vector.extract_strided_slice %82 {offsets = [0, 0], sizes = [1, 16], strides = [1, 1]} : vector<8x16xf32> to vector<1x16xf32>
    %119 = vector.broadcast %118 : vector<1x16xf32> to vector<16x16xf32>
    %120 = arith.mulf %73, %119 : vector<16x16xf32>
    %cst_54 = arith.constant dense<0.000000e+00> : vector<16xf32>
    %121 = vector.multi_reduction <add>, %120, %cst_54 [1] : vector<16x16xf32> to vector<16xf32>
    %122 = vector.shape_cast %121 : vector<16xf32> to vector<16x1xf32>
    %123 = vector.extract_strided_slice %82 {offsets = [1, 0], sizes = [1, 16], strides = [1, 1]} : vector<8x16xf32> to vector<1x16xf32>
    %124 = vector.broadcast %123 : vector<1x16xf32> to vector<16x16xf32>
    %125 = arith.mulf %73, %124 : vector<16x16xf32>
    %cst_55 = arith.constant dense<0.000000e+00> : vector<16xf32>
    %126 = vector.multi_reduction <add>, %125, %cst_55 [1] : vector<16x16xf32> to vector<16xf32>
    %127 = vector.shape_cast %126 : vector<16xf32> to vector<16x1xf32>
    %128 = vector.extract_strided_slice %82 {offsets = [2, 0], sizes = [1, 16], strides = [1, 1]} : vector<8x16xf32> to vector<1x16xf32>
    %129 = vector.broadcast %128 : vector<1x16xf32> to vector<16x16xf32>
    %130 = arith.mulf %73, %129 : vector<16x16xf32>
    %cst_56 = arith.constant dense<0.000000e+00> : vector<16xf32>
    %131 = vector.multi_reduction <add>, %130, %cst_56 [1] : vector<16x16xf32> to vector<16xf32>
    %132 = vector.shape_cast %131 : vector<16xf32> to vector<16x1xf32>
    %133 = vector.extract_strided_slice %82 {offsets = [3, 0], sizes = [1, 16], strides = [1, 1]} : vector<8x16xf32> to vector<1x16xf32>
    %134 = vector.broadcast %133 : vector<1x16xf32> to vector<16x16xf32>
    %135 = arith.mulf %73, %134 : vector<16x16xf32>
    %cst_57 = arith.constant dense<0.000000e+00> : vector<16xf32>
    %136 = vector.multi_reduction <add>, %135, %cst_57 [1] : vector<16x16xf32> to vector<16xf32>
    %137 = vector.shape_cast %136 : vector<16xf32> to vector<16x1xf32>
    %138 = vector.extract_strided_slice %82 {offsets = [4, 0], sizes = [1, 16], strides = [1, 1]} : vector<8x16xf32> to vector<1x16xf32>
    %139 = vector.broadcast %138 : vector<1x16xf32> to vector<16x16xf32>
    %140 = arith.mulf %73, %139 : vector<16x16xf32>
    %cst_58 = arith.constant dense<0.000000e+00> : vector<16xf32>
    %141 = vector.multi_reduction <add>, %140, %cst_58 [1] : vector<16x16xf32> to vector<16xf32>
    %142 = vector.shape_cast %141 : vector<16xf32> to vector<16x1xf32>
    %143 = vector.extract_strided_slice %82 {offsets = [5, 0], sizes = [1, 16], strides = [1, 1]} : vector<8x16xf32> to vector<1x16xf32>
    %144 = vector.broadcast %143 : vector<1x16xf32> to vector<16x16xf32>
    %145 = arith.mulf %73, %144 : vector<16x16xf32>
    %cst_59 = arith.constant dense<0.000000e+00> : vector<16xf32>
    %146 = vector.multi_reduction <add>, %145, %cst_59 [1] : vector<16x16xf32> to vector<16xf32>
    %147 = vector.shape_cast %146 : vector<16xf32> to vector<16x1xf32>
    %148 = vector.extract_strided_slice %82 {offsets = [6, 0], sizes = [1, 16], strides = [1, 1]} : vector<8x16xf32> to vector<1x16xf32>
    %149 = vector.broadcast %148 : vector<1x16xf32> to vector<16x16xf32>
    %150 = arith.mulf %73, %149 : vector<16x16xf32>
    %cst_60 = arith.constant dense<0.000000e+00> : vector<16xf32>
    %151 = vector.multi_reduction <add>, %150, %cst_60 [1] : vector<16x16xf32> to vector<16xf32>
    %152 = vector.shape_cast %151 : vector<16xf32> to vector<16x1xf32>
    %153 = vector.extract_strided_slice %82 {offsets = [7, 0], sizes = [1, 16], strides = [1, 1]} : vector<8x16xf32> to vector<1x16xf32>
    %154 = vector.broadcast %153 : vector<1x16xf32> to vector<16x16xf32>
    %155 = arith.mulf %73, %154 : vector<16x16xf32>
    %cst_61 = arith.constant dense<0.000000e+00> : vector<16xf32>
    %156 = vector.multi_reduction <add>, %155, %cst_61 [1] : vector<16x16xf32> to vector<16xf32>
    %157 = vector.shape_cast %156 : vector<16xf32> to vector<16x1xf32>
    %158 = vector.extract_strided_slice %84 {offsets = [0, 0], sizes = [1, 16], strides = [1, 1]} : vector<8x16xf32> to vector<1x16xf32>
    %159 = vector.broadcast %158 : vector<1x16xf32> to vector<16x16xf32>
    %160 = arith.mulf %73, %159 : vector<16x16xf32>
    %cst_62 = arith.constant dense<0.000000e+00> : vector<16xf32>
    %161 = vector.multi_reduction <add>, %160, %cst_62 [1] : vector<16x16xf32> to vector<16xf32>
    %162 = vector.shape_cast %161 : vector<16xf32> to vector<16x1xf32>
    %163 = vector.extract_strided_slice %84 {offsets = [1, 0], sizes = [1, 16], strides = [1, 1]} : vector<8x16xf32> to vector<1x16xf32>
    %164 = vector.broadcast %163 : vector<1x16xf32> to vector<16x16xf32>
    %165 = arith.mulf %73, %164 : vector<16x16xf32>
    %cst_63 = arith.constant dense<0.000000e+00> : vector<16xf32>
    %166 = vector.multi_reduction <add>, %165, %cst_63 [1] : vector<16x16xf32> to vector<16xf32>
    %167 = vector.shape_cast %166 : vector<16xf32> to vector<16x1xf32>
    %168 = vector.extract_strided_slice %84 {offsets = [2, 0], sizes = [1, 16], strides = [1, 1]} : vector<8x16xf32> to vector<1x16xf32>
    %169 = vector.broadcast %168 : vector<1x16xf32> to vector<16x16xf32>
    %170 = arith.mulf %73, %169 : vector<16x16xf32>
    %cst_64 = arith.constant dense<0.000000e+00> : vector<16xf32>
    %171 = vector.multi_reduction <add>, %170, %cst_64 [1] : vector<16x16xf32> to vector<16xf32>
    %172 = vector.shape_cast %171 : vector<16xf32> to vector<16x1xf32>
    %173 = vector.extract_strided_slice %84 {offsets = [3, 0], sizes = [1, 16], strides = [1, 1]} : vector<8x16xf32> to vector<1x16xf32>
    %174 = vector.broadcast %173 : vector<1x16xf32> to vector<16x16xf32>
    %175 = arith.mulf %73, %174 : vector<16x16xf32>
    %cst_65 = arith.constant dense<0.000000e+00> : vector<16xf32>
    %176 = vector.multi_reduction <add>, %175, %cst_65 [1] : vector<16x16xf32> to vector<16xf32>
    %177 = vector.shape_cast %176 : vector<16xf32> to vector<16x1xf32>
    %178 = vector.extract_strided_slice %84 {offsets = [4, 0], sizes = [1, 16], strides = [1, 1]} : vector<8x16xf32> to vector<1x16xf32>
    %179 = vector.broadcast %178 : vector<1x16xf32> to vector<16x16xf32>
    %180 = arith.mulf %73, %179 : vector<16x16xf32>
    %cst_66 = arith.constant dense<0.000000e+00> : vector<16xf32>
    %181 = vector.multi_reduction <add>, %180, %cst_66 [1] : vector<16x16xf32> to vector<16xf32>
    %182 = vector.shape_cast %181 : vector<16xf32> to vector<16x1xf32>
    %183 = vector.extract_strided_slice %84 {offsets = [5, 0], sizes = [1, 16], strides = [1, 1]} : vector<8x16xf32> to vector<1x16xf32>
    %184 = vector.broadcast %183 : vector<1x16xf32> to vector<16x16xf32>
    %185 = arith.mulf %73, %184 : vector<16x16xf32>
    %cst_67 = arith.constant dense<0.000000e+00> : vector<16xf32>
    %186 = vector.multi_reduction <add>, %185, %cst_67 [1] : vector<16x16xf32> to vector<16xf32>
    %187 = vector.shape_cast %186 : vector<16xf32> to vector<16x1xf32>
    %188 = vector.extract_strided_slice %84 {offsets = [6, 0], sizes = [1, 16], strides = [1, 1]} : vector<8x16xf32> to vector<1x16xf32>
    %189 = vector.broadcast %188 : vector<1x16xf32> to vector<16x16xf32>
    %190 = arith.mulf %73, %189 : vector<16x16xf32>
    %cst_68 = arith.constant dense<0.000000e+00> : vector<16xf32>
    %191 = vector.multi_reduction <add>, %190, %cst_68 [1] : vector<16x16xf32> to vector<16xf32>
    %192 = vector.shape_cast %191 : vector<16xf32> to vector<16x1xf32>
    %193 = vector.extract_strided_slice %84 {offsets = [7, 0], sizes = [1, 16], strides = [1, 1]} : vector<8x16xf32> to vector<1x16xf32>
    %194 = vector.broadcast %193 : vector<1x16xf32> to vector<16x16xf32>
    %195 = arith.mulf %73, %194 : vector<16x16xf32>
    %cst_69 = arith.constant dense<0.000000e+00> : vector<16xf32>
    %196 = vector.multi_reduction <add>, %195, %cst_69 [1] : vector<16x16xf32> to vector<16xf32>
    %197 = vector.shape_cast %196 : vector<16xf32> to vector<16x1xf32>
    %198 = arith.mulf %89, %74 : vector<16x32xf32>
    %199 = vector.extract_strided_slice %85 {offsets = [0, 0], sizes = [1, 32], strides = [1, 1]} : vector<8x32xf32> to vector<1x32xf32>
    %200 = vector.broadcast %122 : vector<16x1xf32> to vector<16x32xf32>
    %201 = vector.broadcast %199 : vector<1x32xf32> to vector<16x32xf32>
    %202 = arith.mulf %200, %201 : vector<16x32xf32>
    %203 = arith.addf %198, %202 : vector<16x32xf32>
    %204 = vector.broadcast %162 : vector<16x1xf32> to vector<16x32xf32>
    %205 = arith.mulf %204, %203 : vector<16x32xf32>
    %cst_70 = arith.constant dense<0.000000e+00> : vector<32xf32>
    %206 = vector.multi_reduction <add>, %205, %cst_70 [0] : vector<16x32xf32> to vector<32xf32>
    %207 = vector.shape_cast %206 : vector<32xf32> to vector<1x32xf32>
    %c0_i32_71 = arith.constant 0 : i32
    %208 = arith.addi %76, %c0_i32_71 : i32
    %209 = arith.index_cast %208 : i32 to index
    %c0_72 = arith.constant 0 : index
    %210 = vector.load %arg19[%209, %c0_72] : memref<8x32xf32, #tpu.memory_space<vmem>>, vector<1x32xf32>
    tpu.vector_store %arg19[%209, %c0_72], %207 {strides = array<i32>} : memref<8x32xf32, #tpu.memory_space<vmem>>, vector<1x32xf32>,
    %211 = arith.mulf %93, %203 : vector<16x32xf32>
    %212 = vector.extract_strided_slice %85 {offsets = [1, 0], sizes = [1, 32], strides = [1, 1]} : vector<8x32xf32> to vector<1x32xf32>
    %213 = vector.broadcast %127 : vector<16x1xf32> to vector<16x32xf32>
    %214 = vector.broadcast %212 : vector<1x32xf32> to vector<16x32xf32>
    %215 = arith.mulf %213, %214 : vector<16x32xf32>
    %216 = arith.addf %211, %215 : vector<16x32xf32>
    %217 = vector.broadcast %167 : vector<16x1xf32> to vector<16x32xf32>
    %218 = arith.mulf %217, %216 : vector<16x32xf32>
    %cst_73 = arith.constant dense<0.000000e+00> : vector<32xf32>
    %219 = vector.multi_reduction <add>, %218, %cst_73 [0] : vector<16x32xf32> to vector<32xf32>
    %220 = vector.shape_cast %219 : vector<32xf32> to vector<1x32xf32>
    %c1_i32 = arith.constant 1 : i32
    %221 = arith.addi %76, %c1_i32 : i32
    %222 = arith.index_cast %221 : i32 to index
    %c0_74 = arith.constant 0 : index
    %223 = vector.load %arg19[%222, %c0_74] : memref<8x32xf32, #tpu.memory_space<vmem>>, vector<1x32xf32>
    tpu.vector_store %arg19[%222, %c0_74], %220 {strides = array<i32>} : memref<8x32xf32, #tpu.memory_space<vmem>>, vector<1x32xf32>,
    %224 = arith.mulf %97, %216 : vector<16x32xf32>
    %225 = vector.extract_strided_slice %85 {offsets = [2, 0], sizes = [1, 32], strides = [1, 1]} : vector<8x32xf32> to vector<1x32xf32>
    %226 = vector.broadcast %132 : vector<16x1xf32> to vector<16x32xf32>
    %227 = vector.broadcast %225 : vector<1x32xf32> to vector<16x32xf32>
    %228 = arith.mulf %226, %227 : vector<16x32xf32>
    %229 = arith.addf %224, %228 : vector<16x32xf32>
    %230 = vector.broadcast %172 : vector<16x1xf32> to vector<16x32xf32>
    %231 = arith.mulf %230, %229 : vector<16x32xf32>
    %cst_75 = arith.constant dense<0.000000e+00> : vector<32xf32>
    %232 = vector.multi_reduction <add>, %231, %cst_75 [0] : vector<16x32xf32> to vector<32xf32>
    %233 = vector.shape_cast %232 : vector<32xf32> to vector<1x32xf32>
    %c2_i32 = arith.constant 2 : i32
    %234 = arith.addi %76, %c2_i32 : i32
    %235 = arith.index_cast %234 : i32 to index
    %c0_76 = arith.constant 0 : index
    %236 = vector.load %arg19[%235, %c0_76] : memref<8x32xf32, #tpu.memory_space<vmem>>, vector<1x32xf32>
    tpu.vector_store %arg19[%235, %c0_76], %233 {strides = array<i32>} : memref<8x32xf32, #tpu.memory_space<vmem>>, vector<1x32xf32>,
    %237 = arith.mulf %101, %229 : vector<16x32xf32>
    %238 = vector.extract_strided_slice %85 {offsets = [3, 0], sizes = [1, 32], strides = [1, 1]} : vector<8x32xf32> to vector<1x32xf32>
    %239 = vector.broadcast %137 : vector<16x1xf32> to vector<16x32xf32>
    %240 = vector.broadcast %238 : vector<1x32xf32> to vector<16x32xf32>
    %241 = arith.mulf %239, %240 : vector<16x32xf32>
    %242 = arith.addf %237, %241 : vector<16x32xf32>
    %243 = vector.broadcast %177 : vector<16x1xf32> to vector<16x32xf32>
    %244 = arith.mulf %243, %242 : vector<16x32xf32>
    %cst_77 = arith.constant dense<0.000000e+00> : vector<32xf32>
    %245 = vector.multi_reduction <add>, %244, %cst_77 [0] : vector<16x32xf32> to vector<32xf32>
    %246 = vector.shape_cast %245 : vector<32xf32> to vector<1x32xf32>
    %c3_i32 = arith.constant 3 : i32
    %247 = arith.addi %76, %c3_i32 : i32
    %248 = arith.index_cast %247 : i32 to index
    %c0_78 = arith.constant 0 : index
    %249 = vector.load %arg19[%248, %c0_78] : memref<8x32xf32, #tpu.memory_space<vmem>>, vector<1x32xf32>
    tpu.vector_store %arg19[%248, %c0_78], %246 {strides = array<i32>} : memref<8x32xf32, #tpu.memory_space<vmem>>, vector<1x32xf32>,
    %250 = arith.mulf %105, %242 : vector<16x32xf32>
    %251 = vector.extract_strided_slice %85 {offsets = [4, 0], sizes = [1, 32], strides = [1, 1]} : vector<8x32xf32> to vector<1x32xf32>
    %252 = vector.broadcast %142 : vector<16x1xf32> to vector<16x32xf32>
    %253 = vector.broadcast %251 : vector<1x32xf32> to vector<16x32xf32>
    %254 = arith.mulf %252, %253 : vector<16x32xf32>
    %255 = arith.addf %250, %254 : vector<16x32xf32>
    %256 = vector.broadcast %182 : vector<16x1xf32> to vector<16x32xf32>
    %257 = arith.mulf %256, %255 : vector<16x32xf32>
    %cst_79 = arith.constant dense<0.000000e+00> : vector<32xf32>
    %258 = vector.multi_reduction <add>, %257, %cst_79 [0] : vector<16x32xf32> to vector<32xf32>
    %259 = vector.shape_cast %258 : vector<32xf32> to vector<1x32xf32>
    %c4_i32 = arith.constant 4 : i32
    %260 = arith.addi %76, %c4_i32 : i32
    %261 = arith.index_cast %260 : i32 to index
    %c0_80 = arith.constant 0 : index
    %262 = vector.load %arg19[%261, %c0_80] : memref<8x32xf32, #tpu.memory_space<vmem>>, vector<1x32xf32>
    tpu.vector_store %arg19[%261, %c0_80], %259 {strides = array<i32>} : memref<8x32xf32, #tpu.memory_space<vmem>>, vector<1x32xf32>,
    %263 = arith.mulf %109, %255 : vector<16x32xf32>
    %264 = vector.extract_strided_slice %85 {offsets = [5, 0], sizes = [1, 32], strides = [1, 1]} : vector<8x32xf32> to vector<1x32xf32>
    %265 = vector.broadcast %147 : vector<16x1xf32> to vector<16x32xf32>
    %266 = vector.broadcast %264 : vector<1x32xf32> to vector<16x32xf32>
    %267 = arith.mulf %265, %266 : vector<16x32xf32>
    %268 = arith.addf %263, %267 : vector<16x32xf32>
    %269 = vector.broadcast %187 : vector<16x1xf32> to vector<16x32xf32>
    %270 = arith.mulf %269, %268 : vector<16x32xf32>
    %cst_81 = arith.constant dense<0.000000e+00> : vector<32xf32>
    %271 = vector.multi_reduction <add>, %270, %cst_81 [0] : vector<16x32xf32> to vector<32xf32>
    %272 = vector.shape_cast %271 : vector<32xf32> to vector<1x32xf32>
    %c5_i32 = arith.constant 5 : i32
    %273 = arith.addi %76, %c5_i32 : i32
    %274 = arith.index_cast %273 : i32 to index
    %c0_82 = arith.constant 0 : index
    %275 = vector.load %arg19[%274, %c0_82] : memref<8x32xf32, #tpu.memory_space<vmem>>, vector<1x32xf32>
    tpu.vector_store %arg19[%274, %c0_82], %272 {strides = array<i32>} : memref<8x32xf32, #tpu.memory_space<vmem>>, vector<1x32xf32>,
    %276 = arith.mulf %113, %268 : vector<16x32xf32>
    %277 = vector.extract_strided_slice %85 {offsets = [6, 0], sizes = [1, 32], strides = [1, 1]} : vector<8x32xf32> to vector<1x32xf32>
    %278 = vector.broadcast %152 : vector<16x1xf32> to vector<16x32xf32>
    %279 = vector.broadcast %277 : vector<1x32xf32> to vector<16x32xf32>
    %280 = arith.mulf %278, %279 : vector<16x32xf32>
    %281 = arith.addf %276, %280 : vector<16x32xf32>
    %282 = vector.broadcast %192 : vector<16x1xf32> to vector<16x32xf32>
    %283 = arith.mulf %282, %281 : vector<16x32xf32>
    %cst_83 = arith.constant dense<0.000000e+00> : vector<32xf32>
    %284 = vector.multi_reduction <add>, %283, %cst_83 [0] : vector<16x32xf32> to vector<32xf32>
    %285 = vector.shape_cast %284 : vector<32xf32> to vector<1x32xf32>
    %c6_i32 = arith.constant 6 : i32
    %286 = arith.addi %76, %c6_i32 : i32
    %287 = arith.index_cast %286 : i32 to index
    %c0_84 = arith.constant 0 : index
    %288 = vector.load %arg19[%287, %c0_84] : memref<8x32xf32, #tpu.memory_space<vmem>>, vector<1x32xf32>
    tpu.vector_store %arg19[%287, %c0_84], %285 {strides = array<i32>} : memref<8x32xf32, #tpu.memory_space<vmem>>, vector<1x32xf32>,
    %289 = arith.mulf %117, %281 : vector<16x32xf32>
    %290 = vector.extract_strided_slice %85 {offsets = [7, 0], sizes = [1, 32], strides = [1, 1]} : vector<8x32xf32> to vector<1x32xf32>
    %291 = vector.broadcast %157 : vector<16x1xf32> to vector<16x32xf32>
    %292 = vector.broadcast %290 : vector<1x32xf32> to vector<16x32xf32>
    %293 = arith.mulf %291, %292 : vector<16x32xf32>
    %294 = arith.addf %289, %293 : vector<16x32xf32>
    %295 = vector.broadcast %197 : vector<16x1xf32> to vector<16x32xf32>
    %296 = arith.mulf %295, %294 : vector<16x32xf32>
    %cst_85 = arith.constant dense<0.000000e+00> : vector<32xf32>
    %297 = vector.multi_reduction <add>, %296, %cst_85 [0] : vector<16x32xf32> to vector<32xf32>
    %298 = vector.shape_cast %297 : vector<32xf32> to vector<1x32xf32>
    %c7_i32 = arith.constant 7 : i32
    %299 = arith.addi %76, %c7_i32 : i32
    %300 = arith.index_cast %299 : i32 to index
    %c0_86 = arith.constant 0 : index
    %301 = vector.load %arg19[%300, %c0_86] : memref<8x32xf32, #tpu.memory_space<vmem>>, vector<1x32xf32>
    tpu.vector_store %arg19[%300, %c0_86], %298 {strides = array<i32>} : memref<8x32xf32, #tpu.memory_space<vmem>>, vector<1x32xf32>,
    %c1_i32_87 = arith.constant 1 : i32
    %c0_88 = arith.constant 0 : index
    %c0_89 = arith.constant 0 : index
    %302 = vector.load %arg20[%c0_88, %c0_89] : memref<16x32xf32, #tpu.memory_space<vmem>>, vector<16x32xf32>
    tpu.vector_store %arg20[%c0_88, %c0_89], %294 {strides = array<i32>} : memref<16x32xf32, #tpu.memory_space<vmem>>, vector<16x32xf32>,
    %c0_90 = arith.constant 0 : index
    %c32 = arith.constant 32 : index
    %303 = vector.load %arg13[%c0_90, %c32] : memref<8x64xf32, #tpu.memory_space<vmem>>, vector<8x32xf32>
    %c0_91 = arith.constant 0 : index
    %c0_92 = arith.constant 0 : index
    %304 = vector.load %arg19[%c0_91, %c0_92] : memref<8x32xf32, #tpu.memory_space<vmem>>, vector<8x32xf32>
    %c0_93 = arith.constant 0 : index
    %c0_94 = arith.constant 0 : index
    %305 = vector.load %arg10[%c0_93, %c0_94] : memref<1x32xf32, #tpu.memory_space<vmem>>, vector<1x32xf32>
    %c0_95 = arith.constant 0 : index
    %c0_96 = arith.constant 0 : index
    %306 = vector.load %arg15[%c0_95, %c0_96] : memref<8x32xf32, #tpu.memory_space<vmem>>, vector<8x32xf32>
    %307 = vector.broadcast %305 : vector<1x32xf32> to vector<8x32xf32>
    %308 = arith.mulf %307, %306 : vector<8x32xf32>
    %309 = arith.addf %304, %308 : vector<8x32xf32>
    %310 = arith.negf %303 : vector<8x32xf32>
    %311 = math.exp %310 : vector<8x32xf32>
    %cst_97 = arith.constant 1.000000e+00 : f32
    %312 = vector.broadcast %cst_97 : f32 to vector<8x32xf32>
    %313 = arith.addf %312, %311 : vector<8x32xf32>
    %314 = arith.divf %312, %313 : vector<8x32xf32>
    %315 = arith.mulf %303, %314 : vector<8x32xf32>
    %316 = arith.mulf %309, %315 : vector<8x32xf32>
    %317 = arith.truncf %316 : vector<8x32xf32> to vector<8x32xbf16>
    %c0_98 = arith.constant 0 : index
    %c0_99 = arith.constant 0 : index
    %318 = vector.load %arg11[%c0_98, %c0_99] : memref<32x16xbf16, #tpu.memory_space<vmem>>, vector<32x16xbf16>
    %cst_100 = arith.constant dense<0.000000e+00> : vector<8x16xf32>
    %319 = tpu.matmul %317, %318, %cst_100 {dimension_numbers = #tpu.dot_dimension_numbers<[1], [0], [0], [1], [0, 0, 1, 1], [], []>} : vector<8x32xbf16>, vector<32x16xbf16>, vector<8x16xf32> -> vector<8x16xf32>
    %c0_101 = arith.constant 0 : index
    %c0_102 = arith.constant 0 : index
    %c0_103 = arith.constant 0 : index
    %320 = vector.load %arg12[%c0_101, %c0_102, %c0_103] : memref<1x8x16xf32, #tpu.memory_space<vmem>>, vector<1x8x16xf32>
    %321 = vector.shape_cast %320 : vector<1x8x16xf32> to vector<8x16xf32>
    %322 = vector.shape_cast %319 : vector<8x16xf32> to vector<1x8x16xf32>
    tpu.vector_store %arg12[%c0_101, %c0_102, %c0_103], %322 {strides = array<i32>} : memref<1x8x16xf32, #tpu.memory_space<vmem>>, vector<1x8x16xf32>,
    return
  }
  func.func @transform_0(%arg0: i32, %arg1: i32) -> (i32, i32, i32) {
    %c0_i32 = arith.constant 0 : i32
    %c0_i32_0 = arith.constant 0 : i32
    return %arg0, %arg1, %c0_i32 : i32, i32, i32
  }
  func.func @transform_1(%arg0: i32, %arg1: i32) -> (i32, i32) {
    %c0_i32 = arith.constant 0 : i32
    %c0_i32_0 = arith.constant 0 : i32
    %c0_i32_1 = arith.constant 0 : i32
    return %c0_i32, %c0_i32_0 : i32, i32
  }
  func.func @transform_2(%arg0: i32, %arg1: i32) -> (i32, i32) {
    %c0_i32 = arith.constant 0 : i32
    %c0_i32_0 = arith.constant 0 : i32
    %c0_i32_1 = arith.constant 0 : i32
    return %c0_i32, %c0_i32_0 : i32, i32
  }
  func.func @transform_3(%arg0: i32, %arg1: i32) -> (i32, i32) {
    %c0_i32 = arith.constant 0 : i32
    %c0_i32_0 = arith.constant 0 : i32
    %c0_i32_1 = arith.constant 0 : i32
    return %c0_i32, %c0_i32_0 : i32, i32
  }
  func.func @transform_4(%arg0: i32, %arg1: i32) -> (i32, i32) {
    %c0_i32 = arith.constant 0 : i32
    %c0_i32_0 = arith.constant 0 : i32
    %c0_i32_1 = arith.constant 0 : i32
    return %c0_i32, %c0_i32_0 : i32, i32
  }
  func.func @transform_5(%arg0: i32, %arg1: i32) -> (i32, i32) {
    %c0_i32 = arith.constant 0 : i32
    %c0_i32_0 = arith.constant 0 : i32
    %c0_i32_1 = arith.constant 0 : i32
    return %c0_i32, %c0_i32_0 : i32, i32
  }
  func.func @transform_6(%arg0: i32, %arg1: i32) -> (i32, i32) {
    %c0_i32 = arith.constant 0 : i32
    %c0_i32_0 = arith.constant 0 : i32
    %c0_i32_1 = arith.constant 0 : i32
    return %c0_i32, %c0_i32_0 : i32, i32
  }
  func.func @transform_7(%arg0: i32, %arg1: i32) -> (i32, i32) {
    %c0_i32 = arith.constant 0 : i32
    %c0_i32_0 = arith.constant 0 : i32
    %c0_i32_1 = arith.constant 0 : i32
    return %c0_i32, %c0_i32_0 : i32, i32
  }
  func.func @transform_8(%arg0: i32, %arg1: i32) -> (i32, i32) {
    %c0_i32 = arith.constant 0 : i32
    %c0_i32_0 = arith.constant 0 : i32
    %c0_i32_1 = arith.constant 0 : i32
    return %c0_i32, %c0_i32_0 : i32, i32
  }
  func.func @transform_9(%arg0: i32, %arg1: i32) -> (i32, i32) {
    %c0_i32 = arith.constant 0 : i32
    %c0_i32_0 = arith.constant 0 : i32
    %c0_i32_1 = arith.constant 0 : i32
    return %c0_i32, %c0_i32_0 : i32, i32
  }
  func.func @transform_10(%arg0: i32, %arg1: i32) -> (i32, i32, i32) {
    %c0_i32 = arith.constant 0 : i32
    %c0_i32_0 = arith.constant 0 : i32
    return %arg0, %arg1, %c0_i32 : i32, i32, i32
  }
}

module attributes {stable_mosaic.version = 11 : i64} {
  func.func @_mamba_kernel(%arg0: i32, %arg1: i32, %arg2: memref<1x8x16xf32, #tpu.memory_space<vmem>>, %arg3: memref<16x64xbf16, #tpu.memory_space<vmem>>, %arg4: memref<4x32xf32, #tpu.memory_space<vmem>>, %arg5: memref<1x32xf32, #tpu.memory_space<vmem>>, %arg6: memref<32x33xbf16, #tpu.memory_space<vmem>>, %arg7: memref<1x32xbf16, #tpu.memory_space<vmem>>, %arg8: memref<1x32xf32, #tpu.memory_space<vmem>>, %arg9: memref<16x32xf32, #tpu.memory_space<vmem>>, %arg10: memref<1x32xf32, #tpu.memory_space<vmem>>, %arg11: memref<32x16xbf16, #tpu.memory_space<vmem>>, %arg12: memref<1x8x16xf32, #tpu.memory_space<vmem>>, %arg13: memref<8x64xf32, #tpu.memory_space<vmem>>, %arg14: memref<11x32xf32, #tpu.memory_space<vmem>>, %arg15: memref<8x32xf32, #tpu.memory_space<vmem>>, %arg16: memref<8x16xf32, #tpu.memory_space<vmem>>, %arg17: memref<8x16xf32, #tpu.memory_space<vmem>>, %arg18: memref<8x32xf32, #tpu.memory_space<vmem>>, %arg19: memref<8x32xf32, #tpu.memory_space<vmem>>, %arg20: memref<16x32xf32, #tpu.memory_space<vmem>>, %arg21: memref<3x32xf32, #tpu.memory_space<vmem>>) attributes {dimension_semantics = [#tpu.dimension_semantics<parallel>, #tpu.dimension_semantics<arbitrary>], iteration_bounds = array<i64: 2, 4>, scalar_prefetch = 0 : i64, scratch_operands = 9 : i64, tpu.core_type = #tpu.core_type<tc>, window_params = [{transform_indices = @transform_0, window_bounds = array<i64: 1, 8, 16>}, {pipeline_mode = #tpu.pipeline_mode<synchronous>, transform_indices = @transform_1, window_bounds = array<i64: 16, 64>}, {pipeline_mode = #tpu.pipeline_mode<synchronous>, transform_indices = @transform_2, window_bounds = array<i64: 4, 32>}, {pipeline_mode = #tpu.pipeline_mode<synchronous>, transform_indices = @transform_3, window_bounds = array<i64: 1, 32>}, {pipeline_mode = #tpu.pipeline_mode<synchronous>, transform_indices = @transform_4, window_bounds = array<i64: 32, 33>}, {pipeline_mode = #tpu.pipeline_mode<synchronous>, transform_indices = @transform_5, window_bounds = array<i64: 1, 32>}, {pipeline_mode = #tpu.pipeline_mode<synchronous>, transform_indices = @transform_6, window_bounds = array<i64: 1, 32>}, {pipeline_mode = #tpu.pipeline_mode<synchronous>, transform_indices = @transform_7, window_bounds = array<i64: 16, 32>}, {pipeline_mode = #tpu.pipeline_mode<synchronous>, transform_indices = @transform_8, window_bounds = array<i64: 1, 32>}, {pipeline_mode = #tpu.pipeline_mode<synchronous>, transform_indices = @transform_9, window_bounds = array<i64: 32, 16>}, {transform_indices = @transform_10, window_bounds = array<i64: 1, 8, 16>}]} {
    %c0_i32 = arith.constant 0 : i32
    %0 = arith.cmpi eq, %arg1, %c0_i32 : i32
    %1 = arith.extui %0 : i1 to i32
    %c0_i32_0 = arith.constant 0 : i32
    %2 = arith.cmpi ne, %1, %c0_i32_0 : i32
    scf.if %2 {
      %cst_104 = arith.constant 0.000000e+00 : f32
      %323 = vector.broadcast %cst_104 : f32 to vector<16x32xf32>
      %c0_105 = arith.constant 0 : index
      %c0_106 = arith.constant 0 : index
      %324 = vector.load %arg20[%c0_105, %c0_106] : memref<16x32xf32, #tpu.memory_space<vmem>>, vector<16x32xf32>
      tpu.vector_store %arg20[%c0_105, %c0_106], %323 {strides = array<i32>} : memref<16x32xf32, #tpu.memory_space<vmem>>, vector<16x32xf32>,
      %cst_107 = arith.constant 0.000000e+00 : f32
      %325 = vector.broadcast %cst_107 : f32 to vector<3x32xf32>
      %c0_108 = arith.constant 0 : index
      %c0_109 = arith.constant 0 : index
      %326 = vector.load %arg21[%c0_108, %c0_109] : memref<3x32xf32, #tpu.memory_space<vmem>>, vector<3x32xf32>
      tpu.vector_store %arg21[%c0_108, %c0_109], %325 {strides = array<i32>} : memref<3x32xf32, #tpu.memory_space<vmem>>, vector<3x32xf32>,
    } else {
    }
    %c0 = arith.constant 0 : index
    %c0_1 = arith.constant 0 : index
    %c0_2 = arith.constant 0 : index
    %3 = vector.load %arg2[%c0, %c0_1, %c0_2] : memref<1x8x16xf32, #tpu.memory_space<vmem>>, vector<1x8x16xf32>
    %4 = vector.shape_cast %3 : vector<1x8x16xf32> to vector<8x16xf32>
    %5 = arith.truncf %4 : vector<8x16xf32> to vector<8x16xbf16>
    %c0_3 = arith.constant 0 : index
    %c0_4 = arith.constant 0 : index
    %6 = vector.load %arg3[%c0_3, %c0_4] : memref<16x64xbf16, #tpu.memory_space<vmem>>, vector<16x64xbf16>
    %cst = arith.constant dense<0.000000e+00> : vector<8x64xf32>
    %7 = tpu.matmul %5, %6, %cst {dimension_numbers = #tpu.dot_dimension_numbers<[1], [0], [0], [1], [0, 0, 1, 1], [], []>} : vector<8x16xbf16>, vector<16x64xbf16>, vector<8x64xf32> -> vector<8x64xf32>
    %c0_5 = arith.constant 0 : index
    %c0_6 = arith.constant 0 : index
    %8 = vector.load %arg13[%c0_5, %c0_6] : memref<8x64xf32, #tpu.memory_space<vmem>>, vector<8x64xf32>
    tpu.vector_store %arg13[%c0_5, %c0_6], %7 {strides = array<i32>} : memref<8x64xf32, #tpu.memory_space<vmem>>, vector<8x64xf32>,
    %c0_7 = arith.constant 0 : index
    %c0_8 = arith.constant 0 : index
    %9 = vector.load %arg13[%c0_7, %c0_8] : memref<8x64xf32, #tpu.memory_space<vmem>>, vector<8x32xf32>
    %c0_9 = arith.constant 0 : index
    %c0_10 = arith.constant 0 : index
    %10 = vector.load %arg21[%c0_9, %c0_10] : memref<3x32xf32, #tpu.memory_space<vmem>>, vector<3x32xf32>
    %c0_11 = arith.constant 0 : index
    %c0_12 = arith.constant 0 : index
    %11 = vector.load %arg14[%c0_11, %c0_12] : memref<11x32xf32, #tpu.memory_space<vmem>>, vector<3x32xf32>
    tpu.vector_store %arg14[%c0_11, %c0_12], %10 {strides = array<i32>} : memref<11x32xf32, #tpu.memory_space<vmem>>, vector<3x32xf32>,
    %c3 = arith.constant 3 : index
    %c0_13 = arith.constant 0 : index
    %12 = vector.load %arg14[%c3, %c0_13] : memref<11x32xf32, #tpu.memory_space<vmem>>, vector<8x32xf32>
    tpu.vector_store %arg14[%c3, %c0_13], %9 {strides = array<i32>} : memref<11x32xf32, #tpu.memory_space<vmem>>, vector<8x32xf32>,
    %13 = vector.extract_strided_slice %9 {offsets = [5, 0], sizes = [3, 32], strides = [1, 1]} : vector<8x32xf32> to vector<3x32xf32>
    %c0_14 = arith.constant 0 : index
    %c0_15 = arith.constant 0 : index
    %14 = vector.load %arg21[%c0_14, %c0_15] : memref<3x32xf32, #tpu.memory_space<vmem>>, vector<3x32xf32>
    tpu.vector_store %arg21[%c0_14, %c0_15], %13 {strides = array<i32>} : memref<3x32xf32, #tpu.memory_space<vmem>>, vector<3x32xf32>,
    %c0_16 = arith.constant 0 : index
    %c0_17 = arith.constant 0 : index
    %15 = vector.load %arg4[%c0_16, %c0_17] : memref<4x32xf32, #tpu.memory_space<vmem>>, vector<4x32xf32>
    %c0_18 = arith.constant 0 : index
    %c0_19 = arith.constant 0 : index
    %16 = vector.load %arg14[%c0_18, %c0_19] : memref<11x32xf32, #tpu.memory_space<vmem>>, vector<8x32xf32>
    %17 = vector.extract_strided_slice %15 {offsets = [0, 0], sizes = [1, 32], strides = [1, 1]} : vector<4x32xf32> to vector<1x32xf32>
    %18 = vector.broadcast %17 : vector<1x32xf32> to vector<8x32xf32>
    %19 = arith.mulf %16, %18 : vector<8x32xf32>
    %c1 = arith.constant 1 : index
    %c0_20 = arith.constant 0 : index
    %20 = vector.load %arg14[%c1, %c0_20] : memref<11x32xf32, #tpu.memory_space<vmem>>, vector<8x32xf32>
    %21 = vector.extract_strided_slice %15 {offsets = [1, 0], sizes = [1, 32], strides = [1, 1]} : vector<4x32xf32> to vector<1x32xf32>
    %22 = vector.broadcast %21 : vector<1x32xf32> to vector<8x32xf32>
    %23 = arith.mulf %20, %22 : vector<8x32xf32>
    %24 = arith.addf %19, %23 : vector<8x32xf32>
    %c2 = arith.constant 2 : index
    %c0_21 = arith.constant 0 : index
    %25 = vector.load %arg14[%c2, %c0_21] : memref<11x32xf32, #tpu.memory_space<vmem>>, vector<8x32xf32>
    %26 = vector.extract_strided_slice %15 {offsets = [2, 0], sizes = [1, 32], strides = [1, 1]} : vector<4x32xf32> to vector<1x32xf32>
    %27 = vector.broadcast %26 : vector<1x32xf32> to vector<8x32xf32>
    %28 = arith.mulf %25, %27 : vector<8x32xf32>
    %29 = arith.addf %24, %28 : vector<8x32xf32>
    %c3_22 = arith.constant 3 : index
    %c0_23 = arith.constant 0 : index
    %30 = vector.load %arg14[%c3_22, %c0_23] : memref<11x32xf32, #tpu.memory_space<vmem>>, vector<8x32xf32>
    %31 = vector.extract_strided_slice %15 {offsets = [3, 0], sizes = [1, 32], strides = [1, 1]} : vector<4x32xf32> to vector<1x32xf32>
    %32 = vector.broadcast %31 : vector<1x32xf32> to vector<8x32xf32>
    %33 = arith.mulf %30, %32 : vector<8x32xf32>
    %34 = arith.addf %29, %33 : vector<8x32xf32>
    %c0_24 = arith.constant 0 : index
    %c0_25 = arith.constant 0 : index
    %35 = vector.load %arg5[%c0_24, %c0_25] : memref<1x32xf32, #tpu.memory_space<vmem>>, vector<1x32xf32>
    %36 = vector.broadcast %35 : vector<1x32xf32> to vector<8x32xf32>
    %37 = arith.addf %34, %36 : vector<8x32xf32>
    %38 = arith.negf %37 : vector<8x32xf32>
    %39 = math.exp %38 : vector<8x32xf32>
    %cst_26 = arith.constant 1.000000e+00 : f32
    %40 = vector.broadcast %cst_26 : f32 to vector<8x32xf32>
    %41 = arith.addf %40, %39 : vector<8x32xf32>
    %42 = arith.divf %40, %41 : vector<8x32xf32>
    %43 = arith.mulf %37, %42 : vector<8x32xf32>
    %c0_27 = arith.constant 0 : index
    %c0_28 = arith.constant 0 : index
    %44 = vector.load %arg15[%c0_27, %c0_28] : memref<8x32xf32, #tpu.memory_space<vmem>>, vector<8x32xf32>
    tpu.vector_store %arg15[%c0_27, %c0_28], %43 {strides = array<i32>} : memref<8x32xf32, #tpu.memory_space<vmem>>, vector<8x32xf32>,
    %45 = arith.truncf %43 : vector<8x32xf32> to vector<8x32xbf16>
    %c0_29 = arith.constant 0 : index
    %c0_30 = arith.constant 0 : index
    %46 = vector.load %arg6[%c0_29, %c0_30] : memref<32x33xbf16, #tpu.memory_space<vmem>>, vector<32x33xbf16>
    %cst_31 = arith.constant dense<0.000000e+00> : vector<8x33xf32>
    %47 = tpu.matmul %45, %46, %cst_31 {dimension_numbers = #tpu.dot_dimension_numbers<[1], [0], [0], [1], [0, 0, 1, 1], [], []>} : vector<8x32xbf16>, vector<32x33xbf16>, vector<8x33xf32> -> vector<8x33xf32>
    %48 = vector.extract_strided_slice %47 {offsets = [0, 1], sizes = [8, 16], strides = [1, 1]} : vector<8x33xf32> to vector<8x16xf32>
    %c0_32 = arith.constant 0 : index
    %c0_33 = arith.constant 0 : index
    %49 = vector.load %arg16[%c0_32, %c0_33] : memref<8x16xf32, #tpu.memory_space<vmem>>, vector<8x16xf32>
    tpu.vector_store %arg16[%c0_32, %c0_33], %48 {strides = array<i32>} : memref<8x16xf32, #tpu.memory_space<vmem>>, vector<8x16xf32>,
    %50 = vector.extract_strided_slice %47 {offsets = [0, 17], sizes = [8, 16], strides = [1, 1]} : vector<8x33xf32> to vector<8x16xf32>
    %c0_34 = arith.constant 0 : index
    %c0_35 = arith.constant 0 : index
    %51 = vector.load %arg17[%c0_34, %c0_35] : memref<8x16xf32, #tpu.memory_space<vmem>>, vector<8x16xf32>
    tpu.vector_store %arg17[%c0_34, %c0_35], %50 {strides = array<i32>} : memref<8x16xf32, #tpu.memory_space<vmem>>, vector<8x16xf32>,
    %52 = vector.extract_strided_slice %47 {offsets = [0, 0], sizes = [8, 1], strides = [1, 1]} : vector<8x33xf32> to vector<8x1xf32>
    %53 = arith.truncf %52 : vector<8x1xf32> to vector<8x1xbf16>
    %c0_36 = arith.constant 0 : index
    %c0_37 = arith.constant 0 : index
    %54 = vector.load %arg7[%c0_36, %c0_37] : memref<1x32xbf16, #tpu.memory_space<vmem>>, vector<1x32xbf16>
    %cst_38 = arith.constant dense<0.000000e+00> : vector<8x32xf32>
    %55 = tpu.matmul %53, %54, %cst_38 {dimension_numbers = #tpu.dot_dimension_numbers<[1], [0], [0], [1], [0, 0, 1, 1], [], []>} : vector<8x1xbf16>, vector<1x32xbf16>, vector<8x32xf32> -> vector<8x32xf32>
    %c0_39 = arith.constant 0 : index
    %c0_40 = arith.constant 0 : index
    %56 = vector.load %arg8[%c0_39, %c0_40] : memref<1x32xf32, #tpu.memory_space<vmem>>, vector<1x32xf32>
    %57 = vector.broadcast %56 : vector<1x32xf32> to vector<8x32xf32>
    %58 = arith.addf %55, %57 : vector<8x32xf32>
    %cst_41 = arith.constant 0.000000e+00 : f32
    %59 = vector.broadcast %cst_41 : f32 to vector<8x32xf32>
    %60 = arith.maximumf %58, %59 : vector<8x32xf32>
    %61 = math.absf %58 : vector<8x32xf32>
    %cst_42 = arith.constant 0.000000e+00 : f32
    %62 = vector.broadcast %cst_42 : f32 to vector<8x32xf32>
    %63 = arith.subf %62, %61 : vector<8x32xf32>
    %64 = math.exp %63 : vector<8x32xf32>
    %65 = math.log1p %64 : vector<8x32xf32>
    %66 = arith.addf %60, %65 : vector<8x32xf32>
    %c0_43 = arith.constant 0 : index
    %c0_44 = arith.constant 0 : index
    %67 = vector.load %arg18[%c0_43, %c0_44] : memref<8x32xf32, #tpu.memory_space<vmem>>, vector<8x32xf32>
    tpu.vector_store %arg18[%c0_43, %c0_44], %66 {strides = array<i32>} : memref<8x32xf32, #tpu.memory_space<vmem>>, vector<8x32xf32>,
    %c0_45 = arith.constant 0 : index
    %c0_46 = arith.constant 0 : index
    %68 = vector.load %arg9[%c0_45, %c0_46] : memref<16x32xf32, #tpu.memory_space<vmem>>, vector<16x32xf32>
    %69 = tpu.iota {dimensions = array<i32: 0>} : vector<16x16xi32>
    %70 = tpu.iota {dimensions = array<i32: 1>} : vector<16x16xi32>
    %71 = arith.cmpi eq, %69, %70 : vector<16x16xi32>
    %72 = arith.extui %71 : vector<16x16xi1> to vector<16x16xi32>
    %73 = arith.sitofp %72 : vector<16x16xi32> to vector<16x16xf32>
    %c0_47 = arith.constant 0 : index
    %c0_48 = arith.constant 0 : index
    %74 = vector.load %arg20[%c0_47, %c0_48] : memref<16x32xf32, #tpu.memory_space<vmem>>, vector<16x32xf32>
    %c0_i32_49 = arith.constant 0 : i32
    %c8_i32 = arith.constant 8 : i32
    %75 = arith.muli %c0_i32_49, %c8_i32 : i32
    %76 = tpu.assume_multiple %75, 8 : i32
    %77 = arith.index_cast %76 : i32 to index
    %c0_50 = arith.constant 0 : index
    %78 = vector.load %arg18[%77, %c0_50] : memref<8x32xf32, #tpu.memory_space<vmem>>, vector<8x32xf32>
    %79 = arith.index_cast %76 : i32 to index
    %c0_51 = arith.constant 0 : index
    %80 = vector.load %arg15[%79, %c0_51] : memref<8x32xf32, #tpu.memory_space<vmem>>, vector<8x32xf32>
    %81 = arith.index_cast %76 : i32 to index
    %c0_52 = arith.constant 0 : index
    %82 = vector.load %arg16[%81, %c0_52] : memref<8x16xf32, #tpu.memory_space<vmem>>, vector<8x16xf32>
    %83 = arith.index_cast %76 : i32 to index
    %c0_53 = arith.constant 0 : index
    %84 = vector.load %arg17[%83, %c0_53] : memref<8x16xf32, #tpu.memory_space<vmem>>, vector<8x16xf32>
    %85 = arith.mulf %78, %80 : vector<8x32xf32>
    %86 = vector.extract_strided_slice %78 {offsets = [0, 0], sizes = [1, 32], strides = [1, 1]} : vector<8x32xf32> to vector<1x32xf32>
    %87 = vector.broadcast %86 : vector<1x32xf32> to vector<16x32xf32>
    %88 = arith.mulf %87, %68 : vector<16x32xf32>
    %89 = math.exp %88 : vector<16x32xf32>
    %90 = vector.extract_strided_slice %78 {offsets = [1, 0], sizes = [1, 32], strides = [1, 1]} : vector<8x32xf32> to vector<1x32xf32>
    %91 = vector.broadcast %90 : vector<1x32xf32> to vector<16x32xf32>
    %92 = arith.mulf %91, %68 : vector<16x32xf32>
    %93 = math.exp %92 : vector<16x32xf32>
    %94 = vector.extract_strided_slice %78 {offsets = [2, 0], sizes = [1, 32], strides = [1, 1]} : vector<8x32xf32> to vector<1x32xf32>
    %95 = vector.broadcast %94 : vector<1x32xf32> to vector<16x32xf32>
    %96 = arith.mulf %95, %68 : vector<16x32xf32>
    %97 = math.exp %96 : vector<16x32xf32>
    %98 = vector.extract_strided_slice %78 {offsets = [3, 0], sizes = [1, 32], strides = [1, 1]} : vector<8x32xf32> to vector<1x32xf32>
    %99 = vector.broadcast %98 : vector<1x32xf32> to vector<16x32xf32>
    %100 = arith.mulf %99, %68 : vector<16x32xf32>
    %101 = math.exp %100 : vector<16x32xf32>
    %102 = vector.extract_strided_slice %78 {offsets = [4, 0], sizes = [1, 32], strides = [1, 1]} : vector<8x32xf32> to vector<1x32xf32>
    %103 = vector.broadcast %102 : vector<1x32xf32> to vector<16x32xf32>
    %104 = arith.mulf %103, %68 : vector<16x32xf32>
    %105 = math.exp %104 : vector<16x32xf32>
    %106 = vector.extract_strided_slice %78 {offsets = [5, 0], sizes = [1, 32], strides = [1, 1]} : vector<8x32xf32> to vector<1x32xf32>
    %107 = vector.broadcast %106 : vector<1x32xf32> to vector<16x32xf32>
    %108 = arith.mulf %107, %68 : vector<16x32xf32>
    %109 = math.exp %108 : vector<16x32xf32>
    %110 = vector.extract_strided_slice %78 {offsets = [6, 0], sizes = [1, 32], strides = [1, 1]} : vector<8x32xf32> to vector<1x32xf32>
    %111 = vector.broadcast %110 : vector<1x32xf32> to vector<16x32xf32>
    %112 = arith.mulf %111, %68 : vector<16x32xf32>
    %113 = math.exp %112 : vector<16x32xf32>
    %114 = vector.extract_strided_slice %78 {offsets = [7, 0], sizes = [1, 32], strides = [1, 1]} : vector<8x32xf32> to vector<1x32xf32>
    %115 = vector.broadcast %114 : vector<1x32xf32> to vector<16x32xf32>
    %116 = arith.mulf %115, %68 : vector<16x32xf32>
    %117 = math.exp %116 : vector<16x32xf32>
    %118 = vector.extract_strided_slice %82 {offsets = [0, 0], sizes = [1, 16], strides = [1, 1]} : vector<8x16xf32> to vector<1x16xf32>
    %119 = vector.broadcast %118 : vector<1x16xf32> to vector<16x16xf32>
    %120 = arith.mulf %73, %119 : vector<16x16xf32>
    %cst_54 = arith.constant dense<0.000000e+00> : vector<16xf32>
    %121 = vector.multi_reduction <add>, %120, %cst_54 [1] : vector<16x16xf32> to vector<16xf32>
    %122 = vector.shape_cast %121 : vector<16xf32> to vector<16x1xf32>
    %123 = vector.extract_strided_slice %82 {offsets = [1, 0], sizes = [1, 16], strides = [1, 1]} : vector<8x16xf32> to vector<1x16xf32>
    %124 = vector.broadcast %123 : vector<1x16xf32> to vector<16x16xf32>
    %125 = arith.mulf %73, %124 : vector<16x16xf32>
    %cst_55 = arith.constant dense<0.000000e+00> : vector<16xf32>
    %126 = vector.multi_reduction <add>, %125, %cst_55 [1] : vector<16x16xf32> to vector<16xf32>
    %127 = vector.shape_cast %126 : vector<16xf32> to vector<16x1xf32>
    %128 = vector.extract_strided_slice %82 {offsets = [2, 0], sizes = [1, 16], strides = [1, 1]} : vector<8x16xf32> to vector<1x16xf32>
    %129 = vector.broadcast %128 : vector<1x16xf32> to vector<16x16xf32>
    %130 = arith.mulf %73, %129 : vector<16x16xf32>
    %cst_56 = arith.constant dense<0.000000e+00> : vector<16xf32>
    %131 = vector.multi_reduction <add>, %130, %cst_56 [1] : vector<16x16xf32> to vector<16xf32>
    %132 = vector.shape_cast %131 : vector<16xf32> to vector<16x1xf32>
    %133 = vector.extract_strided_slice %82 {offsets = [3, 0], sizes = [1, 16], strides = [1, 1]} : vector<8x16xf32> to vector<1x16xf32>
    %134 = vector.broadcast %133 : vector<1x16xf32> to vector<16x16xf32>
    %135 = arith.mulf %73, %134 : vector<16x16xf32>
    %cst_57 = arith.constant dense<0.000000e+00> : vector<16xf32>
    %136 = vector.multi_reduction <add>, %135, %cst_57 [1] : vector<16x16xf32> to vector<16xf32>
    %137 = vector.shape_cast %136 : vector<16xf32> to vector<16x1xf32>
    %138 = vector.extract_strided_slice %82 {offsets = [4, 0], sizes = [1, 16], strides = [1, 1]} : vector<8x16xf32> to vector<1x16xf32>
    %139 = vector.broadcast %138 : vector<1x16xf32> to vector<16x16xf32>
    %140 = arith.mulf %73, %139 : vector<16x16xf32>
    %cst_58 = arith.constant dense<0.000000e+00> : vector<16xf32>
    %141 = vector.multi_reduction <add>, %140, %cst_58 [1] : vector<16x16xf32> to vector<16xf32>
    %142 = vector.shape_cast %141 : vector<16xf32> to vector<16x1xf32>
    %143 = vector.extract_strided_slice %82 {offsets = [5, 0], sizes = [1, 16], strides = [1, 1]} : vector<8x16xf32> to vector<1x16xf32>
    %144 = vector.broadcast %143 : vector<1x16xf32> to vector<16x16xf32>
    %145 = arith.mulf %73, %144 : vector<16x16xf32>
    %cst_59 = arith.constant dense<0.000000e+00> : vector<16xf32>
    %146 = vector.multi_reduction <add>, %145, %cst_59 [1] : vector<16x16xf32> to vector<16xf32>
    %147 = vector.shape_cast %146 : vector<16xf32> to vector<16x1xf32>
    %148 = vector.extract_strided_slice %82 {offsets = [6, 0], sizes = [1, 16], strides = [1, 1]} : vector<8x16xf32> to vector<1x16xf32>
    %149 = vector.broadcast %148 : vector<1x16xf32> to vector<16x16xf32>
    %150 = arith.mulf %73, %149 : vector<16x16xf32>
    %cst_60 = arith.constant dense<0.000000e+00> : vector<16xf32>
    %151 = vector.multi_reduction <add>, %150, %cst_60 [1] : vector<16x16xf32> to vector<16xf32>
    %152 = vector.shape_cast %151 : vector<16xf32> to vector<16x1xf32>
    %153 = vector.extract_strided_slice %82 {offsets = [7, 0], sizes = [1, 16], strides = [1, 1]} : vector<8x16xf32> to vector<1x16xf32>
    %154 = vector.broadcast %153 : vector<1x16xf32> to vector<16x16xf32>
    %155 = arith.mulf %73, %154 : vector<16x16xf32>
    %cst_61 = arith.constant dense<0.000000e+00> : vector<16xf32>
    %156 = vector.multi_reduction <add>, %155, %cst_61 [1] : vector<16x16xf32> to vector<16xf32>
    %157 = vector.shape_cast %156 : vector<16xf32> to vector<16x1xf32>
    %158 = vector.extract_strided_slice %84 {offsets = [0, 0], sizes = [1, 16], strides = [1, 1]} : vector<8x16xf32> to vector<1x16xf32>
    %159 = vector.broadcast %158 : vector<1x16xf32> to vector<16x16xf32>
    %160 = arith.mulf %73, %159 : vector<16x16xf32>
    %cst_62 = arith.constant dense<0.000000e+00> : vector<16xf32>
    %161 = vector.multi_reduction <add>, %160, %cst_62 [1] : vector<16x16xf32> to vector<16xf32>
    %162 = vector.shape_cast %161 : vector<16xf32> to vector<16x1xf32>
    %163 = vector.extract_strided_slice %84 {offsets = [1, 0], sizes = [1, 16], strides = [1, 1]} : vector<8x16xf32> to vector<1x16xf32>
    %164 = vector.broadcast %163 : vector<1x16xf32> to vector<16x16xf32>
    %165 = arith.mulf %73, %164 : vector<16x16xf32>
    %cst_63 = arith.constant dense<0.000000e+00> : vector<16xf32>
    %166 = vector.multi_reduction <add>, %165, %cst_63 [1] : vector<16x16xf32> to vector<16xf32>
    %167 = vector.shape_cast %166 : vector<16xf32> to vector<16x1xf32>
    %168 = vector.extract_strided_slice %84 {offsets = [2, 0], sizes = [1, 16], strides = [1, 1]} : vector<8x16xf32> to vector<1x16xf32>
    %169 = vector.broadcast %168 : vector<1x16xf32> to vector<16x16xf32>
    %170 = arith.mulf %73, %169 : vector<16x16xf32>
    %cst_64 = arith.constant dense<0.000000e+00> : vector<16xf32>
    %171 = vector.multi_reduction <add>, %170, %cst_64 [1] : vector<16x16xf32> to vector<16xf32>
    %172 = vector.shape_cast %171 : vector<16xf32> to vector<16x1xf32>
    %173 = vector.extract_strided_slice %84 {offsets = [3, 0], sizes = [1, 16], strides = [1, 1]} : vector<8x16xf32> to vector<1x16xf32>
    %174 = vector.broadcast %173 : vector<1x16xf32> to vector<16x16xf32>
    %175 = arith.mulf %73, %174 : vector<16x16xf32>
    %cst_65 = arith.constant dense<0.000000e+00> : vector<16xf32>
    %176 = vector.multi_reduction <add>, %175, %cst_65 [1] : vector<16x16xf32> to vector<16xf32>
    %177 = vector.shape_cast %176 : vector<16xf32> to vector<16x1xf32>
    %178 = vector.extract_strided_slice %84 {offsets = [4, 0], sizes = [1, 16], strides = [1, 1]} : vector<8x16xf32> to vector<1x16xf32>
    %179 = vector.broadcast %178 : vector<1x16xf32> to vector<16x16xf32>
    %180 = arith.mulf %73, %179 : vector<16x16xf32>
    %cst_66 = arith.constant dense<0.000000e+00> : vector<16xf32>
    %181 = vector.multi_reduction <add>, %180, %cst_66 [1] : vector<16x16xf32> to vector<16xf32>
    %182 = vector.shape_cast %181 : vector<16xf32> to vector<16x1xf32>
    %183 = vector.extract_strided_slice %84 {offsets = [5, 0], sizes = [1, 16], strides = [1, 1]} : vector<8x16xf32> to vector<1x16xf32>
    %184 = vector.broadcast %183 : vector<1x16xf32> to vector<16x16xf32>
    %185 = arith.mulf %73, %184 : vector<16x16xf32>
    %cst_67 = arith.constant dense<0.000000e+00> : vector<16xf32>
    %186 = vector.multi_reduction <add>, %185, %cst_67 [1] : vector<16x16xf32> to vector<16xf32>
    %187 = vector.shape_cast %186 : vector<16xf32> to vector<16x1xf32>
    %188 = vector.extract_strided_slice %84 {offsets = [6, 0], sizes = [1, 16], strides = [1, 1]} : vector<8x16xf32> to vector<1x16xf32>
    %189 = vector.broadcast %188 : vector<1x16xf32> to vector<16x16xf32>
    %190 = arith.mulf %73, %189 : vector<16x16xf32>
    %cst_68 = arith.constant dense<0.000000e+00> : vector<16xf32>
    %191 = vector.multi_reduction <add>, %190, %cst_68 [1] : vector<16x16xf32> to vector<16xf32>
    %192 = vector.shape_cast %191 : vector<16xf32> to vector<16x1xf32>
    %193 = vector.extract_strided_slice %84 {offsets = [7, 0], sizes = [1, 16], strides = [1, 1]} : vector<8x16xf32> to vector<1x16xf32>
    %194 = vector.broadcast %193 : vector<1x16xf32> to vector<16x16xf32>
    %195 = arith.mulf %73, %194 : vector<16x16xf32>
    %cst_69 = arith.constant dense<0.000000e+00> : vector<16xf32>
    %196 = vector.multi_reduction <add>, %195, %cst_69 [1] : vector<16x16xf32> to vector<16xf32>
    %197 = vector.shape_cast %196 : vector<16xf32> to vector<16x1xf32>
    %198 = arith.mulf %89, %74 : vector<16x32xf32>
    %199 = vector.extract_strided_slice %85 {offsets = [0, 0], sizes = [1, 32], strides = [1, 1]} : vector<8x32xf32> to vector<1x32xf32>
    %200 = vector.broadcast %122 : vector<16x1xf32> to vector<16x32xf32>
    %201 = vector.broadcast %199 : vector<1x32xf32> to vector<16x32xf32>
    %202 = arith.mulf %200, %201 : vector<16x32xf32>
    %203 = arith.addf %198, %202 : vector<16x32xf32>
    %204 = vector.broadcast %162 : vector<16x1xf32> to vector<16x32xf32>
    %205 = arith.mulf %204, %203 : vector<16x32xf32>
    %cst_70 = arith.constant dense<0.000000e+00> : vector<32xf32>
    %206 = vector.multi_reduction <add>, %205, %cst_70 [0] : vector<16x32xf32> to vector<32xf32>
    %207 = vector.shape_cast %206 : vector<32xf32> to vector<1x32xf32>
    %c0_i32_71 = arith.constant 0 : i32
    %208 = arith.addi %76, %c0_i32_71 : i32
    %209 = arith.index_cast %208 : i32 to index
    %c0_72 = arith.constant 0 : index
    %210 = vector.load %arg19[%209, %c0_72] : memref<8x32xf32, #tpu.memory_space<vmem>>, vector<1x32xf32>
    tpu.vector_store %arg19[%209, %c0_72], %207 {strides = array<i32>} : memref<8x32xf32, #tpu.memory_space<vmem>>, vector<1x32xf32>,
    %211 = arith.mulf %93, %203 : vector<16x32xf32>
    %212 = vector.extract_strided_slice %85 {offsets = [1, 0], sizes = [1, 32], strides = [1, 1]} : vector<8x32xf32> to vector<1x32xf32>
    %213 = vector.broadcast %127 : vector<16x1xf32> to vector<16x32xf32>
    %214 = vector.broadcast %212 : vector<1x32xf32> to vector<16x32xf32>
    %215 = arith.mulf %213, %214 : vector<16x32xf32>
    %216 = arith.addf %211, %215 : vector<16x32xf32>
    %217 = vector.broadcast %167 : vector<16x1xf32> to vector<16x32xf32>
    %218 = arith.mulf %217, %216 : vector<16x32xf32>
    %cst_73 = arith.constant dense<0.000000e+00> : vector<32xf32>
    %219 = vector.multi_reduction <add>, %218, %cst_73 [0] : vector<16x32xf32> to vector<32xf32>
    %220 = vector.shape_cast %219 : vector<32xf32> to vector<1x32xf32>
    %c1_i32 = arith.constant 1 : i32
    %221 = arith.addi %76, %c1_i32 : i32
    %222 = arith.index_cast %221 : i32 to index
    %c0_74 = arith.constant 0 : index
    %223 = vector.load %arg19[%222, %c0_74] : memref<8x32xf32, #tpu.memory_space<vmem>>, vector<1x32xf32>
    tpu.vector_store %arg19[%222, %c0_74], %220 {strides = array<i32>} : memref<8x32xf32, #tpu.memory_space<vmem>>, vector<1x32xf32>,
    %224 = arith.mulf %97, %216 : vector<16x32xf32>
    %225 = vector.extract_strided_slice %85 {offsets = [2, 0], sizes = [1, 32], strides = [1, 1]} : vector<8x32xf32> to vector<1x32xf32>
    %226 = vector.broadcast %132 : vector<16x1xf32> to vector<16x32xf32>
    %227 = vector.broadcast %225 : vector<1x32xf32> to vector<16x32xf32>
    %228 = arith.mulf %226, %227 : vector<16x32xf32>
    %229 = arith.addf %224, %228 : vector<16x32xf32>
    %230 = vector.broadcast %172 : vector<16x1xf32> to vector<16x32xf32>
    %231 = arith.mulf %230, %229 : vector<16x32xf32>
    %cst_75 = arith.constant dense<0.000000e+00> : vector<32xf32>
    %232 = vector.multi_reduction <add>, %231, %cst_75 [0] : vector<16x32xf32> to vector<32xf32>
    %233 = vector.shape_cast %232 : vector<32xf32> to vector<1x32xf32>
    %c2_i32 = arith.constant 2 : i32
    %234 = arith.addi %76, %c2_i32 : i32
    %235 = arith.index_cast %234 : i32 to index
    %c0_76 = arith.constant 0 : index
    %236 = vector.load %arg19[%235, %c0_76] : memref<8x32xf32, #tpu.memory_space<vmem>>, vector<1x32xf32>
    tpu.vector_store %arg19[%235, %c0_76], %233 {strides = array<i32>} : memref<8x32xf32, #tpu.memory_space<vmem>>, vector<1x32xf32>,
    %237 = arith.mulf %101, %229 : vector<16x32xf32>
    %238 = vector.extract_strided_slice %85 {offsets = [3, 0], sizes = [1, 32], strides = [1, 1]} : vector<8x32xf32> to vector<1x32xf32>
    %239 = vector.broadcast %137 : vector<16x1xf32> to vector<16x32xf32>
    %240 = vector.broadcast %238 : vector<1x32xf32> to vector<16x32xf32>
    %241 = arith.mulf %239, %240 : vector<16x32xf32>
    %242 = arith.addf %237, %241 : vector<16x32xf32>
    %243 = vector.broadcast %177 : vector<16x1xf32> to vector<16x32xf32>
    %244 = arith.mulf %243, %242 : vector<16x32xf32>
    %cst_77 = arith.constant dense<0.000000e+00> : vector<32xf32>
    %245 = vector.multi_reduction <add>, %244, %cst_77 [0] : vector<16x32xf32> to vector<32xf32>
    %246 = vector.shape_cast %245 : vector<32xf32> to vector<1x32xf32>
    %c3_i32 = arith.constant 3 : i32
    %247 = arith.addi %76, %c3_i32 : i32
    %248 = arith.index_cast %247 : i32 to index
    %c0_78 = arith.constant 0 : index
    %249 = vector.load %arg19[%248, %c0_78] : memref<8x32xf32, #tpu.memory_space<vmem>>, vector<1x32xf32>
    tpu.vector_store %arg19[%248, %c0_78], %246 {strides = array<i32>} : memref<8x32xf32, #tpu.memory_space<vmem>>, vector<1x32xf32>,
    %250 = arith.mulf %105, %242 : vector<16x32xf32>
    %251 = vector.extract_strided_slice %85 {offsets = [4, 0], sizes = [1, 32], strides = [1, 1]} : vector<8x32xf32> to vector<1x32xf32>
    %252 = vector.broadcast %142 : vector<16x1xf32> to vector<16x32xf32>
    %253 = vector.broadcast %251 : vector<1x32xf32> to vector<16x32xf32>
    %254 = arith.mulf %252, %253 : vector<16x32xf32>
    %255 = arith.addf %250, %254 : vector<16x32xf32>
    %256 = vector.broadcast %182 : vector<16x1xf32> to vector<16x32xf32>
    %257 = arith.mulf %256, %255 : vector<16x32xf32>
    %cst_79 = arith.constant dense<0.000000e+00> : vector<32xf32>
    %258 = vector.multi_reduction <add>, %257, %cst_79 [0] : vector<16x32xf32> to vector<32xf32>
    %259 = vector.shape_cast %258 : vector<32xf32> to vector<1x32xf32>
    %c4_i32 = arith.constant 4 : i32
    %260 = arith.addi %76, %c4_i32 : i32
    %261 = arith.index_cast %260 : i32 to index
    %c0_80 = arith.constant 0 : index
    %262 = vector.load %arg19[%261, %c0_80] : memref<8x32xf32, #tpu.memory_space<vmem>>, vector<1x32xf32>
    tpu.vector_store %arg19[%261, %c0_80], %259 {strides = array<i32>} : memref<8x32xf32, #tpu.memory_space<vmem>>, vector<1x32xf32>,
    %263 = arith.mulf %109, %255 : vector<16x32xf32>
    %264 = vector.extract_strided_slice %85 {offsets = [5, 0], sizes = [1, 32], strides = [1, 1]} : vector<8x32xf32> to vector<1x32xf32>
    %265 = vector.broadcast %147 : vector<16x1xf32> to vector<16x32xf32>
    %266 = vector.broadcast %264 : vector<1x32xf32> to vector<16x32xf32>
    %267 = arith.mulf %265, %266 : vector<16x32xf32>
    %268 = arith.addf %263, %267 : vector<16x32xf32>
    %269 = vector.broadcast %187 : vector<16x1xf32> to vector<16x32xf32>
    %270 = arith.mulf %269, %268 : vector<16x32xf32>
    %cst_81 = arith.constant dense<0.000000e+00> : vector<32xf32>
    %271 = vector.multi_reduction <add>, %270, %cst_81 [0] : vector<16x32xf32> to vector<32xf32>
    %272 = vector.shape_cast %271 : vector<32xf32> to vector<1x32xf32>
    %c5_i32 = arith.constant 5 : i32
    %273 = arith.addi %76, %c5_i32 : i32
    %274 = arith.index_cast %273 : i32 to index
    %c0_82 = arith.constant 0 : index
    %275 = vector.load %arg19[%274, %c0_82] : memref<8x32xf32, #tpu.memory_space<vmem>>, vector<1x32xf32>
    tpu.vector_store %arg19[%274, %c0_82], %272 {strides = array<i32>} : memref<8x32xf32, #tpu.memory_space<vmem>>, vector<1x32xf32>,
    %276 = arith.mulf %113, %268 : vector<16x32xf32>
    %277 = vector.extract_strided_slice %85 {offsets = [6, 0], sizes = [1, 32], strides = [1, 1]} : vector<8x32xf32> to vector<1x32xf32>
    %278 = vector.broadcast %152 : vector<16x1xf32> to vector<16x32xf32>
    %279 = vector.broadcast %277 : vector<1x32xf32> to vector<16x32xf32>
    %280 = arith.mulf %278, %279 : vector<16x32xf32>
    %281 = arith.addf %276, %280 : vector<16x32xf32>
    %282 = vector.broadcast %192 : vector<16x1xf32> to vector<16x32xf32>
    %283 = arith.mulf %282, %281 : vector<16x32xf32>
    %cst_83 = arith.constant dense<0.000000e+00> : vector<32xf32>
    %284 = vector.multi_reduction <add>, %283, %cst_83 [0] : vector<16x32xf32> to vector<32xf32>
    %285 = vector.shape_cast %284 : vector<32xf32> to vector<1x32xf32>
    %c6_i32 = arith.constant 6 : i32
    %286 = arith.addi %76, %c6_i32 : i32
    %287 = arith.index_cast %286 : i32 to index
    %c0_84 = arith.constant 0 : index
    %288 = vector.load %arg19[%287, %c0_84] : memref<8x32xf32, #tpu.memory_space<vmem>>, vector<1x32xf32>
    tpu.vector_store %arg19[%287, %c0_84], %285 {strides = array<i32>} : memref<8x32xf32, #tpu.memory_space<vmem>>, vector<1x32xf32>,
    %289 = arith.mulf %117, %281 : vector<16x32xf32>
    %290 = vector.extract_strided_slice %85 {offsets = [7, 0], sizes = [1, 32], strides = [1, 1]} : vector<8x32xf32> to vector<1x32xf32>
    %291 = vector.broadcast %157 : vector<16x1xf32> to vector<16x32xf32>
    %292 = vector.broadcast %290 : vector<1x32xf32> to vector<16x32xf32>
    %293 = arith.mulf %291, %292 : vector<16x32xf32>
    %294 = arith.addf %289, %293 : vector<16x32xf32>
    %295 = vector.broadcast %197 : vector<16x1xf32> to vector<16x32xf32>
    %296 = arith.mulf %295, %294 : vector<16x32xf32>
    %cst_85 = arith.constant dense<0.000000e+00> : vector<32xf32>
    %297 = vector.multi_reduction <add>, %296, %cst_85 [0] : vector<16x32xf32> to vector<32xf32>
    %298 = vector.shape_cast %297 : vector<32xf32> to vector<1x32xf32>
    %c7_i32 = arith.constant 7 : i32
    %299 = arith.addi %76, %c7_i32 : i32
    %300 = arith.index_cast %299 : i32 to index
    %c0_86 = arith.constant 0 : index
    %301 = vector.load %arg19[%300, %c0_86] : memref<8x32xf32, #tpu.memory_space<vmem>>, vector<1x32xf32>
    tpu.vector_store %arg19[%300, %c0_86], %298 {strides = array<i32>} : memref<8x32xf32, #tpu.memory_space<vmem>>, vector<1x32xf32>,
    %c1_i32_87 = arith.constant 1 : i32
    %c0_88 = arith.constant 0 : index
    %c0_89 = arith.constant 0 : index
    %302 = vector.load %arg20[%c0_88, %c0_89] : memref<16x32xf32, #tpu.memory_space<vmem>>, vector<16x32xf32>
    tpu.vector_store %arg20[%c0_88, %c0_89], %294 {strides = array<i32>} : memref<16x32xf32, #tpu.memory_space<vmem>>, vector<16x32xf32>,
    %c0_90 = arith.constant 0 : index
    %c32 = arith.constant 32 : index
    %303 = vector.load %arg13[%c0_90, %c32] : memref<8x64xf32, #tpu.memory_space<vmem>>, vector<8x32xf32>
    %c0_91 = arith.constant 0 : index
    %c0_92 = arith.constant 0 : index
    %304 = vector.load %arg19[%c0_91, %c0_92] : memref<8x32xf32, #tpu.memory_space<vmem>>, vector<8x32xf32>
    %c0_93 = arith.constant 0 : index
    %c0_94 = arith.constant 0 : index
    %305 = vector.load %arg10[%c0_93, %c0_94] : memref<1x32xf32, #tpu.memory_space<vmem>>, vector<1x32xf32>
    %c0_95 = arith.constant 0 : index
    %c0_96 = arith.constant 0 : index
    %306 = vector.load %arg15[%c0_95, %c0_96] : memref<8x32xf32, #tpu.memory_space<vmem>>, vector<8x32xf32>
    %307 = vector.broadcast %305 : vector<1x32xf32> to vector<8x32xf32>
    %308 = arith.mulf %307, %306 : vector<8x32xf32>
    %309 = arith.addf %304, %308 : vector<8x32xf32>
    %310 = arith.negf %303 : vector<8x32xf32>
    %311 = math.exp %310 : vector<8x32xf32>
    %cst_97 = arith.constant 1.000000e+00 : f32
    %312 = vector.broadcast %cst_97 : f32 to vector<8x32xf32>
    %313 = arith.addf %312, %311 : vector<8x32xf32>
    %314 = arith.divf %312, %313 : vector<8x32xf32>
    %315 = arith.mulf %303, %314 : vector<8x32xf32>
    %316 = arith.mulf %309, %315 : vector<8x32xf32>
    %317 = arith.truncf %316 : vector<8x32xf32> to vector<8x32xbf16>
    %c0_98 = arith.constant 0 : index
    %c0_99 = arith.constant 0 : index
    %318 = vector.load %arg11[%c0_98, %c0_99] : memref<32x16xbf16, #tpu.memory_space<vmem>>, vector<32x16xbf16>
    %cst_100 = arith.constant dense<0.000000e+00> : vector<8x16xf32>
    %319 = tpu.matmul %317, %318, %cst_100 {dimension_numbers = #tpu.dot_dimension_numbers<[1], [0], [0], [1], [0, 0, 1, 1], [], []>} : vector<8x32xbf16>, vector<32x16xbf16>, vector<8x16xf32> -> vector<8x16xf32>
    %c0_101 = arith.constant 0 : index
    %c0_102 = arith.constant 0 : index
    %c0_103 = arith.constant 0 : index
    %320 = vector.load %arg12[%c0_101, %c0_102, %c0_103] : memref<1x8x16xf32, #tpu.memory_space<vmem>>, vector<1x8x16xf32>
    %321 = vector.shape_cast %320 : vector<1x8x16xf32> to vector<8x16xf32>
    %322 = vector.shape_cast %319 : vector<8x16xf32> to vector<1x8x16xf32>
    tpu.vector_store %arg12[%c0_101, %c0_102, %c0_103], %322 {strides = array<i32>} : memref<1x8x16xf32, #tpu.memory_space<vmem>>, vector<1x8x16xf32>,
    return
  }
  func.func @transform_0(%arg0: i32, %arg1: i32) -> (i32, i32, i32) {
    %c0_i32 = arith.constant 0 : i32
    %c0_i32_0 = arith.constant 0 : i32
    return %arg0, %arg1, %c0_i32 : i32, i32, i32
  }
  func.func @transform_1(%arg0: i32, %arg1: i32) -> (i32, i32) {
    %c0_i32 = arith.constant 0 : i32
    %c0_i32_0 = arith.constant 0 : i32
    %c0_i32_1 = arith.constant 0 : i32
    return %c0_i32, %c0_i32_0 : i32, i32
  }
  func.func @transform_2(%arg0: i32, %arg1: i32) -> (i32, i32) {
    %c0_i32 = arith.constant 0 : i32
    %c0_i32_0 = arith.constant 0 : i32
    %c0_i32_1 = arith.constant 0 : i32
    return %c0_i32, %c0_i32_0 : i32, i32
  }
  func.func @transform_3(%arg0: i32, %arg1: i32) -> (i32, i32) {
    %c0_i32 = arith.constant 0 : i32
    %c0_i32_0 = arith.constant 0 : i32
    %c0_i32_1 = arith.constant 0 : i32
    return %c0_i32, %c0_i32_0 : i32, i32
  }
  func.func @transform_4(%arg0: i32, %arg1: i32) -> (i32, i32) {
    %c0_i32 = arith.constant 0 : i32
    %c0_i32_0 = arith.constant 0 : i32
    %c0_i32_1 = arith.constant 0 : i32
    return %c0_i32, %c0_i32_0 : i32, i32
  }
  func.func @transform_5(%arg0: i32, %arg1: i32) -> (i32, i32) {
    %c0_i32 = arith.constant 0 : i32
    %c0_i32_0 = arith.constant 0 : i32
    %c0_i32_1 = arith.constant 0 : i32
    return %c0_i32, %c0_i32_0 : i32, i32
  }
  func.func @transform_6(%arg0: i32, %arg1: i32) -> (i32, i32) {
    %c0_i32 = arith.constant 0 : i32
    %c0_i32_0 = arith.constant 0 : i32
    %c0_i32_1 = arith.constant 0 : i32
    return %c0_i32, %c0_i32_0 : i32, i32
  }
  func.func @transform_7(%arg0: i32, %arg1: i32) -> (i32, i32) {
    %c0_i32 = arith.constant 0 : i32
    %c0_i32_0 = arith.constant 0 : i32
    %c0_i32_1 = arith.constant 0 : i32
    return %c0_i32, %c0_i32_0 : i32, i32
  }
  func.func @transform_8(%arg0: i32, %arg1: i32) -> (i32, i32) {
    %c0_i32 = arith.constant 0 : i32
    %c0_i32_0 = arith.constant 0 : i32
    %c0_i32_1 = arith.constant 0 : i32
    return %c0_i32, %c0_i32_0 : i32, i32
  }
  func.func @transform_9(%arg0: i32, %arg1: i32) -> (i32, i32) {
    %c0_i32 = arith.constant 0 : i32
    %c0_i32_0 = arith.constant 0 : i32
    %c0_i32_1 = arith.constant 0 : i32
    return %c0_i32, %c0_i32_0 : i32, i32
  }
  func.func @transform_10(%arg0: i32, %arg1: i32) -> (i32, i32, i32) {
    %c0_i32 = arith.constant 0 : i32
    %c0_i32_0 = arith.constant 0 : i32
    return %arg0, %arg1, %c0_i32 : i32, i32, i32
  }
}

</mosaic_0001>

<bundles_post_ra>
// kernel: tpu_custom_call.1
= control target key start
LH: loop header
LB: loop body
LE: loop exit
PB: predicated region body
PF: predicated region fallthrough
CT: control target
= control target key end

     0   :  { %s1580_s13 = smov 0   ;;  %s1582_s14 = smov 0   ;;  %s1990_s0 = inlined_call_operand.vmem [shape: f32[2,32,16], index: 0, kind: input, shape index: {}]   ;;  %s1991_s1 = inlined_call_operand.vmem [shape: bf16[16,64], index: 1, kind: input, shape index: {}]   ;;  %s1992_s2 = inlined_call_operand.vmem [shape: f32[4,32], index: 2, kind: input, shape index: {}]   ;;  %s1993_s3 = inlined_call_operand.vmem [shape: f32[1,32], index: 3, kind: input, shape index: {}]   ;;  %s1994_s4 = inlined_call_operand.vmem [shape: bf16[32,33], index: 4, kind: input, shape index: {}]   ;;  %s1995_s5 = inlined_call_operand.vmem [shape: bf16[1,32], index: 5, kind: input, shape index: {}]   ;;  %s1996_s6 = inlined_call_operand.vmem [shape: f32[1,32], index: 6, kind: input, shape index: {}]   ;;  %s1997_s7 = inlined_call_operand.vmem [shape: f32[16,32], index: 7, kind: input, shape index: {}]   ;;  %s1998_s8 = inlined_call_operand.vmem [shape: f32[1,32], index: 8, kind: input, shape index: {}]   ;;  %s1999_s9 = inlined_call_operand.vmem [shape: bf16[32,16], index: 9, kind: input, shape index: {}]   ;;  %s2000_s10 = inlined_call_operand.vmem [shape: f32[2,32,16], index: 10, kind: output, shape index: {}]  }
   0x1   :  { %s1584_s15 = smov 0   ;;  %s1586_s16 = smov 0  }
   0x2   :  { %s1588_s17 = smov 0  }
   0x3 LB: > { %s29_s18 = sadd.s32 1, %s1508_s15  ;;  %s32_s19 = sadd.s32 1, %s1512_s16  ;;  %s1516_s17 = sphi %s1588_s17, %s20_s17   ;;  %s1512_s16 = sphi %s1586_s16, %s2004_s16   ;;  %s1508_s15 = sphi %s1584_s15, %s2003_s15   ;;  %s1504_s14 = sphi %s1582_s14, %s2002_s14   ;;  %s1500_s13 = sphi %s1580_s13, %s2001_s13  }
   0x4   : > { %p30_p0 = scmp.ge.s32.totalorder %s29_s18, 4  ;;  %p1320_p1 = scmp.ge.s32.totalorder %s1516_s17, 1 }
   0x5   : > { %p331_p2 = scmp.lt.s32.totalorder %s1516_s17, 9 }
   0x6   : > { %s2006_s18 = smov (%p30_p0, %s29_s18), 0  ;;  %s2008_s19 = smov (!%p30_p0, %s32_s19), %s1512_s16 }
   0x7   : > { %p332_p3 = pnand %p1320_p1, %p331_p2  ;;  %p34_p4 = scmp.ge.s32.totalorder %s2008_s19, 2 }
   0x8   : > { %p375_p5 = scmp.lt.s32.totalorder (!%p332_p3), %s1504_s14, 1  ;;  %p377_p6 = scmp.lt.s32.totalorder (!%p332_p3), %s1500_s13, 3 }
   0x9   : > { %s2010_s19 = smov (%p34_p4, %s2008_s19), 0  ;;  %335 = sbr.rel (%p332_p3) target bundleno = 1101 (0x44d), region = 60 }
   0xa   : > { %p1325_p7 = scmp.ne.s32.totalorder (!%p332_p3), %s1500_s13, 0 }
  0x10   : > { %s2012_s14 = smov (!%p375_p5, %s1504_s14), 1  ;;  %395 = sbr.rel (%p1325_p7) target bundleno = 23 (0x17), region = 64 }
  0x11   : > { %s378_s20 = scalar_select %p377_p6, %s1500_s13, 3 }
  0x12   : > { %s1321_s21 = sshll.u32 %s2012_s14, 2  ;;  %vm396_vm0 = vcmask (!%p1325_p7), 261120   ;;  %vm399_vm1 = vcmask (!%p1325_p7), 256000   ;;  %v1518_v0 = vmov (!%p1325_p7), 0.0  }
  0x13   : > { %s380_s22 = sadd.s32 %s1321_s21, %s378_s20  ;;  %397 = vst.msk [vmem:[#allocation9] sm:$0xff] (!%p1325_p7), %vm396_vm0, %v1518_v0  ;;  %398 = vst.msk [vmem:[#allocation9 + $0x8] sm:$0xff] (!%p1325_p7), %vm396_vm0, %v1518_v0 }
  0x14   : > { %s1322_s23 = sshll.u32 %s380_s22, 3  ;;  %400 = vst.msk [vmem:[#allocation10] sm:$0x7] (!%p1325_p7), %vm399_vm1, %v1518_v0 }
  0x15   : > { %s382_s26 = scalar_lea.vmem %s1990_s0, %s1322_s23  ;;  %s1616_s29 = scalar_lea.vmem %s2000_s10, %s1322_s23 }
  0x17 PF: > { %v1429_v1 = vld [vmem:[%s1991_s1] sm:$0xff]   ;;  %v1519_v2 = vmov 0.0   ;;  %vm411_vm2 = vcmask 130048   ;;  %vm1520_vm3 = vmmov 0   ;;  %vm459_vm4 = vcmask 256000   ;;  %v1431_v7 = vld [vmem:[%s1994_s4 + $0x8] sm:$0xff]  }
  0x18   : > { %1354 = vmatprep.subr.bf16.mxu0 %v1519_v2  ;;  %v401_v3 = vld [vmem:[%s382_s26] sm:$0xff]  ;;  %1360 = vmatprep.subr.bf16.mxu1 %v1519_v2  ;;  %vm455_vm5 = vcmask 523264   ;;  %v467_v10 = vlaneseq  ;;  %vm461_vm6 = vcmask 261120   ;;  %vm463_vm7 = vcmask 261125   ;;  %s1522_s27 = smov 127   ;;  %s1523_s28 = smov 111  }
  0x19   : > { %1355 = vmatpush3.bf16.msra.mxu0 %v1429_v1  ;;  %1356 = vmatprep.mubr.msk.bf16.mxu0 %vm1520_vm3, %v1519_v2  ;;  %v402_v4 = vpack.c.bf16 %v401_v3, %v401_v3  ;;  %v1430_v6 = vld [vmem:[%s1994_s4] sm:$0xff]   ;;  %vm591_vm8 = vcmask 1040384   ;;  %v1521_v44 = vmov 0   ;;  %vm587_vm9 = vcmask 7168   ;;  %s1524_s12 = smov 96  }
  0x1a   : > { %1364 = vmatprep.mubr.msk.bf16.mxu1 %vm1520_vm3, %v1519_v2  ;;  %1368 = vmatprep.subr.bf16.mxu0 %v1519_v2  ;;  %v1639_v13 = vshrl.u32 %v467_v10, 7  ;;  %v465_v17 = vld [vmem:[%s1992_s2] sm:$0xf]  ;;  %v593_v45 = vsel %vm591_vm8, 65535, %v1521_v44  ;;  %v659_v53 = vand.u32 127, %v467_v10  ;;  %vm966_vm13 = vcmask 253952  }
  0x1b   : > { %v458_v5 = vld [vmem:[#allocation10] sm:$0x7]  ;;  %1361 = vmatpush3.bf16.msra.mxu1 %v1430_v6  ;;  %v1328_v34 = vld [vmem:[%s1993_s3] ss:$0 sm:$0xff] }
  0x1c   : > { %1357 = vmatmul.mubr.msk.bf16.vlgmr.msra.gmra.mrb[0].mxu0 %vm411_vm2, %v402_v4  ;;  %460 = vst.msk [vmem:[#allocation3] sm:$0x7] %vm459_vm4, %v458_v5  ;;  %1362 = vmatprep.subr.bf16.mxu1 %v1519_v2  ;;  %v1647_v15 = vsub.s32 0, %v1639_v13  ;;  %v1650_v16 = vsub.s32 1, %v1639_v13  ;;  %v1656_v18 = vsub.s32 2, %v1639_v13  ;;  %v1661_v21 = vsub.s32 3, %v1639_v13 }
  0x1d   : > { %1370 = vmatprep.mubr.msk.bf16.mxu0 %vm1520_vm3, %v1519_v2  ;;  %v579_v43 = vld [vmem:[%s1995_s5] sm:$0x1]  ;;  %v657_v54 = vadd.s32 8, %v1639_v13  ;;  %vm660_vm10 = vcmp.eq.s32.totalorder %v1639_v13, %v659_v53  ;;  %v1680_v56 = vsub.s32 5, %v1639_v13  ;;  %v1686_v59 = vsub.s32 6, %v1639_v13 }
  0x1e   : > { %v470_v19 = vrot.slane %v465_v17, %v1647_v15  ;;  %v476_v20 = vrot.slane %v465_v17, %v1650_v16  ;;  %v483_v22 = vrot.slane %v465_v17, %v1656_v18  ;;  %v490_v28 = vrot.slane %v465_v17, %v1661_v21 }
  0x1f   : > { %1363 = vmatpush3.bf16.msra.mxu1 %v1431_v7  ;;  %v595_v46 = vand.u32 %v593_v45, %v579_v43  ;;  %vm661_vm11 = vcmp.eq.s32.totalorder %v657_v54, %v659_v53  ;;  %v1683_v57 = vsel %vm660_vm10, 1.0, %v1519_v2  ;;  %v1702_v4 = vsub.s32 7, %v1639_v13 }
  0x20   : > { %1374 = vmatprep.subr.bf16.mxu1 %v1519_v2  ;;  %v1694_v63 = vsel %vm661_vm11, 1.0, %v1519_v2 }
  0x21   : > { %1369 = vmatpush3.bf16.msra.mxu0 %v595_v46 }
  0xef   : > { %v449_v8 = vpop.f32.mrb[0].mxu0 }
  0xf0   : > { %456 = vst.msk [vmem:[#allocation2] sm:$0xff] %vm455_vm5, %v449_v8  ;;  %v1358_v9 = vpop.f32.mrb[1].mxu0 }
  0xf1   : > { %v452_v11 = vpop.f32.mrb[2].mxu0 }
  0xf2   : > { %v1359_v12 = vpop.f32.mrb[3].mxu0 }
  0xf7   : > { %v1641_v14 = vld [vmem:[#allocation2] sm:$0xff] }
  0xf8   : > { %462 = vst.msk [vmem:[#allocation3 + $0x3] sm:$0xff] %vm461_vm6, %v1641_v14 }
  0xf9   : > { %464 = vst.msk [vmem:[#allocation10 - $0x5] sm:$0xe0] %vm463_vm7, %v1641_v14 }
  0xff   : > { %v466_v23 = vld [vmem:[#allocation3] sm:$0xff] }
 0x100   : > { %v472_v24 = vld [vmem:[#allocation3 + $0x1] sm:$0xff]  ;;  %v471_v26 = vmul.f32 %v470_v19, %v466_v23 }
 0x101   : > { %v479_v25 = vld [vmem:[#allocation3 + $0x2] sm:$0xff]  ;;  %v477_v27 = vmul.f32 %v476_v20, %v472_v24 }
 0x102   : > { %v486_v29 = vld [vmem:[#allocation3 + $0x3] sm:$0xff]  ;;  %v484_v31 = vmul.f32 %v483_v22, %v479_v25 }
 0x103   : > { %v478_v30 = vadd.f32 %v477_v27, %v471_v26  ;;  %v491_v33 = vmul.f32 %v490_v28, %v486_v29 }
 0x105   : > { %v485_v32 = vadd.f32 %v484_v31, %v478_v30 }
 0x107   : > { %v492_v35 = vadd.f32 %v491_v33, %v485_v32 }
 0x109   : > { %v500_v36 = vadd.f32 %v1328_v34, %v492_v35  ;;  %v1735_v34 = vsub.s32 4, %v1639_v13 }
 0x10b   : > { %v1329_v37 = vmul.f32 -1.442695, %v500_v36 }
 0x10d   : > { %1434 = vpow2.f32 %v1329_v37 }
 0x117   : > { %v1435_v38 = vpop.eup %1434 }
 0x118   : > { %v504_v39 = vadd.f32 1.0, %v1435_v38 }
 0x11a   : > { %1436 = vrcp.f32 %v504_v39 }
 0x124   : > { %v1437_v40 = vpop.eup %1436 }
 0x125   : > { %v507_v41 = vmul.f32 %v1437_v40, %v500_v36 }
 0x127   : > { %508 = vst.msk [vmem:[#allocation4] sm:$0xff] %vm461_vm6, %v507_v41  ;;  %v509_v42 = vpack.c.bf16 %v507_v41, %v507_v41 }
 0x129   : > { %1365 = vmatmul.mubr.msk.bf16.vlgmr.msra.gmra.mrb[0].mxu1 %vm461_vm6, %v509_v42 }
 0x12a   : > { %1378 = vmatprep.mubr.msk.bf16.mxu1 %vm1520_vm3, %v1519_v2 }
 0x1fc   : > { %v563_v47 = vpop.f32.mrb[0].mxu1 }
 0x1fd   : > { %v578_v48 = vpack.c.bf16 %v563_v47, %v563_v47  ;;  %570 = vrot.lane.b32.xlu0 %v563_v47, %s1522_s27  ;;  %v1366_v49 = vpop.f32.mrb[1].mxu1 }
 0x1fe   : > { %v566_v50 = vpop.f32.mrb[2].mxu1 }
 0x1ff   : > { %v1367_v51 = vpop.f32.mrb[3].mxu1  ;;  %1371 = vmatmul.mubr.msk.bf16.vlgmr.msra.gmra.mrb[4].mxu0 %vm587_vm9, %v578_v48 }
 0x201   : > { %574 = vrot.lane.b32.xlu0 %v563_v47, %s1523_s28 }
 0x26f   : > { %v571_v52 = vpop.permute.xlu0 %570 }
 0x270   : > { %573 = vst.msk [vmem:[#allocation5] sm:$0xff] %vm411_vm2, %v571_v52 }
 0x273   : > { %v575_v55 = vpop.permute.xlu0 %574 }
 0x274   : > { %577 = vst.msk [vmem:[#allocation6] sm:$0xff] %vm411_vm2, %v575_v55 }
 0x277   : > { %v670_v58 = vld [vmem:[#allocation5] sm:$0xff] }
 0x278   : > { %v768_v60 = vrot.slane %v670_v58, %v1650_v16  ;;  %v756_v61 = vrot.slane %v670_v58, %v1647_v15  ;;  %v1691_v62 = vrot.slane %v670_v58, %v1680_v56  ;;  %v1699_v3 = vrot.slane %v670_v58, %v1686_v59 }
 0x279   : > { %v1710_v9 = vrot.slane %v670_v58, %v1702_v4  ;;  %v780_v10 = vrot.slane %v670_v58, %v1656_v18  ;;  %v792_v28 = vrot.slane %v670_v58, %v1661_v21  ;;  %v804_v40 = vrot.slane %v670_v58, %v1735_v34 }
 0x27a   : > { %v769_v0 = vmul.f32 %v1683_v57, %v768_v60  ;;  %v757_v1 = vmul.f32 %v1683_v57, %v756_v61  ;;  %v818_v7 = vmul.f32 %v1694_v63, %v1691_v62  ;;  %v758_v8 = vmul.f32 %v1694_v63, %v756_v61 }
 0x27b   : > { %v830_v17 = vmul.f32 %v1694_v63, %v1699_v3  ;;  %v770_v19 = vmul.f32 %v1694_v63, %v768_v60  ;;  %v671_v20 = vld [vmem:[#allocation6] sm:$0xff]  ;;  %v842_v22 = vmul.f32 %v1694_v63, %v1710_v9  ;;  %v781_v25 = vmul.f32 %v1683_v57, %v780_v10 }
 0x27c   : > { %v771_v5 = vsel %vm411_vm2, %v769_v0, 0.0  ;;  %v759_v6 = vsel %vm411_vm2, %v757_v1, 0.0  ;;  %v822_v11 = vsel %vm411_vm2, %v818_v7, 0.0  ;;  %v762_v12 = vsel %vm411_vm2, %v758_v8, 0.0 }
 0x27d   : > { %772 = vadd.xlane.f32.xlu0 %v771_v5  ;;  %760 = vadd.xlane.f32.xlu1 %v759_v6  ;;  %v834_v23 = vsel %vm411_vm2, %v830_v17, 0.0  ;;  %v774_v24 = vsel %vm411_vm2, %v770_v19, 0.0  ;;  %v1724_v26 = vrot.slane %v671_v20, %v1647_v15  ;;  %v846_v27 = vsel %vm411_vm2, %v842_v22, 0.0 }
 0x27e   : > { %v783_v29 = vsel %vm411_vm2, %v781_v25, 0.0  ;;  %v782_v30 = vmul.f32 %v1694_v63, %v780_v10  ;;  %v864_v32 = vrot.slane %v671_v20, %v1650_v16  ;;  %v793_v33 = vmul.f32 %v1683_v57, %v792_v28 }
 0x27f   : > { %v854_v31 = vmul.f32 %v1694_v63, %v1724_v26  ;;  %v876_v38 = vrot.slane %v671_v20, %v1656_v18  ;;  %v794_v39 = vmul.f32 %v1694_v63, %v792_v28  ;;  %v888_v43 = vrot.slane %v671_v20, %v1661_v21 }
 0x280   : > { %v786_v35 = vsel %vm411_vm2, %v782_v30, 0.0  ;;  %v866_v37 = vmul.f32 %v1694_v63, %v864_v32  ;;  %v795_v41 = vsel %vm411_vm2, %v793_v33, 0.0  ;;  %v805_v44 = vmul.f32 %v1683_v57, %v804_v40 }
 0x281   : > { %823 = vadd.xlane.f32.xlu0 %v822_v11  ;;  %763 = vadd.xlane.f32.xlu1 %v762_v12  ;;  %v858_v36 = vsel %vm411_vm2, %v854_v31, 0.0  ;;  %v878_v13 = vmul.f32 %v1694_v63, %v876_v38  ;;  %v798_v45 = vsel %vm411_vm2, %v794_v39, 0.0  ;;  %v890_v47 = vmul.f32 %v1694_v63, %v888_v43 }
 0x282   : > { %v870_v42 = vsel %vm411_vm2, %v866_v37, 0.0  ;;  %v900_v48 = vrot.slane %v671_v20, %v1735_v34  ;;  %v807_v49 = vsel %vm411_vm2, %v805_v44, 0.0  ;;  %v806_v51 = vmul.f32 %v1694_v63, %v804_v40  ;;  %v1333_v37 = vld [vmem:[%s1996_s6] ss:$0 sm:$0xff] }
 0x283   : > { %v882_v46 = vsel %vm411_vm2, %v878_v13, 0.0  ;;  %v894_v50 = vsel %vm411_vm2, %v890_v47, 0.0  ;;  %v912_v53 = vrot.slane %v671_v20, %v1680_v56  ;;  %v817_v54 = vmul.f32 %v1683_v57, %v1691_v62 }
 0x284   : > { %v902_v52 = vmul.f32 %v1694_v63, %v900_v48  ;;  %v810_v55 = vsel %vm411_vm2, %v806_v51, 0.0  ;;  %v924_v61 = vrot.slane %v671_v20, %v1686_v59  ;;  %v829_v0 = vmul.f32 %v1683_v57, %v1699_v3 }
 0x285   : > { %835 = vadd.xlane.f32.xlu0 %v834_v23  ;;  %775 = vadd.xlane.f32.xlu1 %v774_v24  ;;  %v914_v60 = vmul.f32 %v1694_v63, %v912_v53  ;;  %v819_v1 = vsel %vm411_vm2, %v817_v54, 0.0  ;;  %v936_v62 = vrot.slane %v671_v20, %v1702_v4  ;;  %v841_v10 = vmul.f32 %v1683_v57, %v1710_v9 }
 0x286   : > { %v906_v58 = vsel %vm411_vm2, %v902_v52, 0.0  ;;  %v926_v6 = vmul.f32 %v1694_v63, %v924_v61  ;;  %v831_v7 = vsel %vm411_vm2, %v829_v0, 0.0  ;;  %v853_v17 = vmul.f32 %v1683_v57, %v1724_v26  ;;  %v1811_v0 = vld [vmem:[%s1997_s7 + $0x8] sm:$0xff] }
 0x287   : > { %v918_v5 = vsel %vm411_vm2, %v914_v60, 0.0  ;;  %v938_v11 = vmul.f32 %v1694_v63, %v936_v62  ;;  %v843_v3 = vsel %vm411_vm2, %v841_v10, 0.0  ;;  %v865_v20 = vmul.f32 %v1683_v57, %v864_v32  ;;  %v1433_v60 = vld [vmem:[%s1999_s9 + $0x8] sm:$0xff]  }
 0x288   : > { %v930_v8 = vsel %vm411_vm2, %v926_v6, 0.0  ;;  %v855_v19 = vsel %vm411_vm2, %v853_v17, 0.0  ;;  %v877_v63 = vmul.f32 %v1683_v57, %v876_v38  ;;  %v889_v23 = vmul.f32 %v1683_v57, %v888_v43 }
 0x289   : > { %847 = vadd.xlane.f32.xlu0 %v846_v27  ;;  %784 = vadd.xlane.f32.xlu1 %v783_v29  ;;  %v942_v12 = vsel %vm411_vm2, %v938_v11, 0.0  ;;  %v867_v9 = vsel %vm411_vm2, %v865_v20, 0.0  ;;  %v1338_v24 = vmul.f32 -1.442695, %v1641_v14  ;;  %v901_v26 = vmul.f32 %v1683_v57, %v900_v48 }
 0x28a   : > { %v879_v22 = vsel %vm411_vm2, %v877_v63, 0.0  ;;  %v891_v25 = vsel %vm411_vm2, %v889_v23, 0.0  ;;  %v913_v28 = vmul.f32 %v1683_v57, %v912_v53  ;;  %v925_v30 = vmul.f32 %v1683_v57, %v924_v61  ;;  %v667_v23 = vld [vmem:[#allocation9 + $0x8] sm:$0xff] }
 0x28b   : > { %1438 = vpow2.f32 %v1338_v24  ;;  %v903_v27 = vsel %vm411_vm2, %v901_v26, 0.0  ;;  %v937_v33 = vmul.f32 %v1683_v57, %v936_v62 }
 0x28c   : > { %v915_v29 = vsel %vm411_vm2, %v913_v28, 0.0  ;;  %v927_v32 = vsel %vm411_vm2, %v925_v30, 0.0 }
 0x28d   : > { %787 = vadd.xlane.f32.xlu1 %v786_v35  ;;  %859 = vadd.xlane.f32.xlu0 %v858_v36  ;;  %v939_v36 = vsel %vm411_vm2, %v937_v33, 0.0 }
 0x291   : > { %796 = vadd.xlane.f32.xlu1 %v795_v41  ;;  %871 = vadd.xlane.f32.xlu0 %v870_v42 }
 0x295   : > { %799 = vadd.xlane.f32.xlu1 %v798_v45  ;;  %883 = vadd.xlane.f32.xlu0 %v882_v46  ;;  %v1439_v31 = vpop.eup %1438 }
 0x296   : > { %v1153_v35 = vadd.f32 1.0, %v1439_v31 }
 0x298   : > { %1440 = vrcp.f32 %v1153_v35 }
 0x299   : > { %808 = vadd.xlane.f32.xlu1 %v807_v49  ;;  %895 = vadd.xlane.f32.xlu0 %v894_v50 }
 0x29d   : > { %811 = vadd.xlane.f32.xlu1 %v810_v55  ;;  %907 = vadd.xlane.f32.xlu0 %v906_v58  ;;  %v1432_v55 = vld [vmem:[%s1999_s9] sm:$0xff]  }
 0x29e   : > { %1375 = vmatpush3.bf16.msra.mxu1 %v1432_v55 }
 0x29f   : > { %1376 = vmatprep.subr.bf16.mxu1 %v1519_v2 }
 0x2a1   : > { %820 = vadd.xlane.f32.xlu1 %v819_v1  ;;  %919 = vadd.xlane.f32.xlu0 %v918_v5 }
 0x2a2   : > { %v1441_v42 = vpop.eup %1440  ;;  %1377 = vmatpush3.bf16.msra.mxu1 %v1433_v60 }
 0x2a3   : > { %v1156_v57 = vmul.f32 %v1441_v42, %v1641_v14 }
 0x2a5   : > { %832 = vadd.xlane.f32.xlu1 %v831_v7  ;;  %931 = vadd.xlane.f32.xlu0 %v930_v8  ;;  %v1822_v7 = vld [vmem:[%s1997_s7] sm:$0xff] }
 0x2a9   : > { %844 = vadd.xlane.f32.xlu1 %v843_v3  ;;  %943 = vadd.xlane.f32.xlu0 %v942_v12  ;;  %v1827_v12 = vld [vmem:[#allocation4] sm:$0xff] }
 0x2ad   : > { %856 = vadd.xlane.f32.xlu1 %v855_v19 }
 0x2b1   : > { %868 = vadd.xlane.f32.xlu1 %v867_v9 }
 0x2b5   : > { %880 = vadd.xlane.f32.xlu1 %v879_v22 }
 0x2b9   : > { %892 = vadd.xlane.f32.xlu1 %v891_v25 }
 0x2bd   : > { %904 = vadd.xlane.f32.xlu1 %v903_v27 }
 0x2c1   : > { %916 = vadd.xlane.f32.xlu1 %v915_v29 }
 0x2c5   : > { %928 = vadd.xlane.f32.xlu1 %v927_v32 }
 0x2c9   : > { %940 = vadd.xlane.f32.xlu1 %v939_v36 }
 0x2d2   : > { %v631_v38 = vpop.f32.mrb[4].mxu0 }
 0x2d3   : > { %v632_v39 = vadd.f32 %v1333_v37, %v631_v38  ;;  %v1372_v40 = vpop.f32.mrb[5].mxu0 }
 0x2d4   : > { %v634_v41 = vpop.f32.mrb[6].mxu0 }
 0x2d5   : > { %v638_v13 = vand.u32 2147483647, %v632_v39  ;;  %v1373_v43 = vpop.f32.mrb[7].mxu0  ;;  %v637_v54 = vmax.f32 %v632_v39, 0.0 }
 0x2d6   : > { %v666_v43 = vld [vmem:[#allocation9] sm:$0xff] }
 0x2d7   : > { %v639_v44 = vsub.f32 0.0, %v638_v13 }
 0x2d9   : > { %v640_v45 = vmul.f32 1.442695, %v639_v44 }
 0x2da   : > { %1158 = vrot.lane.b32.xlu1 %v1156_v57, %s1524_s12 }
 0x2db   : > { %1442 = vpow2.f32 %v640_v45 }
 0x2e5   : > { %v1443_v46 = vpop.eup %1442 }
 0x2e6   : > { %v642_v47 = vadd.f32 1.0, %v1443_v46  ;;  %v645_v48 = vmul.f32 -0.5, %v1443_v46  ;;  %v648_v50 = vand.u32 2147483647, %v1443_v46 }
 0x2e8   : > { %1444 = vlog2.f32 %v642_v47  ;;  %v646_v49 = vadd.f32 1.0, %v645_v48  ;;  %vm649_vm12 = vcmp.lt.f32.partialorder %v648_v50, 0.0004427343 }
 0x2ea   : > { %v647_v53 = vmul.f32 %v1443_v46, %v646_v49 }
 0x2f2   : > { %v1445_v51 = vpop.eup %1444 }
 0x2f3   : > { %v644_v52 = vmul.f32 0.6931472, %v1445_v51 }
 0x2f5   : > { %v650_v14 = vsel %vm649_vm12, %v647_v53, %v644_v52 }
 0x2f6   : > { %v651_v58 = vadd.f32 %v650_v14, %v637_v54 }
 0x2f8   : > { %652 = vst.msk [vmem:[#allocation7] sm:$0xff] %vm461_vm6, %v651_v58 }
 0x2ff   : > { %v1806_v61 = vld [vmem:[#allocation7] sm:$0xff] }
 0x300   : > { %v676_v1 = vrot.slane %v1806_v61, %v1647_v15  ;;  %v686_v5 = vrot.slane %v1806_v61, %v1650_v16  ;;  %v696_v10 = vrot.slane %v1806_v61, %v1656_v18  ;;  %v1832_v20 = vmul.f32 %v1827_v12, %v1806_v61 }
 0x301   : > { %v706_v22 = vrot.slane %v1806_v61, %v1661_v21  ;;  %v716_v35 = vrot.slane %v1806_v61, %v1735_v34  ;;  %v726_v42 = vrot.slane %v1806_v61, %v1680_v56 }
 0x302   : > { %v678_v6 = vmul.f32 %v676_v1, %v1811_v0  ;;  %v688_v2 = vmul.f32 %v686_v5, %v1811_v0  ;;  %v677_v11 = vmul.f32 %v676_v1, %v1822_v7  ;;  %v687_v19 = vmul.f32 %v686_v5, %v1822_v7 }
 0x303   : > { %v698_v9 = vmul.f32 %v696_v10, %v1811_v0  ;;  %v697_v25 = vmul.f32 %v696_v10, %v1822_v7  ;;  %v950_v26 = vrot.slane %v1832_v20, %v1647_v15  ;;  %v708_v33 = vmul.f32 %v706_v22, %v1811_v0 }
 0x304   : > { %v681_v62 = vmul.f32 1.442695, %v678_v6  ;;  %v691_v8 = vmul.f32 1.442695, %v688_v2  ;;  %v679_v17 = vmul.f32 1.442695, %v677_v11  ;;  %v707_v37 = vmul.f32 %v706_v22, %v1822_v7 }
 0x305   : > { %v689_v24 = vmul.f32 1.442695, %v687_v19  ;;  %v701_v27 = vmul.f32 1.442695, %v698_v9  ;;  %v699_v36 = vmul.f32 1.442695, %v697_v25  ;;  %v973_v15 = vrot.slane %v1832_v20, %v1650_v16 }
 0x306   : > { %1446 = vpow2.f32 %v681_v62  ;;  %v711_v41 = vmul.f32 1.442695, %v708_v33  ;;  %v709_v44 = vmul.f32 1.442695, %v707_v37  ;;  %v717_v57 = vmul.f32 %v716_v35, %v1822_v7 }
 0x307   : > { %1448 = vpow2.f32 %v691_v8  ;;  %v718_v46 = vmul.f32 %v716_v35, %v1811_v0  ;;  %v736_v16 = vrot.slane %v1806_v61, %v1686_v59  ;;  %v997_v50 = vrot.slane %v1832_v20, %v1656_v18 }
 0x308   : > { %1450 = vpow2.f32 %v679_v17  ;;  %v728_v54 = vmul.f32 %v726_v42, %v1811_v0  ;;  %v719_v55 = vmul.f32 1.442695, %v717_v57  ;;  %v727_v60 = vmul.f32 %v726_v42, %v1822_v7 }
 0x309   : > { %1452 = vpow2.f32 %v689_v24  ;;  %v721_v14 = vmul.f32 1.442695, %v718_v46  ;;  %v738_v8 = vmul.f32 %v736_v16, %v1811_v0  ;;  %v746_v17 = vrot.slane %v1806_v61, %v1702_v4 }
 0x30a   : > { %v761_v3 = vpop.xlane.xlu1 %760  ;;  %v773_v29 = vpop.xlane.xlu0 %772  ;;  %1454 = vpow2.f32 %v701_v27  ;;  %v729_v9 = vmul.f32 1.442695, %v727_v60 }
 0x30b   : > { %1456 = vpow2.f32 %v699_v36  ;;  %v951_v49 = vmul.f32 %v950_v26, %v761_v3  ;;  %v974_v2 = vmul.f32 %v973_v15, %v773_v29  ;;  %v731_v3 = vmul.f32 1.442695, %v728_v54 }
 0x30c   : > { %1458 = vpow2.f32 %v711_v41  ;;  %v741_v27 = vmul.f32 1.442695, %v738_v8  ;;  %v748_v61 = vmul.f32 %v746_v17, %v1811_v0 }
 0x30d   : > { %1460 = vpow2.f32 %v709_v44 }
 0x30e   : > { %v764_v63 = vpop.xlane.xlu1 %763  ;;  %v1852_v45 = vpop.xlane.xlu0 %823  ;;  %1462 = vpow2.f32 %v719_v55  ;;  %v751_v0 = vmul.f32 1.442695, %v748_v61 }
 0x30f   : > { %v952_v30 = vmul.f32 %v950_v26, %v764_v63  ;;  %1464 = vpow2.f32 %v721_v14  ;;  %v737_v63 = vmul.f32 %v736_v16, %v1822_v7 }
 0x310   : > { %v1447_v28 = vpop.eup %1446  ;;  %1466 = vpow2.f32 %v731_v3 }
 0x311   : > { %v946_v32 = vmul.f32 %v1447_v28, %v667_v23  ;;  %v1449_v39 = vpop.eup %1448  ;;  %v1021_v23 = vrot.slane %v1832_v20, %v1661_v21  ;;  %1468 = vpow2.f32 %v729_v9  ;;  %v739_v21 = vmul.f32 1.442695, %v737_v63 }
 0x312   : > { %v776_v31 = vpop.xlane.xlu1 %775  ;;  %v1451_v47 = vpop.eup %1450  ;;  %1470 = vpow2.f32 %v741_v27  ;;  %v1117_v63 = vrot.slane %v1832_v20, %v1702_v4 }
 0x313   : > { %v1844_v38 = vadd.f32 %v952_v30, %v946_v32  ;;  %v975_v48 = vmul.f32 %v973_v15, %v776_v31  ;;  %v945_v52 = vmul.f32 %v1451_v47, %v666_v43  ;;  %v1453_v1 = vpop.eup %1452  ;;  %v1865_v62 = vpop.xlane.xlu0 %835  ;;  %v747_v30 = vmul.f32 %v746_v17, %v1822_v7 }
 0x314   : > { %v1455_v6 = vpop.eup %1454  ;;  %v1045_v15 = vrot.slane %v1832_v20, %v1735_v34  ;;  %1472 = vpow2.f32 %v739_v21 }
 0x315   : > { %v969_v13 = vmul.f32 %v1449_v39, %v1844_v38  ;;  %v1862_v58 = vadd.f32 %v951_v49, %v945_v52  ;;  %v1457_v22 = vpop.eup %1456  ;;  %1474 = vpow2.f32 %v751_v0 }
 0x316   : > { %v785_v40 = vpop.xlane.xlu1 %784  ;;  %v1459_v31 = vpop.eup %1458 }
 0x317   : > { %v1859_v53 = vadd.f32 %v975_v48, %v969_v13  ;;  %v968_v10 = vmul.f32 %v1453_v1, %v1862_v58  ;;  %v998_v25 = vmul.f32 %v997_v50, %v785_v40  ;;  %v848_v32 = vpop.xlane.xlu0 %847  ;;  %v1461_v36 = vpop.eup %1460  ;;  %v749_v13 = vmul.f32 1.442695, %v747_v30 }
 0x318   : > { %v1463_v43 = vpop.eup %1462  ;;  %v1119_v27 = vmul.f32 %v1117_v63, %v848_v32 }
 0x319   : > { %v993_v11 = vmul.f32 %v1455_v6, %v1859_v53  ;;  %v1872_v19 = vadd.f32 %v974_v2, %v968_v10  ;;  %v1465_v44 = vpop.eup %1464  ;;  %1476 = vpow2.f32 %v749_v13  ;;  %v1093_v2 = vrot.slane %v1832_v20, %v1686_v59 }
 0x31a   : > { %v788_v51 = vpop.xlane.xlu1 %787  ;;  %v1467_v49 = vpop.eup %1466 }
 0x31b   : > { %v999_v5 = vmul.f32 %v997_v50, %v788_v51  ;;  %v992_v28 = vmul.f32 %v1457_v22, %v1872_v19  ;;  %v860_v57 = vpop.xlane.xlu0 %859  ;;  %v1069_v50 = vrot.slane %v1832_v20, %v1680_v56  ;;  %v1469_v52 = vpop.eup %1468 }
 0x31c   : > { %v1471_v6 = vpop.eup %1470  ;;  %v956_v61 = vmul.f32 %v1844_v38, %v860_v57 }
 0x31d   : > { %v1877_v24 = vadd.f32 %v999_v5, %v993_v11  ;;  %v1882_v35 = vadd.f32 %v998_v25, %v992_v28  ;;  %v1071_v55 = vmul.f32 %v1069_v50, %v1852_v45  ;;  %v1095_v11 = vmul.f32 %v1093_v2, %v1865_v62 }
 0x31e   : > { %v797_v18 = vpop.xlane.xlu1 %796  ;;  %v1473_v56 = vpop.eup %1472 }
 0x31f   : > { %v1022_v33 = vmul.f32 %v1021_v23, %v797_v18  ;;  %v1017_v37 = vmul.f32 %v1459_v31, %v1877_v24  ;;  %v1016_v40 = vmul.f32 %v1461_v36, %v1882_v35  ;;  %v872_v5 = vpop.xlane.xlu0 %871  ;;  %v1475_v9 = vpop.eup %1474 }
 0x320   : > { %v979_v21 = vmul.f32 %v1859_v53, %v872_v5 }
 0x321   : > { %v1890_v42 = vadd.f32 %v1022_v33, %v1016_v40  ;;  %v958_v33 = vsel %vm461_vm6, %v956_v61, 0.0 }
 0x322   : > { %v800_v26 = vpop.xlane.xlu1 %799  ;;  %v981_v40 = vsel %vm461_vm6, %v979_v21, 0.0 }
 0x323   : > { %v1023_v29 = vmul.f32 %v1021_v23, %v800_v26  ;;  %v1040_v47 = vmul.f32 %v1463_v43, %v1890_v42  ;;  %v1477_v23 = vpop.eup %1476  ;;  %v884_v25 = vpop.xlane.xlu0 %883 }
 0x324   : > { %v1003_v0 = vmul.f32 %v1877_v24, %v884_v25 }
 0x325   : > { %v1888_v41 = vadd.f32 %v1023_v29, %v1017_v37 }
 0x326   : > { %v809_v39 = vpop.xlane.xlu1 %808 }
 0x327   : > { %v1046_v7 = vmul.f32 %v1045_v15, %v809_v39  ;;  %v1041_v34 = vmul.f32 %v1465_v44, %v1888_v41  ;;  %v896_v32 = vpop.xlane.xlu0 %895 }
 0x329   : > { %v1894_v16 = vadd.f32 %v1046_v7, %v1040_v47  ;;  %v1005_v47 = vsel %vm461_vm6, %v1003_v0, 0.0 }
 0x32a   : > { %v812_v46 = vpop.xlane.xlu1 %811 }
 0x32b   : > { %v1047_v48 = vmul.f32 %v1045_v15, %v812_v46  ;;  %v1064_v1 = vmul.f32 %v1469_v52, %v1894_v16  ;;  %v908_v7 = vpop.xlane.xlu0 %907 }
 0x32d   : > { %v1898_v51 = vadd.f32 %v1047_v48, %v1041_v34  ;;  %v1027_v48 = vmul.f32 %v1888_v41, %v896_v32 }
 0x32e   : > { %v821_v54 = vpop.xlane.xlu1 %820 }
 0x32f   : > { %v1070_v14 = vmul.f32 %v1069_v50, %v821_v54  ;;  %v1065_v60 = vmul.f32 %v1467_v49, %v1898_v51  ;;  %v920_v54 = vpop.xlane.xlu0 %919 }
 0x331   : > { %v1905_v18 = vadd.f32 %v1071_v55, %v1065_v60  ;;  %v1907_v8 = vadd.f32 %v1070_v14, %v1064_v1  ;;  %v1051_v1 = vmul.f32 %v1898_v51, %v908_v7 }
 0x332   : > { %v833_v10 = vpop.xlane.xlu1 %832 }
 0x333   : > { %v1094_v3 = vmul.f32 %v1093_v2, %v833_v10  ;;  %v1089_v45 = vmul.f32 %v1471_v6, %v1905_v18  ;;  %v1088_v17 = vmul.f32 %v1473_v56, %v1907_v8 }
 0x335   : > { %v1914_v22 = vadd.f32 %v1095_v11, %v1089_v45  ;;  %v1916_v59 = vadd.f32 %v1094_v3, %v1088_v17  ;;  %v1053_v17 = vsel %vm461_vm6, %v1051_v1, 0.0 }
 0x336   : > { %v845_v26 = vpop.xlane.xlu1 %844 }
 0x337   : > { %v1118_v28 = vmul.f32 %v1117_v63, %v845_v26  ;;  %v1113_v62 = vmul.f32 %v1475_v9, %v1914_v22  ;;  %v1112_v29 = vmul.f32 %v1477_v23, %v1916_v59  ;;  %v1075_v9 = vmul.f32 %v1905_v18, %v920_v54  ;;  %v932_v63 = vpop.xlane.xlu0 %931 }
 0x339   : > { %v1921_v30 = vadd.f32 %v1119_v27, %v1113_v62  ;;  %v1923_v31 = vadd.f32 %v1118_v28, %v1112_v29 }
 0x33a   : > { %v857_v4 = vpop.xlane.xlu1 %856 }
 0x33b   : > { %1137 = vst.msk [vmem:[#allocation9 + $0x8] sm:$0xff] %vm461_vm6, %v1921_v30  ;;  %v955_v20 = vmul.f32 %v1862_v58, %v857_v4  ;;  %1136 = vst.msk [vmem:[#allocation9] sm:$0xff] %vm461_vm6, %v1923_v31  ;;  %v1077_v4 = vsel %vm461_vm6, %v1075_v9, 0.0 }
 0x33d   : > { %v957_v38 = vsel %vm461_vm6, %v955_v20, 0.0  ;;  %v1099_v20 = vmul.f32 %v1914_v22, %v932_v63 }
 0x33e   : > { %v959_v36 = vadd.f32 %v958_v33, %v957_v38  ;;  %v869_v37 = vpop.xlane.xlu1 %868 }
 0x33f   : > { %v978_v39 = vmul.f32 %v1872_v19, %v869_v37  ;;  %v1101_v0 = vsel %vm461_vm6, %v1099_v20, 0.0 }
 0x340   : > { %v960_v15 = vrot.slane %v959_v36, 4 }
 0x341   : > { %v980_v58 = vsel %vm461_vm6, %v978_v39, 0.0  ;;  %v944_v39 = vpop.xlane.xlu0 %943 }
 0x342   : > { %v961_v13 = vadd.f32 %v960_v15, %v959_v36  ;;  %v982_v43 = vadd.f32 %v981_v40, %v980_v58  ;;  %v881_v44 = vpop.xlane.xlu1 %880  ;;  %v1123_v58 = vmul.f32 %v1921_v30, %v944_v39 }
 0x343   : > { %v1002_v57 = vmul.f32 %v1882_v35, %v881_v44  ;;  %v1029_v35 = vsel %vm461_vm6, %v1027_v48, 0.0 }
 0x344   : > { %v962_v53 = vrot.slane %v961_v13, 2  ;;  %v983_v46 = vrot.slane %v982_v43, 4  ;;  %v1125_v48 = vsel %vm461_vm6, %v1123_v58, 0.0 }
 0x345   : > { %v1004_v19 = vsel %vm461_vm6, %v1002_v57, 0.0 }
 0x346   : > { %v963_v34 = vadd.f32 %v962_v53, %v961_v13  ;;  %v984_v49 = vadd.f32 %v983_v46, %v982_v43  ;;  %v1006_v50 = vadd.f32 %v1005_v47, %v1004_v19  ;;  %v893_v24 = vpop.xlane.xlu1 %892 }
 0x347   : > { %v1026_v52 = vmul.f32 %v1890_v42, %v893_v24 }
 0x348   : > { %v964_v55 = vrot.slane %v963_v34, 1  ;;  %v985_v14 = vrot.slane %v984_v49, 2  ;;  %v1007_v60 = vrot.slane %v1006_v50, 4 }
 0x349   : > { %v1028_v5 = vsel %vm461_vm6, %v1026_v52, 0.0 }
 0x34a   : > { %v965_v41 = vadd.f32 %v964_v55, %v963_v34  ;;  %v986_v6 = vadd.f32 %v985_v14, %v984_v49  ;;  %v1008_v2 = vadd.f32 %v1007_v60, %v1006_v50  ;;  %v1030_v56 = vadd.f32 %v1029_v35, %v1028_v5  ;;  %v905_v10 = vpop.xlane.xlu1 %904 }
 0x34b   : > { %v1050_v11 = vmul.f32 %v1894_v16, %v905_v10 }
 0x34c   : > { %967 = vst.msk [vmem:[#allocation8] sm:$0x1] %vm966_vm13, %v965_v41  ;;  %v987_v42 = vrot.slane %v986_v6, 1  ;;  %v1009_v3 = vrot.slane %v1008_v2, 2  ;;  %v1031_v45 = vrot.slane %v1030_v56, 4 }
 0x34d   : > { %v1052_v51 = vsel %vm461_vm6, %v1050_v11, 0.0 }
 0x34e   : > { %v988_v23 = vadd.f32 %v987_v42, %v986_v6  ;;  %v1010_v25 = vadd.f32 %v1009_v3, %v1008_v2  ;;  %v1032_v26 = vadd.f32 %v1031_v45, %v1030_v56  ;;  %v1054_v27 = vadd.f32 %v1053_v17, %v1052_v51  ;;  %v917_v28 = vpop.xlane.xlu1 %916  ;;  %v1337_v2 = vld [vmem:[%s1998_s8] ss:$0 sm:$0xff] }
 0x34f   : > { %v1074_v62 = vmul.f32 %v1907_v8, %v917_v28  ;;  %v1148_v56 = vmul.f32 %v1337_v2, %v1827_v12 }
 0x350   : > { %991 = vst.msk [vmem:[#allocation8 + $0x1] sm:$0x1] %vm966_vm13, %v988_v23  ;;  %v1011_v16 = vrot.slane %v1010_v25, 1  ;;  %v1033_v29 = vrot.slane %v1032_v26, 2  ;;  %v1055_v61 = vrot.slane %v1054_v27, 4 }
 0x351   : > { %v1076_v18 = vsel %vm461_vm6, %v1074_v62, 0.0 }
 0x352   : > { %v1012_v32 = vadd.f32 %v1011_v16, %v1010_v25  ;;  %v1034_v33 = vadd.f32 %v1033_v29, %v1032_v26  ;;  %v1056_v21 = vadd.f32 %v1055_v61, %v1054_v27  ;;  %v1078_v38 = vadd.f32 %v1077_v4, %v1076_v18  ;;  %v929_v36 = vpop.xlane.xlu1 %928 }
 0x353   : > { %v1098_v37 = vmul.f32 %v1916_v59, %v929_v36 }
 0x354   : > { %1015 = vst.msk [vmem:[#allocation8 + $0x2] sm:$0x1] %vm966_vm13, %v1012_v32  ;;  %v1035_v8 = vrot.slane %v1034_v33, 1  ;;  %v1057_v15 = vrot.slane %v1056_v21, 2  ;;  %v1079_v40 = vrot.slane %v1078_v38, 4 }
 0x355   : > { %v1100_v22 = vsel %vm461_vm6, %v1098_v37, 0.0 }
 0x356   : > { %v1036_v7 = vadd.f32 %v1035_v8, %v1034_v33  ;;  %v1058_v13 = vadd.f32 %v1057_v15, %v1056_v21  ;;  %v1080_v43 = vadd.f32 %v1079_v40, %v1078_v38  ;;  %v1102_v44 = vadd.f32 %v1101_v0, %v1100_v22  ;;  %v941_v57 = vpop.xlane.xlu1 %940 }
 0x357   : > { %v1122_v53 = vmul.f32 %v1923_v31, %v941_v57 }
 0x358   : > { %1039 = vst.msk [vmem:[#allocation8 + $0x3] sm:$0x1] %vm966_vm13, %v1036_v7  ;;  %v1059_v59 = vrot.slane %v1058_v13, 1  ;;  %v1081_v46 = vrot.slane %v1080_v43, 2  ;;  %v1103_v47 = vrot.slane %v1102_v44, 4 }
 0x359   : > { %v1124_v19 = vsel %vm461_vm6, %v1122_v53, 0.0 }
 0x35a   : > { %v1060_v34 = vadd.f32 %v1059_v59, %v1058_v13  ;;  %v1082_v30 = vadd.f32 %v1081_v46, %v1080_v43  ;;  %v1104_v49 = vadd.f32 %v1103_v47, %v1102_v44  ;;  %v1126_v50 = vadd.f32 %v1125_v48, %v1124_v19  ;;  %v1159_v42 = vpop.permute.xlu1 %1158 }
 0x35c   : > { %1063 = vst.msk [vmem:[#allocation8 + $0x4] sm:$0x1] %vm966_vm13, %v1060_v34  ;;  %v1083_v24 = vrot.slane %v1082_v30, 1  ;;  %v1105_v52 = vrot.slane %v1104_v49, 2  ;;  %v1127_v54 = vrot.slane %v1126_v50, 4 }
 0x35e   : > { %v1084_v55 = vadd.f32 %v1083_v24, %v1082_v30  ;;  %v1106_v31 = vadd.f32 %v1105_v52, %v1104_v49  ;;  %v1128_v14 = vadd.f32 %v1127_v54, %v1126_v50 }
 0x360   : > { %1087 = vst.msk [vmem:[#allocation8 + $0x5] sm:$0x1] %vm966_vm13, %v1084_v55  ;;  %v1107_v60 = vrot.slane %v1106_v31, 1  ;;  %v1129_v35 = vrot.slane %v1128_v14, 2 }
 0x362   : > { %v1108_v1 = vadd.f32 %v1107_v60, %v1106_v31  ;;  %v1130_v5 = vadd.f32 %v1129_v35, %v1128_v14 }
 0x364   : > { %1111 = vst.msk [vmem:[#allocation8 + $0x6] sm:$0x1] %vm966_vm13, %v1108_v1  ;;  %v1131_v41 = vrot.slane %v1130_v5, 1 }
 0x366   : > { %v1132_v6 = vadd.f32 %v1131_v41, %v1130_v5 }
 0x368   : > { %1135 = vst.msk [vmem:[#allocation8 + $0x7] sm:$0x1] %vm966_vm13, %v1132_v6 }
 0x36f   : > { %v1139_v10 = vld [vmem:[#allocation8] sm:$0xff] }
 0x370   : > { %v1149_v11 = vadd.f32 %v1148_v56, %v1139_v10 }
 0x372   : > { %v1161_v3 = vmul.f32 %v1159_v42, %v1149_v11 }
 0x374   : > { %v1162_v45 = vpack.c.bf16 %v1161_v3, %v1161_v3 }
 0x376   : > { %1379 = vmatmul.mubr.msk.bf16.vlgmr.msra.gmra.mrb[4].mxu1 %vm461_vm6, %v1162_v45 }
 0x449   : > { %v1216_v17 = vpop.f32.mrb[4].mxu1 }
 0x44a   : > { %1222 = vst.msk [vmem:[%s1616_s29] sm:$0xff] %vm411_vm2, %v1216_v17  ;;  %v1380_v9 = vpop.f32.mrb[5].mxu1 }
 0x44b   : > { %v1219_v51 = vpop.f32.mrb[6].mxu1 }
 0x44c   : > { %v1381_v63 = vpop.f32.mrb[7].mxu1 }
 0x44d PF: > { %s20_s17 = sadd.s32 1, %s1516_s17   ;;  %s2001_s13 = smov %s1508_s15 }
 0x44e   : > { %p17_p8 = scmp.ge.s32.totalorder %s20_s17, 10   ;;  %s2002_s14 = smov %s1512_s16 }
 0x44f   : > { %s2003_s15 = smov %s2006_s18  ;;  %s2004_s16 = smov %s2010_s19 }
 0x450   :  { %19 = sbr.rel (!%p17_p8) target bundleno = 3 (0x3), region = 101 }

// kernel: tpu_custom_call.1
= control target key start
LH: loop header
LB: loop body
LE: loop exit
PB: predicated region body
PF: predicated region fallthrough
CT: control target
= control target key end

     0   :  { %s1580_s13 = smov 0   ;;  %s1582_s14 = smov 0   ;;  %s1990_s0 = inlined_call_operand.vmem [shape: f32[2,32,16], index: 0, kind: input, shape index: {}]   ;;  %s1991_s1 = inlined_call_operand.vmem [shape: bf16[16,64], index: 1, kind: input, shape index: {}]   ;;  %s1992_s2 = inlined_call_operand.vmem [shape: f32[4,32], index: 2, kind: input, shape index: {}]   ;;  %s1993_s3 = inlined_call_operand.vmem [shape: f32[1,32], index: 3, kind: input, shape index: {}]   ;;  %s1994_s4 = inlined_call_operand.vmem [shape: bf16[32,33], index: 4, kind: input, shape index: {}]   ;;  %s1995_s5 = inlined_call_operand.vmem [shape: bf16[1,32], index: 5, kind: input, shape index: {}]   ;;  %s1996_s6 = inlined_call_operand.vmem [shape: f32[1,32], index: 6, kind: input, shape index: {}]   ;;  %s1997_s7 = inlined_call_operand.vmem [shape: f32[16,32], index: 7, kind: input, shape index: {}]   ;;  %s1998_s8 = inlined_call_operand.vmem [shape: f32[1,32], index: 8, kind: input, shape index: {}]   ;;  %s1999_s9 = inlined_call_operand.vmem [shape: bf16[32,16], index: 9, kind: input, shape index: {}]   ;;  %s2000_s10 = inlined_call_operand.vmem [shape: f32[2,32,16], index: 10, kind: output, shape index: {}]  }
   0x1   :  { %s1584_s15 = smov 0   ;;  %s1586_s16 = smov 0  }
   0x2   :  { %s1588_s17 = smov 0  }
   0x3 LB: > { %s29_s18 = sadd.s32 1, %s1508_s15  ;;  %s32_s19 = sadd.s32 1, %s1512_s16  ;;  %s1516_s17 = sphi %s1588_s17, %s20_s17   ;;  %s1512_s16 = sphi %s1586_s16, %s2004_s16   ;;  %s1508_s15 = sphi %s1584_s15, %s2003_s15   ;;  %s1504_s14 = sphi %s1582_s14, %s2002_s14   ;;  %s1500_s13 = sphi %s1580_s13, %s2001_s13  }
   0x4   : > { %p30_p0 = scmp.ge.s32.totalorder %s29_s18, 4  ;;  %p1320_p1 = scmp.ge.s32.totalorder %s1516_s17, 1 }
   0x5   : > { %p331_p2 = scmp.lt.s32.totalorder %s1516_s17, 9 }
   0x6   : > { %s2006_s18 = smov (%p30_p0, %s29_s18), 0  ;;  %s2008_s19 = smov (!%p30_p0, %s32_s19), %s1512_s16 }
   0x7   : > { %p332_p3 = pnand %p1320_p1, %p331_p2  ;;  %p34_p4 = scmp.ge.s32.totalorder %s2008_s19, 2 }
   0x8   : > { %p375_p5 = scmp.lt.s32.totalorder (!%p332_p3), %s1504_s14, 1  ;;  %p377_p6 = scmp.lt.s32.totalorder (!%p332_p3), %s1500_s13, 3 }
   0x9   : > { %s2010_s19 = smov (%p34_p4, %s2008_s19), 0  ;;  %335 = sbr.rel (%p332_p3) target bundleno = 1101 (0x44d), region = 60 }
   0xa   : > { %p1325_p7 = scmp.ne.s32.totalorder (!%p332_p3), %s1500_s13, 0 }
  0x10   : > { %s2012_s14 = smov (!%p375_p5, %s1504_s14), 1  ;;  %395 = sbr.rel (%p1325_p7) target bundleno = 23 (0x17), region = 64 }
  0x11   : > { %s378_s20 = scalar_select %p377_p6, %s1500_s13, 3 }
  0x12   : > { %s1321_s21 = sshll.u32 %s2012_s14, 2  ;;  %vm396_vm0 = vcmask (!%p1325_p7), 261120   ;;  %vm399_vm1 = vcmask (!%p1325_p7), 256000   ;;  %v1518_v0 = vmov (!%p1325_p7), 0.0  }
  0x13   : > { %s380_s22 = sadd.s32 %s1321_s21, %s378_s20  ;;  %397 = vst.msk [vmem:[#allocation9] sm:$0xff] (!%p1325_p7), %vm396_vm0, %v1518_v0  ;;  %398 = vst.msk [vmem:[#allocation9 + $0x8] sm:$0xff] (!%p1325_p7), %vm396_vm0, %v1518_v0 }
  0x14   : > { %s1322_s23 = sshll.u32 %s380_s22, 3  ;;  %400 = vst.msk [vmem:[#allocation10] sm:$0x7] (!%p1325_p7), %vm399_vm1, %v1518_v0 }
  0x15   : > { %s382_s26 = scalar_lea.vmem %s1990_s0, %s1322_s23  ;;  %s1616_s29 = scalar_lea.vmem %s2000_s10, %s1322_s23 }
  0x17 PF: > { %v1429_v1 = vld [vmem:[%s1991_s1] sm:$0xff]   ;;  %v1519_v2 = vmov 0.0   ;;  %vm411_vm2 = vcmask 130048   ;;  %vm1520_vm3 = vmmov 0   ;;  %vm459_vm4 = vcmask 256000   ;;  %v1431_v7 = vld [vmem:[%s1994_s4 + $0x8] sm:$0xff]  }
  0x18   : > { %1354 = vmatprep.subr.bf16.mxu0 %v1519_v2  ;;  %v401_v3 = vld [vmem:[%s382_s26] sm:$0xff]  ;;  %1360 = vmatprep.subr.bf16.mxu1 %v1519_v2  ;;  %vm455_vm5 = vcmask 523264   ;;  %v467_v10 = vlaneseq  ;;  %vm461_vm6 = vcmask 261120   ;;  %vm463_vm7 = vcmask 261125   ;;  %s1522_s27 = smov 127   ;;  %s1523_s28 = smov 111  }
  0x19   : > { %1355 = vmatpush3.bf16.msra.mxu0 %v1429_v1  ;;  %1356 = vmatprep.mubr.msk.bf16.mxu0 %vm1520_vm3, %v1519_v2  ;;  %v402_v4 = vpack.c.bf16 %v401_v3, %v401_v3  ;;  %v1430_v6 = vld [vmem:[%s1994_s4] sm:$0xff]   ;;  %vm591_vm8 = vcmask 1040384   ;;  %v1521_v44 = vmov 0   ;;  %vm587_vm9 = vcmask 7168   ;;  %s1524_s12 = smov 96  }
  0x1a   : > { %1364 = vmatprep.mubr.msk.bf16.mxu1 %vm1520_vm3, %v1519_v2  ;;  %1368 = vmatprep.subr.bf16.mxu0 %v1519_v2  ;;  %v1639_v13 = vshrl.u32 %v467_v10, 7  ;;  %v465_v17 = vld [vmem:[%s1992_s2] sm:$0xf]  ;;  %v593_v45 = vsel %vm591_vm8, 65535, %v1521_v44  ;;  %v659_v53 = vand.u32 127, %v467_v10  ;;  %vm966_vm13 = vcmask 253952  }
  0x1b   : > { %v458_v5 = vld [vmem:[#allocation10] sm:$0x7]  ;;  %1361 = vmatpush3.bf16.msra.mxu1 %v1430_v6  ;;  %v1328_v34 = vld [vmem:[%s1993_s3] ss:$0 sm:$0xff] }
  0x1c   : > { %1357 = vmatmul.mubr.msk.bf16.vlgmr.msra.gmra.mrb[0].mxu0 %vm411_vm2, %v402_v4  ;;  %460 = vst.msk [vmem:[#allocation3] sm:$0x7] %vm459_vm4, %v458_v5  ;;  %1362 = vmatprep.subr.bf16.mxu1 %v1519_v2  ;;  %v1647_v15 = vsub.s32 0, %v1639_v13  ;;  %v1650_v16 = vsub.s32 1, %v1639_v13  ;;  %v1656_v18 = vsub.s32 2, %v1639_v13  ;;  %v1661_v21 = vsub.s32 3, %v1639_v13 }
  0x1d   : > { %1370 = vmatprep.mubr.msk.bf16.mxu0 %vm1520_vm3, %v1519_v2  ;;  %v579_v43 = vld [vmem:[%s1995_s5] sm:$0x1]  ;;  %v657_v54 = vadd.s32 8, %v1639_v13  ;;  %vm660_vm10 = vcmp.eq.s32.totalorder %v1639_v13, %v659_v53  ;;  %v1680_v56 = vsub.s32 5, %v1639_v13  ;;  %v1686_v59 = vsub.s32 6, %v1639_v13 }
  0x1e   : > { %v470_v19 = vrot.slane %v465_v17, %v1647_v15  ;;  %v476_v20 = vrot.slane %v465_v17, %v1650_v16  ;;  %v483_v22 = vrot.slane %v465_v17, %v1656_v18  ;;  %v490_v28 = vrot.slane %v465_v17, %v1661_v21 }
  0x1f   : > { %1363 = vmatpush3.bf16.msra.mxu1 %v1431_v7  ;;  %v595_v46 = vand.u32 %v593_v45, %v579_v43  ;;  %vm661_vm11 = vcmp.eq.s32.totalorder %v657_v54, %v659_v53  ;;  %v1683_v57 = vsel %vm660_vm10, 1.0, %v1519_v2  ;;  %v1702_v4 = vsub.s32 7, %v1639_v13 }
  0x20   : > { %1374 = vmatprep.subr.bf16.mxu1 %v1519_v2  ;;  %v1694_v63 = vsel %vm661_vm11, 1.0, %v1519_v2 }
  0x21   : > { %1369 = vmatpush3.bf16.msra.mxu0 %v595_v46 }
  0xef   : > { %v449_v8 = vpop.f32.mrb[0].mxu0 }
  0xf0   : > { %456 = vst.msk [vmem:[#allocation2] sm:$0xff] %vm455_vm5, %v449_v8  ;;  %v1358_v9 = vpop.f32.mrb[1].mxu0 }
  0xf1   : > { %v452_v11 = vpop.f32.mrb[2].mxu0 }
  0xf2   : > { %v1359_v12 = vpop.f32.mrb[3].mxu0 }
  0xf7   : > { %v1641_v14 = vld [vmem:[#allocation2] sm:$0xff] }
  0xf8   : > { %462 = vst.msk [vmem:[#allocation3 + $0x3] sm:$0xff] %vm461_vm6, %v1641_v14 }
  0xf9   : > { %464 = vst.msk [vmem:[#allocation10 - $0x5] sm:$0xe0] %vm463_vm7, %v1641_v14 }
  0xff   : > { %v466_v23 = vld [vmem:[#allocation3] sm:$0xff] }
 0x100   : > { %v472_v24 = vld [vmem:[#allocation3 + $0x1] sm:$0xff]  ;;  %v471_v26 = vmul.f32 %v470_v19, %v466_v23 }
 0x101   : > { %v479_v25 = vld [vmem:[#allocation3 + $0x2] sm:$0xff]  ;;  %v477_v27 = vmul.f32 %v476_v20, %v472_v24 }
 0x102   : > { %v486_v29 = vld [vmem:[#allocation3 + $0x3] sm:$0xff]  ;;  %v484_v31 = vmul.f32 %v483_v22, %v479_v25 }
 0x103   : > { %v478_v30 = vadd.f32 %v477_v27, %v471_v26  ;;  %v491_v33 = vmul.f32 %v490_v28, %v486_v29 }
 0x105   : > { %v485_v32 = vadd.f32 %v484_v31, %v478_v30 }
 0x107   : > { %v492_v35 = vadd.f32 %v491_v33, %v485_v32 }
 0x109   : > { %v500_v36 = vadd.f32 %v1328_v34, %v492_v35  ;;  %v1735_v34 = vsub.s32 4, %v1639_v13 }
 0x10b   : > { %v1329_v37 = vmul.f32 -1.442695, %v500_v36 }
 0x10d   : > { %1434 = vpow2.f32 %v1329_v37 }
 0x117   : > { %v1435_v38 = vpop.eup %1434 }
 0x118   : > { %v504_v39 = vadd.f32 1.0, %v1435_v38 }
 0x11a   : > { %1436 = vrcp.f32 %v504_v39 }
 0x124   : > { %v1437_v40 = vpop.eup %1436 }
 0x125   : > { %v507_v41 = vmul.f32 %v1437_v40, %v500_v36 }
 0x127   : > { %508 = vst.msk [vmem:[#allocation4] sm:$0xff] %vm461_vm6, %v507_v41  ;;  %v509_v42 = vpack.c.bf16 %v507_v41, %v507_v41 }
 0x129   : > { %1365 = vmatmul.mubr.msk.bf16.vlgmr.msra.gmra.mrb[0].mxu1 %vm461_vm6, %v509_v42 }
 0x12a   : > { %1378 = vmatprep.mubr.msk.bf16.mxu1 %vm1520_vm3, %v1519_v2 }
 0x1fc   : > { %v563_v47 = vpop.f32.mrb[0].mxu1 }
 0x1fd   : > { %v578_v48 = vpack.c.bf16 %v563_v47, %v563_v47  ;;  %570 = vrot.lane.b32.xlu0 %v563_v47, %s1522_s27  ;;  %v1366_v49 = vpop.f32.mrb[1].mxu1 }
 0x1fe   : > { %v566_v50 = vpop.f32.mrb[2].mxu1 }
 0x1ff   : > { %v1367_v51 = vpop.f32.mrb[3].mxu1  ;;  %1371 = vmatmul.mubr.msk.bf16.vlgmr.msra.gmra.mrb[4].mxu0 %vm587_vm9, %v578_v48 }
 0x201   : > { %574 = vrot.lane.b32.xlu0 %v563_v47, %s1523_s28 }
 0x26f   : > { %v571_v52 = vpop.permute.xlu0 %570 }
 0x270   : > { %573 = vst.msk [vmem:[#allocation5] sm:$0xff] %vm411_vm2, %v571_v52 }
 0x273   : > { %v575_v55 = vpop.permute.xlu0 %574 }
 0x274   : > { %577 = vst.msk [vmem:[#allocation6] sm:$0xff] %vm411_vm2, %v575_v55 }
 0x277   : > { %v670_v58 = vld [vmem:[#allocation5] sm:$0xff] }
 0x278   : > { %v768_v60 = vrot.slane %v670_v58, %v1650_v16  ;;  %v756_v61 = vrot.slane %v670_v58, %v1647_v15  ;;  %v1691_v62 = vrot.slane %v670_v58, %v1680_v56  ;;  %v1699_v3 = vrot.slane %v670_v58, %v1686_v59 }
 0x279   : > { %v1710_v9 = vrot.slane %v670_v58, %v1702_v4  ;;  %v780_v10 = vrot.slane %v670_v58, %v1656_v18  ;;  %v792_v28 = vrot.slane %v670_v58, %v1661_v21  ;;  %v804_v40 = vrot.slane %v670_v58, %v1735_v34 }
 0x27a   : > { %v769_v0 = vmul.f32 %v1683_v57, %v768_v60  ;;  %v757_v1 = vmul.f32 %v1683_v57, %v756_v61  ;;  %v818_v7 = vmul.f32 %v1694_v63, %v1691_v62  ;;  %v758_v8 = vmul.f32 %v1694_v63, %v756_v61 }
 0x27b   : > { %v830_v17 = vmul.f32 %v1694_v63, %v1699_v3  ;;  %v770_v19 = vmul.f32 %v1694_v63, %v768_v60  ;;  %v671_v20 = vld [vmem:[#allocation6] sm:$0xff]  ;;  %v842_v22 = vmul.f32 %v1694_v63, %v1710_v9  ;;  %v781_v25 = vmul.f32 %v1683_v57, %v780_v10 }
 0x27c   : > { %v771_v5 = vsel %vm411_vm2, %v769_v0, 0.0  ;;  %v759_v6 = vsel %vm411_vm2, %v757_v1, 0.0  ;;  %v822_v11 = vsel %vm411_vm2, %v818_v7, 0.0  ;;  %v762_v12 = vsel %vm411_vm2, %v758_v8, 0.0 }
 0x27d   : > { %772 = vadd.xlane.f32.xlu0 %v771_v5  ;;  %760 = vadd.xlane.f32.xlu1 %v759_v6  ;;  %v834_v23 = vsel %vm411_vm2, %v830_v17, 0.0  ;;  %v774_v24 = vsel %vm411_vm2, %v770_v19, 0.0  ;;  %v1724_v26 = vrot.slane %v671_v20, %v1647_v15  ;;  %v846_v27 = vsel %vm411_vm2, %v842_v22, 0.0 }
 0x27e   : > { %v783_v29 = vsel %vm411_vm2, %v781_v25, 0.0  ;;  %v782_v30 = vmul.f32 %v1694_v63, %v780_v10  ;;  %v864_v32 = vrot.slane %v671_v20, %v1650_v16  ;;  %v793_v33 = vmul.f32 %v1683_v57, %v792_v28 }
 0x27f   : > { %v854_v31 = vmul.f32 %v1694_v63, %v1724_v26  ;;  %v876_v38 = vrot.slane %v671_v20, %v1656_v18  ;;  %v794_v39 = vmul.f32 %v1694_v63, %v792_v28  ;;  %v888_v43 = vrot.slane %v671_v20, %v1661_v21 }
 0x280   : > { %v786_v35 = vsel %vm411_vm2, %v782_v30, 0.0  ;;  %v866_v37 = vmul.f32 %v1694_v63, %v864_v32  ;;  %v795_v41 = vsel %vm411_vm2, %v793_v33, 0.0  ;;  %v805_v44 = vmul.f32 %v1683_v57, %v804_v40 }
 0x281   : > { %823 = vadd.xlane.f32.xlu0 %v822_v11  ;;  %763 = vadd.xlane.f32.xlu1 %v762_v12  ;;  %v858_v36 = vsel %vm411_vm2, %v854_v31, 0.0  ;;  %v878_v13 = vmul.f32 %v1694_v63, %v876_v38  ;;  %v798_v45 = vsel %vm411_vm2, %v794_v39, 0.0  ;;  %v890_v47 = vmul.f32 %v1694_v63, %v888_v43 }
 0x282   : > { %v870_v42 = vsel %vm411_vm2, %v866_v37, 0.0  ;;  %v900_v48 = vrot.slane %v671_v20, %v1735_v34  ;;  %v807_v49 = vsel %vm411_vm2, %v805_v44, 0.0  ;;  %v806_v51 = vmul.f32 %v1694_v63, %v804_v40  ;;  %v1333_v37 = vld [vmem:[%s1996_s6] ss:$0 sm:$0xff] }
 0x283   : > { %v882_v46 = vsel %vm411_vm2, %v878_v13, 0.0  ;;  %v894_v50 = vsel %vm411_vm2, %v890_v47, 0.0  ;;  %v912_v53 = vrot.slane %v671_v20, %v1680_v56  ;;  %v817_v54 = vmul.f32 %v1683_v57, %v1691_v62 }
 0x284   : > { %v902_v52 = vmul.f32 %v1694_v63, %v900_v48  ;;  %v810_v55 = vsel %vm411_vm2, %v806_v51, 0.0  ;;  %v924_v61 = vrot.slane %v671_v20, %v1686_v59  ;;  %v829_v0 = vmul.f32 %v1683_v57, %v1699_v3 }
 0x285   : > { %835 = vadd.xlane.f32.xlu0 %v834_v23  ;;  %775 = vadd.xlane.f32.xlu1 %v774_v24  ;;  %v914_v60 = vmul.f32 %v1694_v63, %v912_v53  ;;  %v819_v1 = vsel %vm411_vm2, %v817_v54, 0.0  ;;  %v936_v62 = vrot.slane %v671_v20, %v1702_v4  ;;  %v841_v10 = vmul.f32 %v1683_v57, %v1710_v9 }
 0x286   : > { %v906_v58 = vsel %vm411_vm2, %v902_v52, 0.0  ;;  %v926_v6 = vmul.f32 %v1694_v63, %v924_v61  ;;  %v831_v7 = vsel %vm411_vm2, %v829_v0, 0.0  ;;  %v853_v17 = vmul.f32 %v1683_v57, %v1724_v26  ;;  %v1811_v0 = vld [vmem:[%s1997_s7 + $0x8] sm:$0xff] }
 0x287   : > { %v918_v5 = vsel %vm411_vm2, %v914_v60, 0.0  ;;  %v938_v11 = vmul.f32 %v1694_v63, %v936_v62  ;;  %v843_v3 = vsel %vm411_vm2, %v841_v10, 0.0  ;;  %v865_v20 = vmul.f32 %v1683_v57, %v864_v32  ;;  %v1433_v60 = vld [vmem:[%s1999_s9 + $0x8] sm:$0xff]  }
 0x288   : > { %v930_v8 = vsel %vm411_vm2, %v926_v6, 0.0  ;;  %v855_v19 = vsel %vm411_vm2, %v853_v17, 0.0  ;;  %v877_v63 = vmul.f32 %v1683_v57, %v876_v38  ;;  %v889_v23 = vmul.f32 %v1683_v57, %v888_v43 }
 0x289   : > { %847 = vadd.xlane.f32.xlu0 %v846_v27  ;;  %784 = vadd.xlane.f32.xlu1 %v783_v29  ;;  %v942_v12 = vsel %vm411_vm2, %v938_v11, 0.0  ;;  %v867_v9 = vsel %vm411_vm2, %v865_v20, 0.0  ;;  %v1338_v24 = vmul.f32 -1.442695, %v1641_v14  ;;  %v901_v26 = vmul.f32 %v1683_v57, %v900_v48 }
 0x28a   : > { %v879_v22 = vsel %vm411_vm2, %v877_v63, 0.0  ;;  %v891_v25 = vsel %vm411_vm2, %v889_v23, 0.0  ;;  %v913_v28 = vmul.f32 %v1683_v57, %v912_v53  ;;  %v925_v30 = vmul.f32 %v1683_v57, %v924_v61  ;;  %v667_v23 = vld [vmem:[#allocation9 + $0x8] sm:$0xff] }
 0x28b   : > { %1438 = vpow2.f32 %v1338_v24  ;;  %v903_v27 = vsel %vm411_vm2, %v901_v26, 0.0  ;;  %v937_v33 = vmul.f32 %v1683_v57, %v936_v62 }
 0x28c   : > { %v915_v29 = vsel %vm411_vm2, %v913_v28, 0.0  ;;  %v927_v32 = vsel %vm411_vm2, %v925_v30, 0.0 }
 0x28d   : > { %787 = vadd.xlane.f32.xlu1 %v786_v35  ;;  %859 = vadd.xlane.f32.xlu0 %v858_v36  ;;  %v939_v36 = vsel %vm411_vm2, %v937_v33, 0.0 }
 0x291   : > { %796 = vadd.xlane.f32.xlu1 %v795_v41  ;;  %871 = vadd.xlane.f32.xlu0 %v870_v42 }
 0x295   : > { %799 = vadd.xlane.f32.xlu1 %v798_v45  ;;  %883 = vadd.xlane.f32.xlu0 %v882_v46  ;;  %v1439_v31 = vpop.eup %1438 }
 0x296   : > { %v1153_v35 = vadd.f32 1.0, %v1439_v31 }
 0x298   : > { %1440 = vrcp.f32 %v1153_v35 }
 0x299   : > { %808 = vadd.xlane.f32.xlu1 %v807_v49  ;;  %895 = vadd.xlane.f32.xlu0 %v894_v50 }
 0x29d   : > { %811 = vadd.xlane.f32.xlu1 %v810_v55  ;;  %907 = vadd.xlane.f32.xlu0 %v906_v58  ;;  %v1432_v55 = vld [vmem:[%s1999_s9] sm:$0xff]  }
 0x29e   : > { %1375 = vmatpush3.bf16.msra.mxu1 %v1432_v55 }
 0x29f   : > { %1376 = vmatprep.subr.bf16.mxu1 %v1519_v2 }
 0x2a1   : > { %820 = vadd.xlane.f32.xlu1 %v819_v1  ;;  %919 = vadd.xlane.f32.xlu0 %v918_v5 }
 0x2a2   : > { %v1441_v42 = vpop.eup %1440  ;;  %1377 = vmatpush3.bf16.msra.mxu1 %v1433_v60 }
 0x2a3   : > { %v1156_v57 = vmul.f32 %v1441_v42, %v1641_v14 }
 0x2a5   : > { %832 = vadd.xlane.f32.xlu1 %v831_v7  ;;  %931 = vadd.xlane.f32.xlu0 %v930_v8  ;;  %v1822_v7 = vld [vmem:[%s1997_s7] sm:$0xff] }
 0x2a9   : > { %844 = vadd.xlane.f32.xlu1 %v843_v3  ;;  %943 = vadd.xlane.f32.xlu0 %v942_v12  ;;  %v1827_v12 = vld [vmem:[#allocation4] sm:$0xff] }
 0x2ad   : > { %856 = vadd.xlane.f32.xlu1 %v855_v19 }
 0x2b1   : > { %868 = vadd.xlane.f32.xlu1 %v867_v9 }
 0x2b5   : > { %880 = vadd.xlane.f32.xlu1 %v879_v22 }
 0x2b9   : > { %892 = vadd.xlane.f32.xlu1 %v891_v25 }
 0x2bd   : > { %904 = vadd.xlane.f32.xlu1 %v903_v27 }
 0x2c1   : > { %916 = vadd.xlane.f32.xlu1 %v915_v29 }
 0x2c5   : > { %928 = vadd.xlane.f32.xlu1 %v927_v32 }
 0x2c9   : > { %940 = vadd.xlane.f32.xlu1 %v939_v36 }
 0x2d2   : > { %v631_v38 = vpop.f32.mrb[4].mxu0 }
 0x2d3   : > { %v632_v39 = vadd.f32 %v1333_v37, %v631_v38  ;;  %v1372_v40 = vpop.f32.mrb[5].mxu0 }
 0x2d4   : > { %v634_v41 = vpop.f32.mrb[6].mxu0 }
 0x2d5   : > { %v638_v13 = vand.u32 2147483647, %v632_v39  ;;  %v1373_v43 = vpop.f32.mrb[7].mxu0  ;;  %v637_v54 = vmax.f32 %v632_v39, 0.0 }
 0x2d6   : > { %v666_v43 = vld [vmem:[#allocation9] sm:$0xff] }
 0x2d7   : > { %v639_v44 = vsub.f32 0.0, %v638_v13 }
 0x2d9   : > { %v640_v45 = vmul.f32 1.442695, %v639_v44 }
 0x2da   : > { %1158 = vrot.lane.b32.xlu1 %v1156_v57, %s1524_s12 }
 0x2db   : > { %1442 = vpow2.f32 %v640_v45 }
 0x2e5   : > { %v1443_v46 = vpop.eup %1442 }
 0x2e6   : > { %v642_v47 = vadd.f32 1.0, %v1443_v46  ;;  %v645_v48 = vmul.f32 -0.5, %v1443_v46  ;;  %v648_v50 = vand.u32 2147483647, %v1443_v46 }
 0x2e8   : > { %1444 = vlog2.f32 %v642_v47  ;;  %v646_v49 = vadd.f32 1.0, %v645_v48  ;;  %vm649_vm12 = vcmp.lt.f32.partialorder %v648_v50, 0.0004427343 }
 0x2ea   : > { %v647_v53 = vmul.f32 %v1443_v46, %v646_v49 }
 0x2f2   : > { %v1445_v51 = vpop.eup %1444 }
 0x2f3   : > { %v644_v52 = vmul.f32 0.6931472, %v1445_v51 }
 0x2f5   : > { %v650_v14 = vsel %vm649_vm12, %v647_v53, %v644_v52 }
 0x2f6   : > { %v651_v58 = vadd.f32 %v650_v14, %v637_v54 }
 0x2f8   : > { %652 = vst.msk [vmem:[#allocation7] sm:$0xff] %vm461_vm6, %v651_v58 }
 0x2ff   : > { %v1806_v61 = vld [vmem:[#allocation7] sm:$0xff] }
 0x300   : > { %v676_v1 = vrot.slane %v1806_v61, %v1647_v15  ;;  %v686_v5 = vrot.slane %v1806_v61, %v1650_v16  ;;  %v696_v10 = vrot.slane %v1806_v61, %v1656_v18  ;;  %v1832_v20 = vmul.f32 %v1827_v12, %v1806_v61 }
 0x301   : > { %v706_v22 = vrot.slane %v1806_v61, %v1661_v21  ;;  %v716_v35 = vrot.slane %v1806_v61, %v1735_v34  ;;  %v726_v42 = vrot.slane %v1806_v61, %v1680_v56 }
 0x302   : > { %v678_v6 = vmul.f32 %v676_v1, %v1811_v0  ;;  %v688_v2 = vmul.f32 %v686_v5, %v1811_v0  ;;  %v677_v11 = vmul.f32 %v676_v1, %v1822_v7  ;;  %v687_v19 = vmul.f32 %v686_v5, %v1822_v7 }
 0x303   : > { %v698_v9 = vmul.f32 %v696_v10, %v1811_v0  ;;  %v697_v25 = vmul.f32 %v696_v10, %v1822_v7  ;;  %v950_v26 = vrot.slane %v1832_v20, %v1647_v15  ;;  %v708_v33 = vmul.f32 %v706_v22, %v1811_v0 }
 0x304   : > { %v681_v62 = vmul.f32 1.442695, %v678_v6  ;;  %v691_v8 = vmul.f32 1.442695, %v688_v2  ;;  %v679_v17 = vmul.f32 1.442695, %v677_v11  ;;  %v707_v37 = vmul.f32 %v706_v22, %v1822_v7 }
 0x305   : > { %v689_v24 = vmul.f32 1.442695, %v687_v19  ;;  %v701_v27 = vmul.f32 1.442695, %v698_v9  ;;  %v699_v36 = vmul.f32 1.442695, %v697_v25  ;;  %v973_v15 = vrot.slane %v1832_v20, %v1650_v16 }
 0x306   : > { %1446 = vpow2.f32 %v681_v62  ;;  %v711_v41 = vmul.f32 1.442695, %v708_v33  ;;  %v709_v44 = vmul.f32 1.442695, %v707_v37  ;;  %v717_v57 = vmul.f32 %v716_v35, %v1822_v7 }
 0x307   : > { %1448 = vpow2.f32 %v691_v8  ;;  %v718_v46 = vmul.f32 %v716_v35, %v1811_v0  ;;  %v736_v16 = vrot.slane %v1806_v61, %v1686_v59  ;;  %v997_v50 = vrot.slane %v1832_v20, %v1656_v18 }
 0x308   : > { %1450 = vpow2.f32 %v679_v17  ;;  %v728_v54 = vmul.f32 %v726_v42, %v1811_v0  ;;  %v719_v55 = vmul.f32 1.442695, %v717_v57  ;;  %v727_v60 = vmul.f32 %v726_v42, %v1822_v7 }
 0x309   : > { %1452 = vpow2.f32 %v689_v24  ;;  %v721_v14 = vmul.f32 1.442695, %v718_v46  ;;  %v738_v8 = vmul.f32 %v736_v16, %v1811_v0  ;;  %v746_v17 = vrot.slane %v1806_v61, %v1702_v4 }
 0x30a   : > { %v761_v3 = vpop.xlane.xlu1 %760  ;;  %v773_v29 = vpop.xlane.xlu0 %772  ;;  %1454 = vpow2.f32 %v701_v27  ;;  %v729_v9 = vmul.f32 1.442695, %v727_v60 }
 0x30b   : > { %1456 = vpow2.f32 %v699_v36  ;;  %v951_v49 = vmul.f32 %v950_v26, %v761_v3  ;;  %v974_v2 = vmul.f32 %v973_v15, %v773_v29  ;;  %v731_v3 = vmul.f32 1.442695, %v728_v54 }
 0x30c   : > { %1458 = vpow2.f32 %v711_v41  ;;  %v741_v27 = vmul.f32 1.442695, %v738_v8  ;;  %v748_v61 = vmul.f32 %v746_v17, %v1811_v0 }
 0x30d   : > { %1460 = vpow2.f32 %v709_v44 }
 0x30e   : > { %v764_v63 = vpop.xlane.xlu1 %763  ;;  %v1852_v45 = vpop.xlane.xlu0 %823  ;;  %1462 = vpow2.f32 %v719_v55  ;;  %v751_v0 = vmul.f32 1.442695, %v748_v61 }
 0x30f   : > { %v952_v30 = vmul.f32 %v950_v26, %v764_v63  ;;  %1464 = vpow2.f32 %v721_v14  ;;  %v737_v63 = vmul.f32 %v736_v16, %v1822_v7 }
 0x310   : > { %v1447_v28 = vpop.eup %1446  ;;  %1466 = vpow2.f32 %v731_v3 }
 0x311   : > { %v946_v32 = vmul.f32 %v1447_v28, %v667_v23  ;;  %v1449_v39 = vpop.eup %1448  ;;  %v1021_v23 = vrot.slane %v1832_v20, %v1661_v21  ;;  %1468 = vpow2.f32 %v729_v9  ;;  %v739_v21 = vmul.f32 1.442695, %v737_v63 }
 0x312   : > { %v776_v31 = vpop.xlane.xlu1 %775  ;;  %v1451_v47 = vpop.eup %1450  ;;  %1470 = vpow2.f32 %v741_v27  ;;  %v1117_v63 = vrot.slane %v1832_v20, %v1702_v4 }
 0x313   : > { %v1844_v38 = vadd.f32 %v952_v30, %v946_v32  ;;  %v975_v48 = vmul.f32 %v973_v15, %v776_v31  ;;  %v945_v52 = vmul.f32 %v1451_v47, %v666_v43  ;;  %v1453_v1 = vpop.eup %1452  ;;  %v1865_v62 = vpop.xlane.xlu0 %835  ;;  %v747_v30 = vmul.f32 %v746_v17, %v1822_v7 }
 0x314   : > { %v1455_v6 = vpop.eup %1454  ;;  %v1045_v15 = vrot.slane %v1832_v20, %v1735_v34  ;;  %1472 = vpow2.f32 %v739_v21 }
 0x315   : > { %v969_v13 = vmul.f32 %v1449_v39, %v1844_v38  ;;  %v1862_v58 = vadd.f32 %v951_v49, %v945_v52  ;;  %v1457_v22 = vpop.eup %1456  ;;  %1474 = vpow2.f32 %v751_v0 }
 0x316   : > { %v785_v40 = vpop.xlane.xlu1 %784  ;;  %v1459_v31 = vpop.eup %1458 }
 0x317   : > { %v1859_v53 = vadd.f32 %v975_v48, %v969_v13  ;;  %v968_v10 = vmul.f32 %v1453_v1, %v1862_v58  ;;  %v998_v25 = vmul.f32 %v997_v50, %v785_v40  ;;  %v848_v32 = vpop.xlane.xlu0 %847  ;;  %v1461_v36 = vpop.eup %1460  ;;  %v749_v13 = vmul.f32 1.442695, %v747_v30 }
 0x318   : > { %v1463_v43 = vpop.eup %1462  ;;  %v1119_v27 = vmul.f32 %v1117_v63, %v848_v32 }
 0x319   : > { %v993_v11 = vmul.f32 %v1455_v6, %v1859_v53  ;;  %v1872_v19 = vadd.f32 %v974_v2, %v968_v10  ;;  %v1465_v44 = vpop.eup %1464  ;;  %1476 = vpow2.f32 %v749_v13  ;;  %v1093_v2 = vrot.slane %v1832_v20, %v1686_v59 }
 0x31a   : > { %v788_v51 = vpop.xlane.xlu1 %787  ;;  %v1467_v49 = vpop.eup %1466 }
 0x31b   : > { %v999_v5 = vmul.f32 %v997_v50, %v788_v51  ;;  %v992_v28 = vmul.f32 %v1457_v22, %v1872_v19  ;;  %v860_v57 = vpop.xlane.xlu0 %859  ;;  %v1069_v50 = vrot.slane %v1832_v20, %v1680_v56  ;;  %v1469_v52 = vpop.eup %1468 }
 0x31c   : > { %v1471_v6 = vpop.eup %1470  ;;  %v956_v61 = vmul.f32 %v1844_v38, %v860_v57 }
 0x31d   : > { %v1877_v24 = vadd.f32 %v999_v5, %v993_v11  ;;  %v1882_v35 = vadd.f32 %v998_v25, %v992_v28  ;;  %v1071_v55 = vmul.f32 %v1069_v50, %v1852_v45  ;;  %v1095_v11 = vmul.f32 %v1093_v2, %v1865_v62 }
 0x31e   : > { %v797_v18 = vpop.xlane.xlu1 %796  ;;  %v1473_v56 = vpop.eup %1472 }
 0x31f   : > { %v1022_v33 = vmul.f32 %v1021_v23, %v797_v18  ;;  %v1017_v37 = vmul.f32 %v1459_v31, %v1877_v24  ;;  %v1016_v40 = vmul.f32 %v1461_v36, %v1882_v35  ;;  %v872_v5 = vpop.xlane.xlu0 %871  ;;  %v1475_v9 = vpop.eup %1474 }
 0x320   : > { %v979_v21 = vmul.f32 %v1859_v53, %v872_v5 }
 0x321   : > { %v1890_v42 = vadd.f32 %v1022_v33, %v1016_v40  ;;  %v958_v33 = vsel %vm461_vm6, %v956_v61, 0.0 }
 0x322   : > { %v800_v26 = vpop.xlane.xlu1 %799  ;;  %v981_v40 = vsel %vm461_vm6, %v979_v21, 0.0 }
 0x323   : > { %v1023_v29 = vmul.f32 %v1021_v23, %v800_v26  ;;  %v1040_v47 = vmul.f32 %v1463_v43, %v1890_v42  ;;  %v1477_v23 = vpop.eup %1476  ;;  %v884_v25 = vpop.xlane.xlu0 %883 }
 0x324   : > { %v1003_v0 = vmul.f32 %v1877_v24, %v884_v25 }
 0x325   : > { %v1888_v41 = vadd.f32 %v1023_v29, %v1017_v37 }
 0x326   : > { %v809_v39 = vpop.xlane.xlu1 %808 }
 0x327   : > { %v1046_v7 = vmul.f32 %v1045_v15, %v809_v39  ;;  %v1041_v34 = vmul.f32 %v1465_v44, %v1888_v41  ;;  %v896_v32 = vpop.xlane.xlu0 %895 }
 0x329   : > { %v1894_v16 = vadd.f32 %v1046_v7, %v1040_v47  ;;  %v1005_v47 = vsel %vm461_vm6, %v1003_v0, 0.0 }
 0x32a   : > { %v812_v46 = vpop.xlane.xlu1 %811 }
 0x32b   : > { %v1047_v48 = vmul.f32 %v1045_v15, %v812_v46  ;;  %v1064_v1 = vmul.f32 %v1469_v52, %v1894_v16  ;;  %v908_v7 = vpop.xlane.xlu0 %907 }
 0x32d   : > { %v1898_v51 = vadd.f32 %v1047_v48, %v1041_v34  ;;  %v1027_v48 = vmul.f32 %v1888_v41, %v896_v32 }
 0x32e   : > { %v821_v54 = vpop.xlane.xlu1 %820 }
 0x32f   : > { %v1070_v14 = vmul.f32 %v1069_v50, %v821_v54  ;;  %v1065_v60 = vmul.f32 %v1467_v49, %v1898_v51  ;;  %v920_v54 = vpop.xlane.xlu0 %919 }
 0x331   : > { %v1905_v18 = vadd.f32 %v1071_v55, %v1065_v60  ;;  %v1907_v8 = vadd.f32 %v1070_v14, %v1064_v1  ;;  %v1051_v1 = vmul.f32 %v1898_v51, %v908_v7 }
 0x332   : > { %v833_v10 = vpop.xlane.xlu1 %832 }
 0x333   : > { %v1094_v3 = vmul.f32 %v1093_v2, %v833_v10  ;;  %v1089_v45 = vmul.f32 %v1471_v6, %v1905_v18  ;;  %v1088_v17 = vmul.f32 %v1473_v56, %v1907_v8 }
 0x335   : > { %v1914_v22 = vadd.f32 %v1095_v11, %v1089_v45  ;;  %v1916_v59 = vadd.f32 %v1094_v3, %v1088_v17  ;;  %v1053_v17 = vsel %vm461_vm6, %v1051_v1, 0.0 }
 0x336   : > { %v845_v26 = vpop.xlane.xlu1 %844 }
 0x337   : > { %v1118_v28 = vmul.f32 %v1117_v63, %v845_v26  ;;  %v1113_v62 = vmul.f32 %v1475_v9, %v1914_v22  ;;  %v1112_v29 = vmul.f32 %v1477_v23, %v1916_v59  ;;  %v1075_v9 = vmul.f32 %v1905_v18, %v920_v54  ;;  %v932_v63 = vpop.xlane.xlu0 %931 }
 0x339   : > { %v1921_v30 = vadd.f32 %v1119_v27, %v1113_v62  ;;  %v1923_v31 = vadd.f32 %v1118_v28, %v1112_v29 }
 0x33a   : > { %v857_v4 = vpop.xlane.xlu1 %856 }
 0x33b   : > { %1137 = vst.msk [vmem:[#allocation9 + $0x8] sm:$0xff] %vm461_vm6, %v1921_v30  ;;  %v955_v20 = vmul.f32 %v1862_v58, %v857_v4  ;;  %1136 = vst.msk [vmem:[#allocation9] sm:$0xff] %vm461_vm6, %v1923_v31  ;;  %v1077_v4 = vsel %vm461_vm6, %v1075_v9, 0.0 }
 0x33d   : > { %v957_v38 = vsel %vm461_vm6, %v955_v20, 0.0  ;;  %v1099_v20 = vmul.f32 %v1914_v22, %v932_v63 }
 0x33e   : > { %v959_v36 = vadd.f32 %v958_v33, %v957_v38  ;;  %v869_v37 = vpop.xlane.xlu1 %868 }
 0x33f   : > { %v978_v39 = vmul.f32 %v1872_v19, %v869_v37  ;;  %v1101_v0 = vsel %vm461_vm6, %v1099_v20, 0.0 }
 0x340   : > { %v960_v15 = vrot.slane %v959_v36, 4 }
 0x341   : > { %v980_v58 = vsel %vm461_vm6, %v978_v39, 0.0  ;;  %v944_v39 = vpop.xlane.xlu0 %943 }
 0x342   : > { %v961_v13 = vadd.f32 %v960_v15, %v959_v36  ;;  %v982_v43 = vadd.f32 %v981_v40, %v980_v58  ;;  %v881_v44 = vpop.xlane.xlu1 %880  ;;  %v1123_v58 = vmul.f32 %v1921_v30, %v944_v39 }
 0x343   : > { %v1002_v57 = vmul.f32 %v1882_v35, %v881_v44  ;;  %v1029_v35 = vsel %vm461_vm6, %v1027_v48, 0.0 }
 0x344   : > { %v962_v53 = vrot.slane %v961_v13, 2  ;;  %v983_v46 = vrot.slane %v982_v43, 4  ;;  %v1125_v48 = vsel %vm461_vm6, %v1123_v58, 0.0 }
 0x345   : > { %v1004_v19 = vsel %vm461_vm6, %v1002_v57, 0.0 }
 0x346   : > { %v963_v34 = vadd.f32 %v962_v53, %v961_v13  ;;  %v984_v49 = vadd.f32 %v983_v46, %v982_v43  ;;  %v1006_v50 = vadd.f32 %v1005_v47, %v1004_v19  ;;  %v893_v24 = vpop.xlane.xlu1 %892 }
 0x347   : > { %v1026_v52 = vmul.f32 %v1890_v42, %v893_v24 }
 0x348   : > { %v964_v55 = vrot.slane %v963_v34, 1  ;;  %v985_v14 = vrot.slane %v984_v49, 2  ;;  %v1007_v60 = vrot.slane %v1006_v50, 4 }
 0x349   : > { %v1028_v5 = vsel %vm461_vm6, %v1026_v52, 0.0 }
 0x34a   : > { %v965_v41 = vadd.f32 %v964_v55, %v963_v34  ;;  %v986_v6 = vadd.f32 %v985_v14, %v984_v49  ;;  %v1008_v2 = vadd.f32 %v1007_v60, %v1006_v50  ;;  %v1030_v56 = vadd.f32 %v1029_v35, %v1028_v5  ;;  %v905_v10 = vpop.xlane.xlu1 %904 }
 0x34b   : > { %v1050_v11 = vmul.f32 %v1894_v16, %v905_v10 }
 0x34c   : > { %967 = vst.msk [vmem:[#allocation8] sm:$0x1] %vm966_vm13, %v965_v41  ;;  %v987_v42 = vrot.slane %v986_v6, 1  ;;  %v1009_v3 = vrot.slane %v1008_v2, 2  ;;  %v1031_v45 = vrot.slane %v1030_v56, 4 }
 0x34d   : > { %v1052_v51 = vsel %vm461_vm6, %v1050_v11, 0.0 }
 0x34e   : > { %v988_v23 = vadd.f32 %v987_v42, %v986_v6  ;;  %v1010_v25 = vadd.f32 %v1009_v3, %v1008_v2  ;;  %v1032_v26 = vadd.f32 %v1031_v45, %v1030_v56  ;;  %v1054_v27 = vadd.f32 %v1053_v17, %v1052_v51  ;;  %v917_v28 = vpop.xlane.xlu1 %916  ;;  %v1337_v2 = vld [vmem:[%s1998_s8] ss:$0 sm:$0xff] }
 0x34f   : > { %v1074_v62 = vmul.f32 %v1907_v8, %v917_v28  ;;  %v1148_v56 = vmul.f32 %v1337_v2, %v1827_v12 }
 0x350   : > { %991 = vst.msk [vmem:[#allocation8 + $0x1] sm:$0x1] %vm966_vm13, %v988_v23  ;;  %v1011_v16 = vrot.slane %v1010_v25, 1  ;;  %v1033_v29 = vrot.slane %v1032_v26, 2  ;;  %v1055_v61 = vrot.slane %v1054_v27, 4 }
 0x351   : > { %v1076_v18 = vsel %vm461_vm6, %v1074_v62, 0.0 }
 0x352   : > { %v1012_v32 = vadd.f32 %v1011_v16, %v1010_v25  ;;  %v1034_v33 = vadd.f32 %v1033_v29, %v1032_v26  ;;  %v1056_v21 = vadd.f32 %v1055_v61, %v1054_v27  ;;  %v1078_v38 = vadd.f32 %v1077_v4, %v1076_v18  ;;  %v929_v36 = vpop.xlane.xlu1 %928 }
 0x353   : > { %v1098_v37 = vmul.f32 %v1916_v59, %v929_v36 }
 0x354   : > { %1015 = vst.msk [vmem:[#allocation8 + $0x2] sm:$0x1] %vm966_vm13, %v1012_v32  ;;  %v1035_v8 = vrot.slane %v1034_v33, 1  ;;  %v1057_v15 = vrot.slane %v1056_v21, 2  ;;  %v1079_v40 = vrot.slane %v1078_v38, 4 }
 0x355   : > { %v1100_v22 = vsel %vm461_vm6, %v1098_v37, 0.0 }
 0x356   : > { %v1036_v7 = vadd.f32 %v1035_v8, %v1034_v33  ;;  %v1058_v13 = vadd.f32 %v1057_v15, %v1056_v21  ;;  %v1080_v43 = vadd.f32 %v1079_v40, %v1078_v38  ;;  %v1102_v44 = vadd.f32 %v1101_v0, %v1100_v22  ;;  %v941_v57 = vpop.xlane.xlu1 %940 }
 0x357   : > { %v1122_v53 = vmul.f32 %v1923_v31, %v941_v57 }
 0x358   : > { %1039 = vst.msk [vmem:[#allocation8 + $0x3] sm:$0x1] %vm966_vm13, %v1036_v7  ;;  %v1059_v59 = vrot.slane %v1058_v13, 1  ;;  %v1081_v46 = vrot.slane %v1080_v43, 2  ;;  %v1103_v47 = vrot.slane %v1102_v44, 4 }
 0x359   : > { %v1124_v19 = vsel %vm461_vm6, %v1122_v53, 0.0 }
 0x35a   : > { %v1060_v34 = vadd.f32 %v1059_v59, %v1058_v13  ;;  %v1082_v30 = vadd.f32 %v1081_v46, %v1080_v43  ;;  %v1104_v49 = vadd.f32 %v1103_v47, %v1102_v44  ;;  %v1126_v50 = vadd.f32 %v1125_v48, %v1124_v19  ;;  %v1159_v42 = vpop.permute.xlu1 %1158 }
 0x35c   : > { %1063 = vst.msk [vmem:[#allocation8 + $0x4] sm:$0x1] %vm966_vm13, %v1060_v34  ;;  %v1083_v24 = vrot.slane %v1082_v30, 1  ;;  %v1105_v52 = vrot.slane %v1104_v49, 2  ;;  %v1127_v54 = vrot.slane %v1126_v50, 4 }
 0x35e   : > { %v1084_v55 = vadd.f32 %v1083_v24, %v1082_v30  ;;  %v1106_v31 = vadd.f32 %v1105_v52, %v1104_v49  ;;  %v1128_v14 = vadd.f32 %v1127_v54, %v1126_v50 }
 0x360   : > { %1087 = vst.msk [vmem:[#allocation8 + $0x5] sm:$0x1] %vm966_vm13, %v1084_v55  ;;  %v1107_v60 = vrot.slane %v1106_v31, 1  ;;  %v1129_v35 = vrot.slane %v1128_v14, 2 }
 0x362   : > { %v1108_v1 = vadd.f32 %v1107_v60, %v1106_v31  ;;  %v1130_v5 = vadd.f32 %v1129_v35, %v1128_v14 }
 0x364   : > { %1111 = vst.msk [vmem:[#allocation8 + $0x6] sm:$0x1] %vm966_vm13, %v1108_v1  ;;  %v1131_v41 = vrot.slane %v1130_v5, 1 }
 0x366   : > { %v1132_v6 = vadd.f32 %v1131_v41, %v1130_v5 }
 0x368   : > { %1135 = vst.msk [vmem:[#allocation8 + $0x7] sm:$0x1] %vm966_vm13, %v1132_v6 }
 0x36f   : > { %v1139_v10 = vld [vmem:[#allocation8] sm:$0xff] }
 0x370   : > { %v1149_v11 = vadd.f32 %v1148_v56, %v1139_v10 }
 0x372   : > { %v1161_v3 = vmul.f32 %v1159_v42, %v1149_v11 }
 0x374   : > { %v1162_v45 = vpack.c.bf16 %v1161_v3, %v1161_v3 }
 0x376   : > { %1379 = vmatmul.mubr.msk.bf16.vlgmr.msra.gmra.mrb[4].mxu1 %vm461_vm6, %v1162_v45 }
 0x449   : > { %v1216_v17 = vpop.f32.mrb[4].mxu1 }
 0x44a   : > { %1222 = vst.msk [vmem:[%s1616_s29] sm:$0xff] %vm411_vm2, %v1216_v17  ;;  %v1380_v9 = vpop.f32.mrb[5].mxu1 }
 0x44b   : > { %v1219_v51 = vpop.f32.mrb[6].mxu1 }
 0x44c   : > { %v1381_v63 = vpop.f32.mrb[7].mxu1 }
 0x44d PF: > { %s20_s17 = sadd.s32 1, %s1516_s17   ;;  %s2001_s13 = smov %s1508_s15 }
 0x44e   : > { %p17_p8 = scmp.ge.s32.totalorder %s20_s17, 10   ;;  %s2002_s14 = smov %s1512_s16 }
 0x44f   : > { %s2003_s15 = smov %s2006_s18  ;;  %s2004_s16 = smov %s2010_s19 }
 0x450   :  { %19 = sbr.rel (!%p17_p8) target bundleno = 3 (0x3), region = 101 }

</bundles_post_ra>
